<compile_context>
chip_gen: v7x
topology: tpu7x:2x2x1
jax: 0.10.0
libtpu: 0.0.40
codegen_flags: <defaults>
</compile_context>

<pallas_src>
import math
import numpy as np
import jax
import jax.numpy as jnp
from jax import lax
from jax.experimental import pallas as pl
from jax.experimental.pallas import tpu as pltpu


# ----------------------------------------------------------------------------
# Fused kernel: padded bi-LSTM stack + span differences, all in one body.
#   word_ref             : (T0, D)       raw word representations
#   per layer l          : wih_l (D_l, 8H), whh_l (2H, 8H), b_l (1, 8H)
#                          gate columns interleaved as [i_f,i_b,f_f,f_b,g_f,g_b,o_f,o_b]
#   out_ref              : (T0*(T0+1)/2, 2H)
#   scratch: act (T,2H) layer activations, xg (T,8H) input projections,
#            u (T0+1, 2H) = [fwd, -bwd].
# ----------------------------------------------------------------------------
def make_kernel(T0, D, H, num_layers):
    T = T0 + 2          # padded sequence length (zero row front and back)
    Lp1 = T0 + 1
    H2 = 2 * H
    H8 = 8 * H

    def kernel(word_ref, *args):
        w_refs = args[: 3 * num_layers]
        out_ref = args[3 * num_layers]
        act_scr, xg_scr, u_scr = args[3 * num_layers + 1:]

        # Lane masks (computed once, held in vregs).
        lane8 = lax.broadcasted_iota(jnp.int32, (1, H8), 1)
        fwd_gate_mask = (lane8 % H2) < H          # forward-direction gate columns
        lane2 = lax.broadcasted_iota(jnp.int32, (1, H2), 1)
        fwd_half_mask = lane2 < H                 # forward half of a (.,2H) row

        for layer in range(num_layers):
            wih_ref = w_refs[3 * layer + 0]
            whh_ref = w_refs[3 * layer + 1]
            b_ref = w_refs[3 * layer + 2]
            b = b_ref[...]                        # (1, 8H)

            # ---- input projection for all timesteps (one MXU matmul) ----
            if layer == 0:
                # padded rows 0 and T-1 are zero inputs -> projection is just the bias
                xg_scr[0:1, :] = b
                xg_scr[T - 1:T, :] = b
                xg_scr[1:T0 + 1, :] = (
                    jnp.dot(word_ref[...], wih_ref[...],
                            preferred_element_type=jnp.float32) + b
                )
            else:
                xg_scr[...] = (
                    jnp.dot(act_scr[...], wih_ref[...],
                            preferred_element_type=jnp.float32) + b
                )

            whh = whh_ref[...]                    # (2H, 8H) block-diagonal by direction
            h = jnp.zeros((1, H2), jnp.float32)   # [h_fwd | h_bwd]
            c = jnp.zeros((1, H2), jnp.float32)

            # ---- fused fwd+bwd recurrence, fully unrolled (static slices) ----
            for t in range(T):
                # forward reads x[t], backward reads x[T-1-t]
                xg_c = jnp.where(fwd_gate_mask,
                                 xg_scr[t:t + 1, :],
                                 xg_scr[T - 1 - t:T - t, :])
                gates = xg_c + jnp.dot(h, whh, preferred_element_type=jnp.float32)
                i_g = jax.nn.sigmoid(gates[:, 0 * H2:1 * H2])
                f_g = jax.nn.sigmoid(gates[:, 1 * H2:2 * H2])
                g_g = jnp.tanh(gates[:, 2 * H2:3 * H2])
                o_g = jax.nn.sigmoid(gates[:, 3 * H2:4 * H2])
                c = f_g * c + i_g * g_g
                h = o_g * jnp.tanh(c)
                # bidirectional output layout: [fwd_out[pos] | bwd_out[pos]]
                act_scr[t:t + 1, 0:H] = h[:, 0:H]
                act_scr[T - 1 - t:T - t, H:H2] = h[:, H:H2]

        # ---- span construction:  u[s] = [fwd[s], -bwd[s]] ----
        # fwd = spans[:-1, :H]   (rows 0..T-2),  bwd = spans[1:, H:]  (rows 1..T-1)
        u_scr[...] = jnp.where(fwd_half_mask,
                               act_scr[0:Lp1, :],
                               -act_scr[1:T, :])
        off = 0
        for l in range(1, T0 + 1):
            n = Lp1 - l
            # u[s+l]-u[s] == [fwd[s+l]-fwd[s], bwd[s]-bwd[s+l]]  (no lane concat needed)
            out_ref[off:off + n, :] = u_scr[l:Lp1, :] - u_scr[0:n, :]
            off += n

    return kernel


def span_encoder_forward(word_repr, fused_params):
    """word_repr: (T0, D). fused_params: list of (wih (D_l,8H), whh (2H,8H), b (1,8H))."""
    T0, D = word_repr.shape
    H8 = fused_params[0][1].shape[1]
    H = H8 // 8
    H2 = 2 * H
    num_layers = len(fused_params)
    T = T0 + 2
    Lp1 = T0 + 1
    n_out = T0 * (T0 + 1) // 2

    kernel = make_kernel(T0, D, H, num_layers)

    flat_w = []
    in_specs = [pl.BlockSpec((T0, D), lambda i: (0, 0))]
    for (wih, whh, b) in fused_params:
        flat_w += [wih, whh, b]
        in_specs += [
            pl.BlockSpec(wih.shape, lambda i: (0, 0)),
            pl.BlockSpec(whh.shape, lambda i: (0, 0)),
            pl.BlockSpec(b.shape, lambda i: (0, 0)),
        ]

    return pl.pallas_call(
        kernel,
        out_shape=jax.ShapeDtypeStruct((n_out, H2), jnp.float32),
        grid=(1,),
        in_specs=in_specs,
        out_specs=pl.BlockSpec((n_out, H2), lambda i: (0, 0)),
        scratch_shapes=[
            pltpu.VMEM((T, H2), jnp.float32),    # layer activations [fwd|bwd]
            pltpu.VMEM((T, H8), jnp.float32),    # precomputed input-gate projections
            pltpu.VMEM((Lp1, H2), jnp.float32),  # u = [fwd, -bwd]
        ],
    )(word_repr, *flat_w)


# ----------------------------------------------------------------------------
# Parameter fusion: PyTorch per-direction LSTM weights -> fused interleaved
# layout used by the kernel.  Gate columns: [i_f,i_b,f_f,f_b,g_f,g_b,o_f,o_b].
# ----------------------------------------------------------------------------
def fuse_direction_params(wih_f, whh_f, b_f, wih_b, whh_b, b_b, H):
    def interleave_cols(mf, mb):
        # mf, mb: (rows, 4H) -> (rows, 8H), gate-major with fwd/bwd halves per gate
        r = mf.shape[0]
        return jnp.concatenate(
            [mf.reshape(r, 4, H), mb.reshape(r, 4, H)], axis=-1
        ).reshape(r, 8 * H)

    wih_fused = interleave_cols(wih_f.T, wih_b.T)                      # (D, 8H)
    top = interleave_cols(whh_f.T, jnp.zeros_like(whh_f.T))            # (H, 8H)
    bot = interleave_cols(jnp.zeros_like(whh_b.T), whh_b.T)            # (H, 8H)
    whh_fused = jnp.concatenate([top, bot], axis=0)                    # (2H, 8H)
    b_fused = interleave_cols(b_f.reshape(1, -1), b_b.reshape(1, -1))  # (1, 8H)
    return (wih_fused.astype(jnp.float32),
            whh_fused.astype(jnp.float32),
            b_fused.astype(jnp.float32))


# ----------------------------------------------------------------------------
# Pure-JAX reference (mirrors the PyTorch semantics) for verification.
# ----------------------------------------------------------------------------
def lstm_dir_ref(x, wih, whh, b):
    H = whh.shape[1]
    wih_t, whh_t = wih.T, whh.T

    def step(carry, xt):
        h, c = carry
        g = xt @ wih_t + h @ whh_t + b
        i = jax.nn.sigmoid(g[:H])
        f = jax.nn.sigmoid(g[H:2 * H])
        gg = jnp.tanh(g[2 * H:3 * H])
        o = jax.nn.sigmoid(g[3 * H:])
        c = f * c + i * gg
        h = o * jnp.tanh(c)
        return (h, c), h

    _, hs = lax.scan(step, (jnp.zeros(H), jnp.zeros(H)), x)
    return hs


def span_encoder_ref(word_repr, raw_params, H):
    T0, D = word_repr.shape
    x = jnp.concatenate([jnp.zeros((1, D)), word_repr, jnp.zeros((1, D))], axis=0)
    for (wih_f, whh_f, b_f), (wih_b, whh_b, b_b) in raw_params:
        of = lstm_dir_ref(x, wih_f, whh_f, b_f)
        ob = lstm_dir_ref(x[::-1], wih_b, whh_b, b_b)[::-1]
        x = jnp.concatenate([of, ob], axis=-1)
    fwd = x[:-1, :H]
    bwd = x[1:, H:]
    chunks = [
        jnp.concatenate([fwd[l:] - fwd[:-l], bwd[:-l] - bwd[l:]], axis=-1)
        for l in range(1, T0 + 1)
    ]
    return jnp.concatenate(chunks, axis=0)


def init_params(key, num_layers, input_size, hidden):
    """PyTorch-LSTM-shaped parameters (uniform(-k, k), k=1/sqrt(H)), per direction."""
    params = []
    d_in = input_size
    k = 1.0 / math.sqrt(hidden)
    for _ in range(num_layers):
        layer = []
        for _direction in range(2):
            key, k1, k2, k3, k4 = jax.random.split(key, 5)
            wih = jax.random.uniform(k1, (4 * hidden, d_in), minval=-k, maxval=k)
            whh = jax.random.uniform(k2, (4 * hidden, hidden), minval=-k, maxval=k)
            bih = jax.random.uniform(k3, (4 * hidden,), minval=-k, maxval=k)
            bhh = jax.random.uniform(k4, (4 * hidden,), minval=-k, maxval=k)
            layer.append((wih, whh, bih + bhh))
        params.append(tuple(layer))
        d_in = 2 * hidden
    return params


if __name__ == "__main__":
    config = {
        "word_encoder_hidden_dim": 16,   # repr_size = 32
        "span_encoder_hidden_dim": 16,   # H = 16
        "span_encoder_num_layers": 2,
        "dropout": 0.0,
    }
    sent_length = 8
    D = config["word_encoder_hidden_dim"] * 2
    H = config["span_encoder_hidden_dim"]

    key = jax.random.PRNGKey(0)
    kx, kp = jax.random.split(key)
    word_repr = jax.random.normal(kx, (sent_length, D), dtype=jnp.float32)
    raw_params = init_params(kp, config["span_encoder_num_layers"], D, H)
    fused_params = [
        fuse_direction_params(*layer[0], *layer[1], H=H) for layer in raw_params
    ]

    out = span_encoder_forward(word_repr, fused_params)
    out = jax.block_until_ready(out)

    expected_rows = sent_length * (sent_length + 1) // 2
    assert out.shape == (expected_rows, 2 * H), out.shape

    ref = span_encoder_ref(word_repr, raw_params, H)
    np.testing.assert_allclose(np.asarray(out), np.asarray(ref), atol=1e-4, rtol=1e-4)

    print("KERNEL_OK")
</pallas_src>

<mosaic_0001>
module attributes {stable_mosaic.version = 11 : i64} {
  func.func @kernel(%arg0: i32, %arg1: memref<8x32xf32, #tpu.memory_space<vmem>>, %arg2: memref<32x128xf32, #tpu.memory_space<vmem>>, %arg3: memref<32x128xf32, #tpu.memory_space<vmem>>, %arg4: memref<1x128xf32, #tpu.memory_space<vmem>>, %arg5: memref<32x128xf32, #tpu.memory_space<vmem>>, %arg6: memref<32x128xf32, #tpu.memory_space<vmem>>, %arg7: memref<1x128xf32, #tpu.memory_space<vmem>>, %arg8: memref<36x32xf32, #tpu.memory_space<vmem>>, %arg9: memref<10x32xf32, #tpu.memory_space<vmem>>, %arg10: memref<10x128xf32, #tpu.memory_space<vmem>>, %arg11: memref<9x32xf32, #tpu.memory_space<vmem>>) attributes {dimension_semantics = [#tpu.dimension_semantics<arbitrary>], iteration_bounds = array<i64: 1>, scalar_prefetch = 0 : i64, scratch_operands = 3 : i64, tpu.core_type = #tpu.core_type<tc>, window_params = [{pipeline_mode = #tpu.pipeline_mode<synchronous>, transform_indices = @transform_0, window_bounds = array<i64: 8, 32>}, {pipeline_mode = #tpu.pipeline_mode<synchronous>, transform_indices = @transform_1, window_bounds = array<i64: 32, 128>}, {pipeline_mode = #tpu.pipeline_mode<synchronous>, transform_indices = @transform_2, window_bounds = array<i64: 32, 128>}, {pipeline_mode = #tpu.pipeline_mode<synchronous>, transform_indices = @transform_3, window_bounds = array<i64: 1, 128>}, {pipeline_mode = #tpu.pipeline_mode<synchronous>, transform_indices = @transform_4, window_bounds = array<i64: 32, 128>}, {pipeline_mode = #tpu.pipeline_mode<synchronous>, transform_indices = @transform_5, window_bounds = array<i64: 32, 128>}, {pipeline_mode = #tpu.pipeline_mode<synchronous>, transform_indices = @transform_6, window_bounds = array<i64: 1, 128>}, {pipeline_mode = #tpu.pipeline_mode<synchronous>, transform_indices = @transform_7, window_bounds = array<i64: 36, 32>}]} {
    %0 = tpu.iota {dimensions = array<i32: 1>} : vector<1x128xi32>
    %c32_i32 = arith.constant 32 : i32
    %c0_i32 = arith.constant 0 : i32
    %1 = arith.cmpi eq, %c32_i32, %c0_i32 : i32
    %c1_i32 = arith.constant 1 : i32
    %2 = arith.select %1, %c1_i32, %c32_i32 : i32
    %3 = vector.broadcast %2 : i32 to vector<1x128xi32>
    %4 = arith.remsi %0, %3 : vector<1x128xi32>
    %c0_i32_0 = arith.constant 0 : i32
    %5 = vector.broadcast %c0_i32_0 : i32 to vector<1x128xi32>
    %6 = arith.cmpi ne, %4, %5 : vector<1x128xi32>
    %c0_i32_1 = arith.constant 0 : i32
    %7 = vector.broadcast %c0_i32_1 : i32 to vector<1x128xi32>
    %8 = arith.cmpi slt, %4, %7 : vector<1x128xi32>
    %c0_i32_2 = arith.constant 0 : i32
    %9 = arith.cmpi slt, %2, %c0_i32_2 : i32
    %10 = vector.broadcast %9 : i1 to vector<1x128xi1>
    %11 = vector.broadcast %10 : vector<1x128xi1> to vector<1x128xi1>
    %12 = arith.xori %8, %11 : vector<1x128xi1>
    %13 = arith.andi %12, %6 : vector<1x128xi1>
    %14 = vector.broadcast %2 : i32 to vector<1x128xi32>
    %15 = arith.addi %4, %14 : vector<1x128xi32>
    %16 = arith.select %13, %15, %4 : vector<1x128xi1>, vector<1x128xi32>
    %c16_i32 = arith.constant 16 : i32
    %17 = vector.broadcast %c16_i32 : i32 to vector<1x128xi32>
    %18 = arith.cmpi slt, %16, %17 : vector<1x128xi32>
    %19 = tpu.iota {dimensions = array<i32: 1>} : vector<1x32xi32>
    %c16_i32_3 = arith.constant 16 : i32
    %20 = vector.broadcast %c16_i32_3 : i32 to vector<1x32xi32>
    %21 = arith.cmpi slt, %19, %20 : vector<1x32xi32>
    %c0 = arith.constant 0 : index
    %c0_4 = arith.constant 0 : index
    %22 = vector.load %arg4[%c0, %c0_4] : memref<1x128xf32, #tpu.memory_space<vmem>>, vector<1x128xf32>
    %c0_5 = arith.constant 0 : index
    %c0_6 = arith.constant 0 : index
    %23 = vector.load %arg10[%c0_5, %c0_6] : memref<10x128xf32, #tpu.memory_space<vmem>>, vector<1x128xf32>
    tpu.vector_store %arg10[%c0_5, %c0_6], %22 {strides = array<i32>} : memref<10x128xf32, #tpu.memory_space<vmem>>, vector<1x128xf32>,
    %c9 = arith.constant 9 : index
    %c0_7 = arith.constant 0 : index
    %24 = vector.load %arg10[%c9, %c0_7] : memref<10x128xf32, #tpu.memory_space<vmem>>, vector<1x128xf32>
    tpu.vector_store %arg10[%c9, %c0_7], %22 {strides = array<i32>} : memref<10x128xf32, #tpu.memory_space<vmem>>, vector<1x128xf32>,
    %c0_8 = arith.constant 0 : index
    %c0_9 = arith.constant 0 : index
    %25 = vector.load %arg1[%c0_8, %c0_9] : memref<8x32xf32, #tpu.memory_space<vmem>>, vector<8x32xf32>
    %c0_10 = arith.constant 0 : index
    %c0_11 = arith.constant 0 : index
    %26 = vector.load %arg2[%c0_10, %c0_11] : memref<32x128xf32, #tpu.memory_space<vmem>>, vector<32x128xf32>
    %cst = arith.constant dense<0.000000e+00> : vector<8x128xf32>
    %27 = tpu.matmul %25, %26, %cst {dimension_numbers = #tpu.dot_dimension_numbers<[1], [0], [0], [1], [0, 0, 1, 1], [], []>} : vector<8x32xf32>, vector<32x128xf32>, vector<8x128xf32> -> vector<8x128xf32>
    %28 = vector.broadcast %22 : vector<1x128xf32> to vector<8x128xf32>
    %29 = arith.addf %27, %28 : vector<8x128xf32>
    %c1 = arith.constant 1 : index
    %c0_12 = arith.constant 0 : index
    %30 = vector.load %arg10[%c1, %c0_12] : memref<10x128xf32, #tpu.memory_space<vmem>>, vector<8x128xf32>
    tpu.vector_store %arg10[%c1, %c0_12], %29 {strides = array<i32>} : memref<10x128xf32, #tpu.memory_space<vmem>>, vector<8x128xf32>,
    %c0_13 = arith.constant 0 : index
    %c0_14 = arith.constant 0 : index
    %31 = vector.load %arg3[%c0_13, %c0_14] : memref<32x128xf32, #tpu.memory_space<vmem>>, vector<32x128xf32>
    %cst_15 = arith.constant 0.000000e+00 : f32
    %32 = vector.broadcast %cst_15 : f32 to vector<1x32xf32>
    %cst_16 = arith.constant 0.000000e+00 : f32
    %33 = vector.broadcast %cst_16 : f32 to vector<1x32xf32>
    %c0_17 = arith.constant 0 : index
    %c0_18 = arith.constant 0 : index
    %34 = vector.load %arg10[%c0_17, %c0_18] : memref<10x128xf32, #tpu.memory_space<vmem>>, vector<1x128xf32>
    %c9_19 = arith.constant 9 : index
    %c0_20 = arith.constant 0 : index
    %35 = vector.load %arg10[%c9_19, %c0_20] : memref<10x128xf32, #tpu.memory_space<vmem>>, vector<1x128xf32>
    %36 = arith.select %18, %34, %35 : vector<1x128xi1>, vector<1x128xf32>
    %cst_21 = arith.constant dense<0.000000e+00> : vector<1x128xf32>
    %37 = tpu.matmul %32, %31, %cst_21 {dimension_numbers = #tpu.dot_dimension_numbers<[1], [0], [0], [1], [0, 0, 1, 1], [], []>} : vector<1x32xf32>, vector<32x128xf32>, vector<1x128xf32> -> vector<1x128xf32>
    %38 = arith.addf %36, %37 : vector<1x128xf32>
    %39 = vector.extract_strided_slice %38 {offsets = [0, 0], sizes = [1, 32], strides = [1, 1]} : vector<1x128xf32> to vector<1x32xf32>
    %40 = arith.negf %39 : vector<1x32xf32>
    %41 = math.exp %40 : vector<1x32xf32>
    %cst_22 = arith.constant 1.000000e+00 : f32
    %42 = vector.broadcast %cst_22 : f32 to vector<1x32xf32>
    %43 = arith.addf %42, %41 : vector<1x32xf32>
    %44 = arith.divf %42, %43 : vector<1x32xf32>
    %45 = vector.extract_strided_slice %38 {offsets = [0, 32], sizes = [1, 32], strides = [1, 1]} : vector<1x128xf32> to vector<1x32xf32>
    %46 = arith.negf %45 : vector<1x32xf32>
    %47 = math.exp %46 : vector<1x32xf32>
    %cst_23 = arith.constant 1.000000e+00 : f32
    %48 = vector.broadcast %cst_23 : f32 to vector<1x32xf32>
    %49 = arith.addf %48, %47 : vector<1x32xf32>
    %50 = arith.divf %48, %49 : vector<1x32xf32>
    %51 = vector.extract_strided_slice %38 {offsets = [0, 64], sizes = [1, 32], strides = [1, 1]} : vector<1x128xf32> to vector<1x32xf32>
    %52 = math.tanh %51 : vector<1x32xf32>
    %53 = vector.extract_strided_slice %38 {offsets = [0, 96], sizes = [1, 32], strides = [1, 1]} : vector<1x128xf32> to vector<1x32xf32>
    %54 = arith.negf %53 : vector<1x32xf32>
    %55 = math.exp %54 : vector<1x32xf32>
    %cst_24 = arith.constant 1.000000e+00 : f32
    %56 = vector.broadcast %cst_24 : f32 to vector<1x32xf32>
    %57 = arith.addf %56, %55 : vector<1x32xf32>
    %58 = arith.divf %56, %57 : vector<1x32xf32>
    %59 = arith.mulf %50, %33 : vector<1x32xf32>
    %60 = arith.mulf %44, %52 : vector<1x32xf32>
    %61 = arith.addf %59, %60 : vector<1x32xf32>
    %62 = math.tanh %61 : vector<1x32xf32>
    %63 = arith.mulf %58, %62 : vector<1x32xf32>
    %64 = vector.extract_strided_slice %63 {offsets = [0, 0], sizes = [1, 16], strides = [1, 1]} : vector<1x32xf32> to vector<1x16xf32>
    %c0_25 = arith.constant 0 : index
    %c0_26 = arith.constant 0 : index
    %65 = vector.load %arg9[%c0_25, %c0_26] : memref<10x32xf32, #tpu.memory_space<vmem>>, vector<1x16xf32>
    tpu.vector_store %arg9[%c0_25, %c0_26], %64 {strides = array<i32>} : memref<10x32xf32, #tpu.memory_space<vmem>>, vector<1x16xf32>,
    %66 = vector.extract_strided_slice %63 {offsets = [0, 16], sizes = [1, 16], strides = [1, 1]} : vector<1x32xf32> to vector<1x16xf32>
    %c9_27 = arith.constant 9 : index
    %c16 = arith.constant 16 : index
    %67 = vector.load %arg9[%c9_27, %c16] : memref<10x32xf32, #tpu.memory_space<vmem>>, vector<1x16xf32>
    tpu.vector_store %arg9[%c9_27, %c16], %66 {strides = array<i32>} : memref<10x32xf32, #tpu.memory_space<vmem>>, vector<1x16xf32>,
    %c1_28 = arith.constant 1 : index
    %c0_29 = arith.constant 0 : index
    %68 = vector.load %arg10[%c1_28, %c0_29] : memref<10x128xf32, #tpu.memory_space<vmem>>, vector<1x128xf32>
    %c8 = arith.constant 8 : index
    %c0_30 = arith.constant 0 : index
    %69 = vector.load %arg10[%c8, %c0_30] : memref<10x128xf32, #tpu.memory_space<vmem>>, vector<1x128xf32>
    %70 = arith.select %18, %68, %69 : vector<1x128xi1>, vector<1x128xf32>
    %cst_31 = arith.constant dense<0.000000e+00> : vector<1x128xf32>
    %71 = tpu.matmul %63, %31, %cst_31 {dimension_numbers = #tpu.dot_dimension_numbers<[1], [0], [0], [1], [0, 0, 1, 1], [], []>} : vector<1x32xf32>, vector<32x128xf32>, vector<1x128xf32> -> vector<1x128xf32>
    %72 = arith.addf %70, %71 : vector<1x128xf32>
    %73 = vector.extract_strided_slice %72 {offsets = [0, 0], sizes = [1, 32], strides = [1, 1]} : vector<1x128xf32> to vector<1x32xf32>
    %74 = arith.negf %73 : vector<1x32xf32>
    %75 = math.exp %74 : vector<1x32xf32>
    %cst_32 = arith.constant 1.000000e+00 : f32
    %76 = vector.broadcast %cst_32 : f32 to vector<1x32xf32>
    %77 = arith.addf %76, %75 : vector<1x32xf32>
    %78 = arith.divf %76, %77 : vector<1x32xf32>
    %79 = vector.extract_strided_slice %72 {offsets = [0, 32], sizes = [1, 32], strides = [1, 1]} : vector<1x128xf32> to vector<1x32xf32>
    %80 = arith.negf %79 : vector<1x32xf32>
    %81 = math.exp %80 : vector<1x32xf32>
    %cst_33 = arith.constant 1.000000e+00 : f32
    %82 = vector.broadcast %cst_33 : f32 to vector<1x32xf32>
    %83 = arith.addf %82, %81 : vector<1x32xf32>
    %84 = arith.divf %82, %83 : vector<1x32xf32>
    %85 = vector.extract_strided_slice %72 {offsets = [0, 64], sizes = [1, 32], strides = [1, 1]} : vector<1x128xf32> to vector<1x32xf32>
    %86 = math.tanh %85 : vector<1x32xf32>
    %87 = vector.extract_strided_slice %72 {offsets = [0, 96], sizes = [1, 32], strides = [1, 1]} : vector<1x128xf32> to vector<1x32xf32>
    %88 = arith.negf %87 : vector<1x32xf32>
    %89 = math.exp %88 : vector<1x32xf32>
    %cst_34 = arith.constant 1.000000e+00 : f32
    %90 = vector.broadcast %cst_34 : f32 to vector<1x32xf32>
    %91 = arith.addf %90, %89 : vector<1x32xf32>
    %92 = arith.divf %90, %91 : vector<1x32xf32>
    %93 = arith.mulf %84, %61 : vector<1x32xf32>
    %94 = arith.mulf %78, %86 : vector<1x32xf32>
    %95 = arith.addf %93, %94 : vector<1x32xf32>
    %96 = math.tanh %95 : vector<1x32xf32>
    %97 = arith.mulf %92, %96 : vector<1x32xf32>
    %98 = vector.extract_strided_slice %97 {offsets = [0, 0], sizes = [1, 16], strides = [1, 1]} : vector<1x32xf32> to vector<1x16xf32>
    %c1_35 = arith.constant 1 : index
    %c0_36 = arith.constant 0 : index
    %99 = vector.load %arg9[%c1_35, %c0_36] : memref<10x32xf32, #tpu.memory_space<vmem>>, vector<1x16xf32>
    tpu.vector_store %arg9[%c1_35, %c0_36], %98 {strides = array<i32>} : memref<10x32xf32, #tpu.memory_space<vmem>>, vector<1x16xf32>,
    %100 = vector.extract_strided_slice %97 {offsets = [0, 16], sizes = [1, 16], strides = [1, 1]} : vector<1x32xf32> to vector<1x16xf32>
    %c8_37 = arith.constant 8 : index
    %c16_38 = arith.constant 16 : index
    %101 = vector.load %arg9[%c8_37, %c16_38] : memref<10x32xf32, #tpu.memory_space<vmem>>, vector<1x16xf32>
    tpu.vector_store %arg9[%c8_37, %c16_38], %100 {strides = array<i32>} : memref<10x32xf32, #tpu.memory_space<vmem>>, vector<1x16xf32>,
    %c2 = arith.constant 2 : index
    %c0_39 = arith.constant 0 : index
    %102 = vector.load %arg10[%c2, %c0_39] : memref<10x128xf32, #tpu.memory_space<vmem>>, vector<1x128xf32>
    %c7 = arith.constant 7 : index
    %c0_40 = arith.constant 0 : index
    %103 = vector.load %arg10[%c7, %c0_40] : memref<10x128xf32, #tpu.memory_space<vmem>>, vector<1x128xf32>
    %104 = arith.select %18, %102, %103 : vector<1x128xi1>, vector<1x128xf32>
    %cst_41 = arith.constant dense<0.000000e+00> : vector<1x128xf32>
    %105 = tpu.matmul %97, %31, %cst_41 {dimension_numbers = #tpu.dot_dimension_numbers<[1], [0], [0], [1], [0, 0, 1, 1], [], []>} : vector<1x32xf32>, vector<32x128xf32>, vector<1x128xf32> -> vector<1x128xf32>
    %106 = arith.addf %104, %105 : vector<1x128xf32>
    %107 = vector.extract_strided_slice %106 {offsets = [0, 0], sizes = [1, 32], strides = [1, 1]} : vector<1x128xf32> to vector<1x32xf32>
    %108 = arith.negf %107 : vector<1x32xf32>
    %109 = math.exp %108 : vector<1x32xf32>
    %cst_42 = arith.constant 1.000000e+00 : f32
    %110 = vector.broadcast %cst_42 : f32 to vector<1x32xf32>
    %111 = arith.addf %110, %109 : vector<1x32xf32>
    %112 = arith.divf %110, %111 : vector<1x32xf32>
    %113 = vector.extract_strided_slice %106 {offsets = [0, 32], sizes = [1, 32], strides = [1, 1]} : vector<1x128xf32> to vector<1x32xf32>
    %114 = arith.negf %113 : vector<1x32xf32>
    %115 = math.exp %114 : vector<1x32xf32>
    %cst_43 = arith.constant 1.000000e+00 : f32
    %116 = vector.broadcast %cst_43 : f32 to vector<1x32xf32>
    %117 = arith.addf %116, %115 : vector<1x32xf32>
    %118 = arith.divf %116, %117 : vector<1x32xf32>
    %119 = vector.extract_strided_slice %106 {offsets = [0, 64], sizes = [1, 32], strides = [1, 1]} : vector<1x128xf32> to vector<1x32xf32>
    %120 = math.tanh %119 : vector<1x32xf32>
    %121 = vector.extract_strided_slice %106 {offsets = [0, 96], sizes = [1, 32], strides = [1, 1]} : vector<1x128xf32> to vector<1x32xf32>
    %122 = arith.negf %121 : vector<1x32xf32>
    %123 = math.exp %122 : vector<1x32xf32>
    %cst_44 = arith.constant 1.000000e+00 : f32
    %124 = vector.broadcast %cst_44 : f32 to vector<1x32xf32>
    %125 = arith.addf %124, %123 : vector<1x32xf32>
    %126 = arith.divf %124, %125 : vector<1x32xf32>
    %127 = arith.mulf %118, %95 : vector<1x32xf32>
    %128 = arith.mulf %112, %120 : vector<1x32xf32>
    %129 = arith.addf %127, %128 : vector<1x32xf32>
    %130 = math.tanh %129 : vector<1x32xf32>
    %131 = arith.mulf %126, %130 : vector<1x32xf32>
    %132 = vector.extract_strided_slice %131 {offsets = [0, 0], sizes = [1, 16], strides = [1, 1]} : vector<1x32xf32> to vector<1x16xf32>
    %c2_45 = arith.constant 2 : index
    %c0_46 = arith.constant 0 : index
    %133 = vector.load %arg9[%c2_45, %c0_46] : memref<10x32xf32, #tpu.memory_space<vmem>>, vector<1x16xf32>
    tpu.vector_store %arg9[%c2_45, %c0_46], %132 {strides = array<i32>} : memref<10x32xf32, #tpu.memory_space<vmem>>, vector<1x16xf32>,
    %134 = vector.extract_strided_slice %131 {offsets = [0, 16], sizes = [1, 16], strides = [1, 1]} : vector<1x32xf32> to vector<1x16xf32>
    %c7_47 = arith.constant 7 : index
    %c16_48 = arith.constant 16 : index
    %135 = vector.load %arg9[%c7_47, %c16_48] : memref<10x32xf32, #tpu.memory_space<vmem>>, vector<1x16xf32>
    tpu.vector_store %arg9[%c7_47, %c16_48], %134 {strides = array<i32>} : memref<10x32xf32, #tpu.memory_space<vmem>>, vector<1x16xf32>,
    %c3 = arith.constant 3 : index
    %c0_49 = arith.constant 0 : index
    %136 = vector.load %arg10[%c3, %c0_49] : memref<10x128xf32, #tpu.memory_space<vmem>>, vector<1x128xf32>
    %c6 = arith.constant 6 : index
    %c0_50 = arith.constant 0 : index
    %137 = vector.load %arg10[%c6, %c0_50] : memref<10x128xf32, #tpu.memory_space<vmem>>, vector<1x128xf32>
    %138 = arith.select %18, %136, %137 : vector<1x128xi1>, vector<1x128xf32>
    %cst_51 = arith.constant dense<0.000000e+00> : vector<1x128xf32>
    %139 = tpu.matmul %131, %31, %cst_51 {dimension_numbers = #tpu.dot_dimension_numbers<[1], [0], [0], [1], [0, 0, 1, 1], [], []>} : vector<1x32xf32>, vector<32x128xf32>, vector<1x128xf32> -> vector<1x128xf32>
    %140 = arith.addf %138, %139 : vector<1x128xf32>
    %141 = vector.extract_strided_slice %140 {offsets = [0, 0], sizes = [1, 32], strides = [1, 1]} : vector<1x128xf32> to vector<1x32xf32>
    %142 = arith.negf %141 : vector<1x32xf32>
    %143 = math.exp %142 : vector<1x32xf32>
    %cst_52 = arith.constant 1.000000e+00 : f32
    %144 = vector.broadcast %cst_52 : f32 to vector<1x32xf32>
    %145 = arith.addf %144, %143 : vector<1x32xf32>
    %146 = arith.divf %144, %145 : vector<1x32xf32>
    %147 = vector.extract_strided_slice %140 {offsets = [0, 32], sizes = [1, 32], strides = [1, 1]} : vector<1x128xf32> to vector<1x32xf32>
    %148 = arith.negf %147 : vector<1x32xf32>
    %149 = math.exp %148 : vector<1x32xf32>
    %cst_53 = arith.constant 1.000000e+00 : f32
    %150 = vector.broadcast %cst_53 : f32 to vector<1x32xf32>
    %151 = arith.addf %150, %149 : vector<1x32xf32>
    %152 = arith.divf %150, %151 : vector<1x32xf32>
    %153 = vector.extract_strided_slice %140 {offsets = [0, 64], sizes = [1, 32], strides = [1, 1]} : vector<1x128xf32> to vector<1x32xf32>
    %154 = math.tanh %153 : vector<1x32xf32>
    %155 = vector.extract_strided_slice %140 {offsets = [0, 96], sizes = [1, 32], strides = [1, 1]} : vector<1x128xf32> to vector<1x32xf32>
    %156 = arith.negf %155 : vector<1x32xf32>
    %157 = math.exp %156 : vector<1x32xf32>
    %cst_54 = arith.constant 1.000000e+00 : f32
    %158 = vector.broadcast %cst_54 : f32 to vector<1x32xf32>
    %159 = arith.addf %158, %157 : vector<1x32xf32>
    %160 = arith.divf %158, %159 : vector<1x32xf32>
    %161 = arith.mulf %152, %129 : vector<1x32xf32>
    %162 = arith.mulf %146, %154 : vector<1x32xf32>
    %163 = arith.addf %161, %162 : vector<1x32xf32>
    %164 = math.tanh %163 : vector<1x32xf32>
    %165 = arith.mulf %160, %164 : vector<1x32xf32>
    %166 = vector.extract_strided_slice %165 {offsets = [0, 0], sizes = [1, 16], strides = [1, 1]} : vector<1x32xf32> to vector<1x16xf32>
    %c3_55 = arith.constant 3 : index
    %c0_56 = arith.constant 0 : index
    %167 = vector.load %arg9[%c3_55, %c0_56] : memref<10x32xf32, #tpu.memory_space<vmem>>, vector<1x16xf32>
    tpu.vector_store %arg9[%c3_55, %c0_56], %166 {strides = array<i32>} : memref<10x32xf32, #tpu.memory_space<vmem>>, vector<1x16xf32>,
    %168 = vector.extract_strided_slice %165 {offsets = [0, 16], sizes = [1, 16], strides = [1, 1]} : vector<1x32xf32> to vector<1x16xf32>
    %c6_57 = arith.constant 6 : index
    %c16_58 = arith.constant 16 : index
    %169 = vector.load %arg9[%c6_57, %c16_58] : memref<10x32xf32, #tpu.memory_space<vmem>>, vector<1x16xf32>
    tpu.vector_store %arg9[%c6_57, %c16_58], %168 {strides = array<i32>} : memref<10x32xf32, #tpu.memory_space<vmem>>, vector<1x16xf32>,
    %c4 = arith.constant 4 : index
    %c0_59 = arith.constant 0 : index
    %170 = vector.load %arg10[%c4, %c0_59] : memref<10x128xf32, #tpu.memory_space<vmem>>, vector<1x128xf32>
    %c5 = arith.constant 5 : index
    %c0_60 = arith.constant 0 : index
    %171 = vector.load %arg10[%c5, %c0_60] : memref<10x128xf32, #tpu.memory_space<vmem>>, vector<1x128xf32>
    %172 = arith.select %18, %170, %171 : vector<1x128xi1>, vector<1x128xf32>
    %cst_61 = arith.constant dense<0.000000e+00> : vector<1x128xf32>
    %173 = tpu.matmul %165, %31, %cst_61 {dimension_numbers = #tpu.dot_dimension_numbers<[1], [0], [0], [1], [0, 0, 1, 1], [], []>} : vector<1x32xf32>, vector<32x128xf32>, vector<1x128xf32> -> vector<1x128xf32>
    %174 = arith.addf %172, %173 : vector<1x128xf32>
    %175 = vector.extract_strided_slice %174 {offsets = [0, 0], sizes = [1, 32], strides = [1, 1]} : vector<1x128xf32> to vector<1x32xf32>
    %176 = arith.negf %175 : vector<1x32xf32>
    %177 = math.exp %176 : vector<1x32xf32>
    %cst_62 = arith.constant 1.000000e+00 : f32
    %178 = vector.broadcast %cst_62 : f32 to vector<1x32xf32>
    %179 = arith.addf %178, %177 : vector<1x32xf32>
    %180 = arith.divf %178, %179 : vector<1x32xf32>
    %181 = vector.extract_strided_slice %174 {offsets = [0, 32], sizes = [1, 32], strides = [1, 1]} : vector<1x128xf32> to vector<1x32xf32>
    %182 = arith.negf %181 : vector<1x32xf32>
    %183 = math.exp %182 : vector<1x32xf32>
    %cst_63 = arith.constant 1.000000e+00 : f32
    %184 = vector.broadcast %cst_63 : f32 to vector<1x32xf32>
    %185 = arith.addf %184, %183 : vector<1x32xf32>
    %186 = arith.divf %184, %185 : vector<1x32xf32>
    %187 = vector.extract_strided_slice %174 {offsets = [0, 64], sizes = [1, 32], strides = [1, 1]} : vector<1x128xf32> to vector<1x32xf32>
    %188 = math.tanh %187 : vector<1x32xf32>
    %189 = vector.extract_strided_slice %174 {offsets = [0, 96], sizes = [1, 32], strides = [1, 1]} : vector<1x128xf32> to vector<1x32xf32>
    %190 = arith.negf %189 : vector<1x32xf32>
    %191 = math.exp %190 : vector<1x32xf32>
    %cst_64 = arith.constant 1.000000e+00 : f32
    %192 = vector.broadcast %cst_64 : f32 to vector<1x32xf32>
    %193 = arith.addf %192, %191 : vector<1x32xf32>
    %194 = arith.divf %192, %193 : vector<1x32xf32>
    %195 = arith.mulf %186, %163 : vector<1x32xf32>
    %196 = arith.mulf %180, %188 : vector<1x32xf32>
    %197 = arith.addf %195, %196 : vector<1x32xf32>
    %198 = math.tanh %197 : vector<1x32xf32>
    %199 = arith.mulf %194, %198 : vector<1x32xf32>
    %200 = vector.extract_strided_slice %199 {offsets = [0, 0], sizes = [1, 16], strides = [1, 1]} : vector<1x32xf32> to vector<1x16xf32>
    %c4_65 = arith.constant 4 : index
    %c0_66 = arith.constant 0 : index
    %201 = vector.load %arg9[%c4_65, %c0_66] : memref<10x32xf32, #tpu.memory_space<vmem>>, vector<1x16xf32>
    tpu.vector_store %arg9[%c4_65, %c0_66], %200 {strides = array<i32>} : memref<10x32xf32, #tpu.memory_space<vmem>>, vector<1x16xf32>,
    %202 = vector.extract_strided_slice %199 {offsets = [0, 16], sizes = [1, 16], strides = [1, 1]} : vector<1x32xf32> to vector<1x16xf32>
    %c5_67 = arith.constant 5 : index
    %c16_68 = arith.constant 16 : index
    %203 = vector.load %arg9[%c5_67, %c16_68] : memref<10x32xf32, #tpu.memory_space<vmem>>, vector<1x16xf32>
    tpu.vector_store %arg9[%c5_67, %c16_68], %202 {strides = array<i32>} : memref<10x32xf32, #tpu.memory_space<vmem>>, vector<1x16xf32>,
    %c5_69 = arith.constant 5 : index
    %c0_70 = arith.constant 0 : index
    %204 = vector.load %arg10[%c5_69, %c0_70] : memref<10x128xf32, #tpu.memory_space<vmem>>, vector<1x128xf32>
    %c4_71 = arith.constant 4 : index
    %c0_72 = arith.constant 0 : index
    %205 = vector.load %arg10[%c4_71, %c0_72] : memref<10x128xf32, #tpu.memory_space<vmem>>, vector<1x128xf32>
    %206 = arith.select %18, %204, %205 : vector<1x128xi1>, vector<1x128xf32>
    %cst_73 = arith.constant dense<0.000000e+00> : vector<1x128xf32>
    %207 = tpu.matmul %199, %31, %cst_73 {dimension_numbers = #tpu.dot_dimension_numbers<[1], [0], [0], [1], [0, 0, 1, 1], [], []>} : vector<1x32xf32>, vector<32x128xf32>, vector<1x128xf32> -> vector<1x128xf32>
    %208 = arith.addf %206, %207 : vector<1x128xf32>
    %209 = vector.extract_strided_slice %208 {offsets = [0, 0], sizes = [1, 32], strides = [1, 1]} : vector<1x128xf32> to vector<1x32xf32>
    %210 = arith.negf %209 : vector<1x32xf32>
    %211 = math.exp %210 : vector<1x32xf32>
    %cst_74 = arith.constant 1.000000e+00 : f32
    %212 = vector.broadcast %cst_74 : f32 to vector<1x32xf32>
    %213 = arith.addf %212, %211 : vector<1x32xf32>
    %214 = arith.divf %212, %213 : vector<1x32xf32>
    %215 = vector.extract_strided_slice %208 {offsets = [0, 32], sizes = [1, 32], strides = [1, 1]} : vector<1x128xf32> to vector<1x32xf32>
    %216 = arith.negf %215 : vector<1x32xf32>
    %217 = math.exp %216 : vector<1x32xf32>
    %cst_75 = arith.constant 1.000000e+00 : f32
    %218 = vector.broadcast %cst_75 : f32 to vector<1x32xf32>
    %219 = arith.addf %218, %217 : vector<1x32xf32>
    %220 = arith.divf %218, %219 : vector<1x32xf32>
    %221 = vector.extract_strided_slice %208 {offsets = [0, 64], sizes = [1, 32], strides = [1, 1]} : vector<1x128xf32> to vector<1x32xf32>
    %222 = math.tanh %221 : vector<1x32xf32>
    %223 = vector.extract_strided_slice %208 {offsets = [0, 96], sizes = [1, 32], strides = [1, 1]} : vector<1x128xf32> to vector<1x32xf32>
    %224 = arith.negf %223 : vector<1x32xf32>
    %225 = math.exp %224 : vector<1x32xf32>
    %cst_76 = arith.constant 1.000000e+00 : f32
    %226 = vector.broadcast %cst_76 : f32 to vector<1x32xf32>
    %227 = arith.addf %226, %225 : vector<1x32xf32>
    %228 = arith.divf %226, %227 : vector<1x32xf32>
    %229 = arith.mulf %220, %197 : vector<1x32xf32>
    %230 = arith.mulf %214, %222 : vector<1x32xf32>
    %231 = arith.addf %229, %230 : vector<1x32xf32>
    %232 = math.tanh %231 : vector<1x32xf32>
    %233 = arith.mulf %228, %232 : vector<1x32xf32>
    %234 = vector.extract_strided_slice %233 {offsets = [0, 0], sizes = [1, 16], strides = [1, 1]} : vector<1x32xf32> to vector<1x16xf32>
    %c5_77 = arith.constant 5 : index
    %c0_78 = arith.constant 0 : index
    %235 = vector.load %arg9[%c5_77, %c0_78] : memref<10x32xf32, #tpu.memory_space<vmem>>, vector<1x16xf32>
    tpu.vector_store %arg9[%c5_77, %c0_78], %234 {strides = array<i32>} : memref<10x32xf32, #tpu.memory_space<vmem>>, vector<1x16xf32>,
    %236 = vector.extract_strided_slice %233 {offsets = [0, 16], sizes = [1, 16], strides = [1, 1]} : vector<1x32xf32> to vector<1x16xf32>
    %c4_79 = arith.constant 4 : index
    %c16_80 = arith.constant 16 : index
    %237 = vector.load %arg9[%c4_79, %c16_80] : memref<10x32xf32, #tpu.memory_space<vmem>>, vector<1x16xf32>
    tpu.vector_store %arg9[%c4_79, %c16_80], %236 {strides = array<i32>} : memref<10x32xf32, #tpu.memory_space<vmem>>, vector<1x16xf32>,
    %c6_81 = arith.constant 6 : index
    %c0_82 = arith.constant 0 : index
    %238 = vector.load %arg10[%c6_81, %c0_82] : memref<10x128xf32, #tpu.memory_space<vmem>>, vector<1x128xf32>
    %c3_83 = arith.constant 3 : index
    %c0_84 = arith.constant 0 : index
    %239 = vector.load %arg10[%c3_83, %c0_84] : memref<10x128xf32, #tpu.memory_space<vmem>>, vector<1x128xf32>
    %240 = arith.select %18, %238, %239 : vector<1x128xi1>, vector<1x128xf32>
    %cst_85 = arith.constant dense<0.000000e+00> : vector<1x128xf32>
    %241 = tpu.matmul %233, %31, %cst_85 {dimension_numbers = #tpu.dot_dimension_numbers<[1], [0], [0], [1], [0, 0, 1, 1], [], []>} : vector<1x32xf32>, vector<32x128xf32>, vector<1x128xf32> -> vector<1x128xf32>
    %242 = arith.addf %240, %241 : vector<1x128xf32>
    %243 = vector.extract_strided_slice %242 {offsets = [0, 0], sizes = [1, 32], strides = [1, 1]} : vector<1x128xf32> to vector<1x32xf32>
    %244 = arith.negf %243 : vector<1x32xf32>
    %245 = math.exp %244 : vector<1x32xf32>
    %cst_86 = arith.constant 1.000000e+00 : f32
    %246 = vector.broadcast %cst_86 : f32 to vector<1x32xf32>
    %247 = arith.addf %246, %245 : vector<1x32xf32>
    %248 = arith.divf %246, %247 : vector<1x32xf32>
    %249 = vector.extract_strided_slice %242 {offsets = [0, 32], sizes = [1, 32], strides = [1, 1]} : vector<1x128xf32> to vector<1x32xf32>
    %250 = arith.negf %249 : vector<1x32xf32>
    %251 = math.exp %250 : vector<1x32xf32>
    %cst_87 = arith.constant 1.000000e+00 : f32
    %252 = vector.broadcast %cst_87 : f32 to vector<1x32xf32>
    %253 = arith.addf %252, %251 : vector<1x32xf32>
    %254 = arith.divf %252, %253 : vector<1x32xf32>
    %255 = vector.extract_strided_slice %242 {offsets = [0, 64], sizes = [1, 32], strides = [1, 1]} : vector<1x128xf32> to vector<1x32xf32>
    %256 = math.tanh %255 : vector<1x32xf32>
    %257 = vector.extract_strided_slice %242 {offsets = [0, 96], sizes = [1, 32], strides = [1, 1]} : vector<1x128xf32> to vector<1x32xf32>
    %258 = arith.negf %257 : vector<1x32xf32>
    %259 = math.exp %258 : vector<1x32xf32>
    %cst_88 = arith.constant 1.000000e+00 : f32
    %260 = vector.broadcast %cst_88 : f32 to vector<1x32xf32>
    %261 = arith.addf %260, %259 : vector<1x32xf32>
    %262 = arith.divf %260, %261 : vector<1x32xf32>
    %263 = arith.mulf %254, %231 : vector<1x32xf32>
    %264 = arith.mulf %248, %256 : vector<1x32xf32>
    %265 = arith.addf %263, %264 : vector<1x32xf32>
    %266 = math.tanh %265 : vector<1x32xf32>
    %267 = arith.mulf %262, %266 : vector<1x32xf32>
    %268 = vector.extract_strided_slice %267 {offsets = [0, 0], sizes = [1, 16], strides = [1, 1]} : vector<1x32xf32> to vector<1x16xf32>
    %c6_89 = arith.constant 6 : index
    %c0_90 = arith.constant 0 : index
    %269 = vector.load %arg9[%c6_89, %c0_90] : memref<10x32xf32, #tpu.memory_space<vmem>>, vector<1x16xf32>
    tpu.vector_store %arg9[%c6_89, %c0_90], %268 {strides = array<i32>} : memref<10x32xf32, #tpu.memory_space<vmem>>, vector<1x16xf32>,
    %270 = vector.extract_strided_slice %267 {offsets = [0, 16], sizes = [1, 16], strides = [1, 1]} : vector<1x32xf32> to vector<1x16xf32>
    %c3_91 = arith.constant 3 : index
    %c16_92 = arith.constant 16 : index
    %271 = vector.load %arg9[%c3_91, %c16_92] : memref<10x32xf32, #tpu.memory_space<vmem>>, vector<1x16xf32>
    tpu.vector_store %arg9[%c3_91, %c16_92], %270 {strides = array<i32>} : memref<10x32xf32, #tpu.memory_space<vmem>>, vector<1x16xf32>,
    %c7_93 = arith.constant 7 : index
    %c0_94 = arith.constant 0 : index
    %272 = vector.load %arg10[%c7_93, %c0_94] : memref<10x128xf32, #tpu.memory_space<vmem>>, vector<1x128xf32>
    %c2_95 = arith.constant 2 : index
    %c0_96 = arith.constant 0 : index
    %273 = vector.load %arg10[%c2_95, %c0_96] : memref<10x128xf32, #tpu.memory_space<vmem>>, vector<1x128xf32>
    %274 = arith.select %18, %272, %273 : vector<1x128xi1>, vector<1x128xf32>
    %cst_97 = arith.constant dense<0.000000e+00> : vector<1x128xf32>
    %275 = tpu.matmul %267, %31, %cst_97 {dimension_numbers = #tpu.dot_dimension_numbers<[1], [0], [0], [1], [0, 0, 1, 1], [], []>} : vector<1x32xf32>, vector<32x128xf32>, vector<1x128xf32> -> vector<1x128xf32>
    %276 = arith.addf %274, %275 : vector<1x128xf32>
    %277 = vector.extract_strided_slice %276 {offsets = [0, 0], sizes = [1, 32], strides = [1, 1]} : vector<1x128xf32> to vector<1x32xf32>
    %278 = arith.negf %277 : vector<1x32xf32>
    %279 = math.exp %278 : vector<1x32xf32>
    %cst_98 = arith.constant 1.000000e+00 : f32
    %280 = vector.broadcast %cst_98 : f32 to vector<1x32xf32>
    %281 = arith.addf %280, %279 : vector<1x32xf32>
    %282 = arith.divf %280, %281 : vector<1x32xf32>
    %283 = vector.extract_strided_slice %276 {offsets = [0, 32], sizes = [1, 32], strides = [1, 1]} : vector<1x128xf32> to vector<1x32xf32>
    %284 = arith.negf %283 : vector<1x32xf32>
    %285 = math.exp %284 : vector<1x32xf32>
    %cst_99 = arith.constant 1.000000e+00 : f32
    %286 = vector.broadcast %cst_99 : f32 to vector<1x32xf32>
    %287 = arith.addf %286, %285 : vector<1x32xf32>
    %288 = arith.divf %286, %287 : vector<1x32xf32>
    %289 = vector.extract_strided_slice %276 {offsets = [0, 64], sizes = [1, 32], strides = [1, 1]} : vector<1x128xf32> to vector<1x32xf32>
    %290 = math.tanh %289 : vector<1x32xf32>
    %291 = vector.extract_strided_slice %276 {offsets = [0, 96], sizes = [1, 32], strides = [1, 1]} : vector<1x128xf32> to vector<1x32xf32>
    %292 = arith.negf %291 : vector<1x32xf32>
    %293 = math.exp %292 : vector<1x32xf32>
    %cst_100 = arith.constant 1.000000e+00 : f32
    %294 = vector.broadcast %cst_100 : f32 to vector<1x32xf32>
    %295 = arith.addf %294, %293 : vector<1x32xf32>
    %296 = arith.divf %294, %295 : vector<1x32xf32>
    %297 = arith.mulf %288, %265 : vector<1x32xf32>
    %298 = arith.mulf %282, %290 : vector<1x32xf32>
    %299 = arith.addf %297, %298 : vector<1x32xf32>
    %300 = math.tanh %299 : vector<1x32xf32>
    %301 = arith.mulf %296, %300 : vector<1x32xf32>
    %302 = vector.extract_strided_slice %301 {offsets = [0, 0], sizes = [1, 16], strides = [1, 1]} : vector<1x32xf32> to vector<1x16xf32>
    %c7_101 = arith.constant 7 : index
    %c0_102 = arith.constant 0 : index
    %303 = vector.load %arg9[%c7_101, %c0_102] : memref<10x32xf32, #tpu.memory_space<vmem>>, vector<1x16xf32>
    tpu.vector_store %arg9[%c7_101, %c0_102], %302 {strides = array<i32>} : memref<10x32xf32, #tpu.memory_space<vmem>>, vector<1x16xf32>,
    %304 = vector.extract_strided_slice %301 {offsets = [0, 16], sizes = [1, 16], strides = [1, 1]} : vector<1x32xf32> to vector<1x16xf32>
    %c2_103 = arith.constant 2 : index
    %c16_104 = arith.constant 16 : index
    %305 = vector.load %arg9[%c2_103, %c16_104] : memref<10x32xf32, #tpu.memory_space<vmem>>, vector<1x16xf32>
    tpu.vector_store %arg9[%c2_103, %c16_104], %304 {strides = array<i32>} : memref<10x32xf32, #tpu.memory_space<vmem>>, vector<1x16xf32>,
    %c8_105 = arith.constant 8 : index
    %c0_106 = arith.constant 0 : index
    %306 = vector.load %arg10[%c8_105, %c0_106] : memref<10x128xf32, #tpu.memory_space<vmem>>, vector<1x128xf32>
    %c1_107 = arith.constant 1 : index
    %c0_108 = arith.constant 0 : index
    %307 = vector.load %arg10[%c1_107, %c0_108] : memref<10x128xf32, #tpu.memory_space<vmem>>, vector<1x128xf32>
    %308 = arith.select %18, %306, %307 : vector<1x128xi1>, vector<1x128xf32>
    %cst_109 = arith.constant dense<0.000000e+00> : vector<1x128xf32>
    %309 = tpu.matmul %301, %31, %cst_109 {dimension_numbers = #tpu.dot_dimension_numbers<[1], [0], [0], [1], [0, 0, 1, 1], [], []>} : vector<1x32xf32>, vector<32x128xf32>, vector<1x128xf32> -> vector<1x128xf32>
    %310 = arith.addf %308, %309 : vector<1x128xf32>
    %311 = vector.extract_strided_slice %310 {offsets = [0, 0], sizes = [1, 32], strides = [1, 1]} : vector<1x128xf32> to vector<1x32xf32>
    %312 = arith.negf %311 : vector<1x32xf32>
    %313 = math.exp %312 : vector<1x32xf32>
    %cst_110 = arith.constant 1.000000e+00 : f32
    %314 = vector.broadcast %cst_110 : f32 to vector<1x32xf32>
    %315 = arith.addf %314, %313 : vector<1x32xf32>
    %316 = arith.divf %314, %315 : vector<1x32xf32>
    %317 = vector.extract_strided_slice %310 {offsets = [0, 32], sizes = [1, 32], strides = [1, 1]} : vector<1x128xf32> to vector<1x32xf32>
    %318 = arith.negf %317 : vector<1x32xf32>
    %319 = math.exp %318 : vector<1x32xf32>
    %cst_111 = arith.constant 1.000000e+00 : f32
    %320 = vector.broadcast %cst_111 : f32 to vector<1x32xf32>
    %321 = arith.addf %320, %319 : vector<1x32xf32>
    %322 = arith.divf %320, %321 : vector<1x32xf32>
    %323 = vector.extract_strided_slice %310 {offsets = [0, 64], sizes = [1, 32], strides = [1, 1]} : vector<1x128xf32> to vector<1x32xf32>
    %324 = math.tanh %323 : vector<1x32xf32>
    %325 = vector.extract_strided_slice %310 {offsets = [0, 96], sizes = [1, 32], strides = [1, 1]} : vector<1x128xf32> to vector<1x32xf32>
    %326 = arith.negf %325 : vector<1x32xf32>
    %327 = math.exp %326 : vector<1x32xf32>
    %cst_112 = arith.constant 1.000000e+00 : f32
    %328 = vector.broadcast %cst_112 : f32 to vector<1x32xf32>
    %329 = arith.addf %328, %327 : vector<1x32xf32>
    %330 = arith.divf %328, %329 : vector<1x32xf32>
    %331 = arith.mulf %322, %299 : vector<1x32xf32>
    %332 = arith.mulf %316, %324 : vector<1x32xf32>
    %333 = arith.addf %331, %332 : vector<1x32xf32>
    %334 = math.tanh %333 : vector<1x32xf32>
    %335 = arith.mulf %330, %334 : vector<1x32xf32>
    %336 = vector.extract_strided_slice %335 {offsets = [0, 0], sizes = [1, 16], strides = [1, 1]} : vector<1x32xf32> to vector<1x16xf32>
    %c8_113 = arith.constant 8 : index
    %c0_114 = arith.constant 0 : index
    %337 = vector.load %arg9[%c8_113, %c0_114] : memref<10x32xf32, #tpu.memory_space<vmem>>, vector<1x16xf32>
    tpu.vector_store %arg9[%c8_113, %c0_114], %336 {strides = array<i32>} : memref<10x32xf32, #tpu.memory_space<vmem>>, vector<1x16xf32>,
    %338 = vector.extract_strided_slice %335 {offsets = [0, 16], sizes = [1, 16], strides = [1, 1]} : vector<1x32xf32> to vector<1x16xf32>
    %c1_115 = arith.constant 1 : index
    %c16_116 = arith.constant 16 : index
    %339 = vector.load %arg9[%c1_115, %c16_116] : memref<10x32xf32, #tpu.memory_space<vmem>>, vector<1x16xf32>
    tpu.vector_store %arg9[%c1_115, %c16_116], %338 {strides = array<i32>} : memref<10x32xf32, #tpu.memory_space<vmem>>, vector<1x16xf32>,
    %c9_117 = arith.constant 9 : index
    %c0_118 = arith.constant 0 : index
    %340 = vector.load %arg10[%c9_117, %c0_118] : memref<10x128xf32, #tpu.memory_space<vmem>>, vector<1x128xf32>
    %c0_119 = arith.constant 0 : index
    %c0_120 = arith.constant 0 : index
    %341 = vector.load %arg10[%c0_119, %c0_120] : memref<10x128xf32, #tpu.memory_space<vmem>>, vector<1x128xf32>
    %342 = arith.select %18, %340, %341 : vector<1x128xi1>, vector<1x128xf32>
    %cst_121 = arith.constant dense<0.000000e+00> : vector<1x128xf32>
    %343 = tpu.matmul %335, %31, %cst_121 {dimension_numbers = #tpu.dot_dimension_numbers<[1], [0], [0], [1], [0, 0, 1, 1], [], []>} : vector<1x32xf32>, vector<32x128xf32>, vector<1x128xf32> -> vector<1x128xf32>
    %344 = arith.addf %342, %343 : vector<1x128xf32>
    %345 = vector.extract_strided_slice %344 {offsets = [0, 0], sizes = [1, 32], strides = [1, 1]} : vector<1x128xf32> to vector<1x32xf32>
    %346 = arith.negf %345 : vector<1x32xf32>
    %347 = math.exp %346 : vector<1x32xf32>
    %cst_122 = arith.constant 1.000000e+00 : f32
    %348 = vector.broadcast %cst_122 : f32 to vector<1x32xf32>
    %349 = arith.addf %348, %347 : vector<1x32xf32>
    %350 = arith.divf %348, %349 : vector<1x32xf32>
    %351 = vector.extract_strided_slice %344 {offsets = [0, 32], sizes = [1, 32], strides = [1, 1]} : vector<1x128xf32> to vector<1x32xf32>
    %352 = arith.negf %351 : vector<1x32xf32>
    %353 = math.exp %352 : vector<1x32xf32>
    %cst_123 = arith.constant 1.000000e+00 : f32
    %354 = vector.broadcast %cst_123 : f32 to vector<1x32xf32>
    %355 = arith.addf %354, %353 : vector<1x32xf32>
    %356 = arith.divf %354, %355 : vector<1x32xf32>
    %357 = vector.extract_strided_slice %344 {offsets = [0, 64], sizes = [1, 32], strides = [1, 1]} : vector<1x128xf32> to vector<1x32xf32>
    %358 = math.tanh %357 : vector<1x32xf32>
    %359 = vector.extract_strided_slice %344 {offsets = [0, 96], sizes = [1, 32], strides = [1, 1]} : vector<1x128xf32> to vector<1x32xf32>
    %360 = arith.negf %359 : vector<1x32xf32>
    %361 = math.exp %360 : vector<1x32xf32>
    %cst_124 = arith.constant 1.000000e+00 : f32
    %362 = vector.broadcast %cst_124 : f32 to vector<1x32xf32>
    %363 = arith.addf %362, %361 : vector<1x32xf32>
    %364 = arith.divf %362, %363 : vector<1x32xf32>
    %365 = arith.mulf %356, %333 : vector<1x32xf32>
    %366 = arith.mulf %350, %358 : vector<1x32xf32>
    %367 = arith.addf %365, %366 : vector<1x32xf32>
    %368 = math.tanh %367 : vector<1x32xf32>
    %369 = arith.mulf %364, %368 : vector<1x32xf32>
    %370 = vector.extract_strided_slice %369 {offsets = [0, 0], sizes = [1, 16], strides = [1, 1]} : vector<1x32xf32> to vector<1x16xf32>
    %c9_125 = arith.constant 9 : index
    %c0_126 = arith.constant 0 : index
    %371 = vector.load %arg9[%c9_125, %c0_126] : memref<10x32xf32, #tpu.memory_space<vmem>>, vector<1x16xf32>
    tpu.vector_store %arg9[%c9_125, %c0_126], %370 {strides = array<i32>} : memref<10x32xf32, #tpu.memory_space<vmem>>, vector<1x16xf32>,
    %372 = vector.extract_strided_slice %369 {offsets = [0, 16], sizes = [1, 16], strides = [1, 1]} : vector<1x32xf32> to vector<1x16xf32>
    %c0_127 = arith.constant 0 : index
    %c16_128 = arith.constant 16 : index
    %373 = vector.load %arg9[%c0_127, %c16_128] : memref<10x32xf32, #tpu.memory_space<vmem>>, vector<1x16xf32>
    tpu.vector_store %arg9[%c0_127, %c16_128], %372 {strides = array<i32>} : memref<10x32xf32, #tpu.memory_space<vmem>>, vector<1x16xf32>,
    %c0_129 = arith.constant 0 : index
    %c0_130 = arith.constant 0 : index
    %374 = vector.load %arg7[%c0_129, %c0_130] : memref<1x128xf32, #tpu.memory_space<vmem>>, vector<1x128xf32>
    %c0_131 = arith.constant 0 : index
    %c0_132 = arith.constant 0 : index
    %375 = vector.load %arg9[%c0_131, %c0_132] : memref<10x32xf32, #tpu.memory_space<vmem>>, vector<10x32xf32>
    %c0_133 = arith.constant 0 : index
    %c0_134 = arith.constant 0 : index
    %376 = vector.load %arg5[%c0_133, %c0_134] : memref<32x128xf32, #tpu.memory_space<vmem>>, vector<32x128xf32>
    %cst_135 = arith.constant dense<0.000000e+00> : vector<10x128xf32>
    %377 = tpu.matmul %375, %376, %cst_135 {dimension_numbers = #tpu.dot_dimension_numbers<[1], [0], [0], [1], [0, 0, 1, 1], [], []>} : vector<10x32xf32>, vector<32x128xf32>, vector<10x128xf32> -> vector<10x128xf32>
    %378 = vector.broadcast %374 : vector<1x128xf32> to vector<10x128xf32>
    %379 = arith.addf %377, %378 : vector<10x128xf32>
    %c0_136 = arith.constant 0 : index
    %c0_137 = arith.constant 0 : index
    %380 = vector.load %arg10[%c0_136, %c0_137] : memref<10x128xf32, #tpu.memory_space<vmem>>, vector<10x128xf32>
    tpu.vector_store %arg10[%c0_136, %c0_137], %379 {strides = array<i32>} : memref<10x128xf32, #tpu.memory_space<vmem>>, vector<10x128xf32>,
    %c0_138 = arith.constant 0 : index
    %c0_139 = arith.constant 0 : index
    %381 = vector.load %arg6[%c0_138, %c0_139] : memref<32x128xf32, #tpu.memory_space<vmem>>, vector<32x128xf32>
    %cst_140 = arith.constant 0.000000e+00 : f32
    %382 = vector.broadcast %cst_140 : f32 to vector<1x32xf32>
    %cst_141 = arith.constant 0.000000e+00 : f32
    %383 = vector.broadcast %cst_141 : f32 to vector<1x32xf32>
    %c0_142 = arith.constant 0 : index
    %c0_143 = arith.constant 0 : index
    %384 = vector.load %arg10[%c0_142, %c0_143] : memref<10x128xf32, #tpu.memory_space<vmem>>, vector<1x128xf32>
    %c9_144 = arith.constant 9 : index
    %c0_145 = arith.constant 0 : index
    %385 = vector.load %arg10[%c9_144, %c0_145] : memref<10x128xf32, #tpu.memory_space<vmem>>, vector<1x128xf32>
    %386 = arith.select %18, %384, %385 : vector<1x128xi1>, vector<1x128xf32>
    %cst_146 = arith.constant dense<0.000000e+00> : vector<1x128xf32>
    %387 = tpu.matmul %382, %381, %cst_146 {dimension_numbers = #tpu.dot_dimension_numbers<[1], [0], [0], [1], [0, 0, 1, 1], [], []>} : vector<1x32xf32>, vector<32x128xf32>, vector<1x128xf32> -> vector<1x128xf32>
    %388 = arith.addf %386, %387 : vector<1x128xf32>
    %389 = vector.extract_strided_slice %388 {offsets = [0, 0], sizes = [1, 32], strides = [1, 1]} : vector<1x128xf32> to vector<1x32xf32>
    %390 = arith.negf %389 : vector<1x32xf32>
    %391 = math.exp %390 : vector<1x32xf32>
    %cst_147 = arith.constant 1.000000e+00 : f32
    %392 = vector.broadcast %cst_147 : f32 to vector<1x32xf32>
    %393 = arith.addf %392, %391 : vector<1x32xf32>
    %394 = arith.divf %392, %393 : vector<1x32xf32>
    %395 = vector.extract_strided_slice %388 {offsets = [0, 32], sizes = [1, 32], strides = [1, 1]} : vector<1x128xf32> to vector<1x32xf32>
    %396 = arith.negf %395 : vector<1x32xf32>
    %397 = math.exp %396 : vector<1x32xf32>
    %cst_148 = arith.constant 1.000000e+00 : f32
    %398 = vector.broadcast %cst_148 : f32 to vector<1x32xf32>
    %399 = arith.addf %398, %397 : vector<1x32xf32>
    %400 = arith.divf %398, %399 : vector<1x32xf32>
    %401 = vector.extract_strided_slice %388 {offsets = [0, 64], sizes = [1, 32], strides = [1, 1]} : vector<1x128xf32> to vector<1x32xf32>
    %402 = math.tanh %401 : vector<1x32xf32>
    %403 = vector.extract_strided_slice %388 {offsets = [0, 96], sizes = [1, 32], strides = [1, 1]} : vector<1x128xf32> to vector<1x32xf32>
    %404 = arith.negf %403 : vector<1x32xf32>
    %405 = math.exp %404 : vector<1x32xf32>
    %cst_149 = arith.constant 1.000000e+00 : f32
    %406 = vector.broadcast %cst_149 : f32 to vector<1x32xf32>
    %407 = arith.addf %406, %405 : vector<1x32xf32>
    %408 = arith.divf %406, %407 : vector<1x32xf32>
    %409 = arith.mulf %400, %383 : vector<1x32xf32>
    %410 = arith.mulf %394, %402 : vector<1x32xf32>
    %411 = arith.addf %409, %410 : vector<1x32xf32>
    %412 = math.tanh %411 : vector<1x32xf32>
    %413 = arith.mulf %408, %412 : vector<1x32xf32>
    %414 = vector.extract_strided_slice %413 {offsets = [0, 0], sizes = [1, 16], strides = [1, 1]} : vector<1x32xf32> to vector<1x16xf32>
    %c0_150 = arith.constant 0 : index
    %c0_151 = arith.constant 0 : index
    %415 = vector.load %arg9[%c0_150, %c0_151] : memref<10x32xf32, #tpu.memory_space<vmem>>, vector<1x16xf32>
    tpu.vector_store %arg9[%c0_150, %c0_151], %414 {strides = array<i32>} : memref<10x32xf32, #tpu.memory_space<vmem>>, vector<1x16xf32>,
    %416 = vector.extract_strided_slice %413 {offsets = [0, 16], sizes = [1, 16], strides = [1, 1]} : vector<1x32xf32> to vector<1x16xf32>
    %c9_152 = arith.constant 9 : index
    %c16_153 = arith.constant 16 : index
    %417 = vector.load %arg9[%c9_152, %c16_153] : memref<10x32xf32, #tpu.memory_space<vmem>>, vector<1x16xf32>
    tpu.vector_store %arg9[%c9_152, %c16_153], %416 {strides = array<i32>} : memref<10x32xf32, #tpu.memory_space<vmem>>, vector<1x16xf32>,
    %c1_154 = arith.constant 1 : index
    %c0_155 = arith.constant 0 : index
    %418 = vector.load %arg10[%c1_154, %c0_155] : memref<10x128xf32, #tpu.memory_space<vmem>>, vector<1x128xf32>
    %c8_156 = arith.constant 8 : index
    %c0_157 = arith.constant 0 : index
    %419 = vector.load %arg10[%c8_156, %c0_157] : memref<10x128xf32, #tpu.memory_space<vmem>>, vector<1x128xf32>
    %420 = arith.select %18, %418, %419 : vector<1x128xi1>, vector<1x128xf32>
    %cst_158 = arith.constant dense<0.000000e+00> : vector<1x128xf32>
    %421 = tpu.matmul %413, %381, %cst_158 {dimension_numbers = #tpu.dot_dimension_numbers<[1], [0], [0], [1], [0, 0, 1, 1], [], []>} : vector<1x32xf32>, vector<32x128xf32>, vector<1x128xf32> -> vector<1x128xf32>
    %422 = arith.addf %420, %421 : vector<1x128xf32>
    %423 = vector.extract_strided_slice %422 {offsets = [0, 0], sizes = [1, 32], strides = [1, 1]} : vector<1x128xf32> to vector<1x32xf32>
    %424 = arith.negf %423 : vector<1x32xf32>
    %425 = math.exp %424 : vector<1x32xf32>
    %cst_159 = arith.constant 1.000000e+00 : f32
    %426 = vector.broadcast %cst_159 : f32 to vector<1x32xf32>
    %427 = arith.addf %426, %425 : vector<1x32xf32>
    %428 = arith.divf %426, %427 : vector<1x32xf32>
    %429 = vector.extract_strided_slice %422 {offsets = [0, 32], sizes = [1, 32], strides = [1, 1]} : vector<1x128xf32> to vector<1x32xf32>
    %430 = arith.negf %429 : vector<1x32xf32>
    %431 = math.exp %430 : vector<1x32xf32>
    %cst_160 = arith.constant 1.000000e+00 : f32
    %432 = vector.broadcast %cst_160 : f32 to vector<1x32xf32>
    %433 = arith.addf %432, %431 : vector<1x32xf32>
    %434 = arith.divf %432, %433 : vector<1x32xf32>
    %435 = vector.extract_strided_slice %422 {offsets = [0, 64], sizes = [1, 32], strides = [1, 1]} : vector<1x128xf32> to vector<1x32xf32>
    %436 = math.tanh %435 : vector<1x32xf32>
    %437 = vector.extract_strided_slice %422 {offsets = [0, 96], sizes = [1, 32], strides = [1, 1]} : vector<1x128xf32> to vector<1x32xf32>
    %438 = arith.negf %437 : vector<1x32xf32>
    %439 = math.exp %438 : vector<1x32xf32>
    %cst_161 = arith.constant 1.000000e+00 : f32
    %440 = vector.broadcast %cst_161 : f32 to vector<1x32xf32>
    %441 = arith.addf %440, %439 : vector<1x32xf32>
    %442 = arith.divf %440, %441 : vector<1x32xf32>
    %443 = arith.mulf %434, %411 : vector<1x32xf32>
    %444 = arith.mulf %428, %436 : vector<1x32xf32>
    %445 = arith.addf %443, %444 : vector<1x32xf32>
    %446 = math.tanh %445 : vector<1x32xf32>
    %447 = arith.mulf %442, %446 : vector<1x32xf32>
    %448 = vector.extract_strided_slice %447 {offsets = [0, 0], sizes = [1, 16], strides = [1, 1]} : vector<1x32xf32> to vector<1x16xf32>
    %c1_162 = arith.constant 1 : index
    %c0_163 = arith.constant 0 : index
    %449 = vector.load %arg9[%c1_162, %c0_163] : memref<10x32xf32, #tpu.memory_space<vmem>>, vector<1x16xf32>
    tpu.vector_store %arg9[%c1_162, %c0_163], %448 {strides = array<i32>} : memref<10x32xf32, #tpu.memory_space<vmem>>, vector<1x16xf32>,
    %450 = vector.extract_strided_slice %447 {offsets = [0, 16], sizes = [1, 16], strides = [1, 1]} : vector<1x32xf32> to vector<1x16xf32>
    %c8_164 = arith.constant 8 : index
    %c16_165 = arith.constant 16 : index
    %451 = vector.load %arg9[%c8_164, %c16_165] : memref<10x32xf32, #tpu.memory_space<vmem>>, vector<1x16xf32>
    tpu.vector_store %arg9[%c8_164, %c16_165], %450 {strides = array<i32>} : memref<10x32xf32, #tpu.memory_space<vmem>>, vector<1x16xf32>,
    %c2_166 = arith.constant 2 : index
    %c0_167 = arith.constant 0 : index
    %452 = vector.load %arg10[%c2_166, %c0_167] : memref<10x128xf32, #tpu.memory_space<vmem>>, vector<1x128xf32>
    %c7_168 = arith.constant 7 : index
    %c0_169 = arith.constant 0 : index
    %453 = vector.load %arg10[%c7_168, %c0_169] : memref<10x128xf32, #tpu.memory_space<vmem>>, vector<1x128xf32>
    %454 = arith.select %18, %452, %453 : vector<1x128xi1>, vector<1x128xf32>
    %cst_170 = arith.constant dense<0.000000e+00> : vector<1x128xf32>
    %455 = tpu.matmul %447, %381, %cst_170 {dimension_numbers = #tpu.dot_dimension_numbers<[1], [0], [0], [1], [0, 0, 1, 1], [], []>} : vector<1x32xf32>, vector<32x128xf32>, vector<1x128xf32> -> vector<1x128xf32>
    %456 = arith.addf %454, %455 : vector<1x128xf32>
    %457 = vector.extract_strided_slice %456 {offsets = [0, 0], sizes = [1, 32], strides = [1, 1]} : vector<1x128xf32> to vector<1x32xf32>
    %458 = arith.negf %457 : vector<1x32xf32>
    %459 = math.exp %458 : vector<1x32xf32>
    %cst_171 = arith.constant 1.000000e+00 : f32
    %460 = vector.broadcast %cst_171 : f32 to vector<1x32xf32>
    %461 = arith.addf %460, %459 : vector<1x32xf32>
    %462 = arith.divf %460, %461 : vector<1x32xf32>
    %463 = vector.extract_strided_slice %456 {offsets = [0, 32], sizes = [1, 32], strides = [1, 1]} : vector<1x128xf32> to vector<1x32xf32>
    %464 = arith.negf %463 : vector<1x32xf32>
    %465 = math.exp %464 : vector<1x32xf32>
    %cst_172 = arith.constant 1.000000e+00 : f32
    %466 = vector.broadcast %cst_172 : f32 to vector<1x32xf32>
    %467 = arith.addf %466, %465 : vector<1x32xf32>
    %468 = arith.divf %466, %467 : vector<1x32xf32>
    %469 = vector.extract_strided_slice %456 {offsets = [0, 64], sizes = [1, 32], strides = [1, 1]} : vector<1x128xf32> to vector<1x32xf32>
    %470 = math.tanh %469 : vector<1x32xf32>
    %471 = vector.extract_strided_slice %456 {offsets = [0, 96], sizes = [1, 32], strides = [1, 1]} : vector<1x128xf32> to vector<1x32xf32>
    %472 = arith.negf %471 : vector<1x32xf32>
    %473 = math.exp %472 : vector<1x32xf32>
    %cst_173 = arith.constant 1.000000e+00 : f32
    %474 = vector.broadcast %cst_173 : f32 to vector<1x32xf32>
    %475 = arith.addf %474, %473 : vector<1x32xf32>
    %476 = arith.divf %474, %475 : vector<1x32xf32>
    %477 = arith.mulf %468, %445 : vector<1x32xf32>
    %478 = arith.mulf %462, %470 : vector<1x32xf32>
    %479 = arith.addf %477, %478 : vector<1x32xf32>
    %480 = math.tanh %479 : vector<1x32xf32>
    %481 = arith.mulf %476, %480 : vector<1x32xf32>
    %482 = vector.extract_strided_slice %481 {offsets = [0, 0], sizes = [1, 16], strides = [1, 1]} : vector<1x32xf32> to vector<1x16xf32>
    %c2_174 = arith.constant 2 : index
    %c0_175 = arith.constant 0 : index
    %483 = vector.load %arg9[%c2_174, %c0_175] : memref<10x32xf32, #tpu.memory_space<vmem>>, vector<1x16xf32>
    tpu.vector_store %arg9[%c2_174, %c0_175], %482 {strides = array<i32>} : memref<10x32xf32, #tpu.memory_space<vmem>>, vector<1x16xf32>,
    %484 = vector.extract_strided_slice %481 {offsets = [0, 16], sizes = [1, 16], strides = [1, 1]} : vector<1x32xf32> to vector<1x16xf32>
    %c7_176 = arith.constant 7 : index
    %c16_177 = arith.constant 16 : index
    %485 = vector.load %arg9[%c7_176, %c16_177] : memref<10x32xf32, #tpu.memory_space<vmem>>, vector<1x16xf32>
    tpu.vector_store %arg9[%c7_176, %c16_177], %484 {strides = array<i32>} : memref<10x32xf32, #tpu.memory_space<vmem>>, vector<1x16xf32>,
    %c3_178 = arith.constant 3 : index
    %c0_179 = arith.constant 0 : index
    %486 = vector.load %arg10[%c3_178, %c0_179] : memref<10x128xf32, #tpu.memory_space<vmem>>, vector<1x128xf32>
    %c6_180 = arith.constant 6 : index
    %c0_181 = arith.constant 0 : index
    %487 = vector.load %arg10[%c6_180, %c0_181] : memref<10x128xf32, #tpu.memory_space<vmem>>, vector<1x128xf32>
    %488 = arith.select %18, %486, %487 : vector<1x128xi1>, vector<1x128xf32>
    %cst_182 = arith.constant dense<0.000000e+00> : vector<1x128xf32>
    %489 = tpu.matmul %481, %381, %cst_182 {dimension_numbers = #tpu.dot_dimension_numbers<[1], [0], [0], [1], [0, 0, 1, 1], [], []>} : vector<1x32xf32>, vector<32x128xf32>, vector<1x128xf32> -> vector<1x128xf32>
    %490 = arith.addf %488, %489 : vector<1x128xf32>
    %491 = vector.extract_strided_slice %490 {offsets = [0, 0], sizes = [1, 32], strides = [1, 1]} : vector<1x128xf32> to vector<1x32xf32>
    %492 = arith.negf %491 : vector<1x32xf32>
    %493 = math.exp %492 : vector<1x32xf32>
    %cst_183 = arith.constant 1.000000e+00 : f32
    %494 = vector.broadcast %cst_183 : f32 to vector<1x32xf32>
    %495 = arith.addf %494, %493 : vector<1x32xf32>
    %496 = arith.divf %494, %495 : vector<1x32xf32>
    %497 = vector.extract_strided_slice %490 {offsets = [0, 32], sizes = [1, 32], strides = [1, 1]} : vector<1x128xf32> to vector<1x32xf32>
    %498 = arith.negf %497 : vector<1x32xf32>
    %499 = math.exp %498 : vector<1x32xf32>
    %cst_184 = arith.constant 1.000000e+00 : f32
    %500 = vector.broadcast %cst_184 : f32 to vector<1x32xf32>
    %501 = arith.addf %500, %499 : vector<1x32xf32>
    %502 = arith.divf %500, %501 : vector<1x32xf32>
    %503 = vector.extract_strided_slice %490 {offsets = [0, 64], sizes = [1, 32], strides = [1, 1]} : vector<1x128xf32> to vector<1x32xf32>
    %504 = math.tanh %503 : vector<1x32xf32>
    %505 = vector.extract_strided_slice %490 {offsets = [0, 96], sizes = [1, 32], strides = [1, 1]} : vector<1x128xf32> to vector<1x32xf32>
    %506 = arith.negf %505 : vector<1x32xf32>
    %507 = math.exp %506 : vector<1x32xf32>
    %cst_185 = arith.constant 1.000000e+00 : f32
    %508 = vector.broadcast %cst_185 : f32 to vector<1x32xf32>
    %509 = arith.addf %508, %507 : vector<1x32xf32>
    %510 = arith.divf %508, %509 : vector<1x32xf32>
    %511 = arith.mulf %502, %479 : vector<1x32xf32>
    %512 = arith.mulf %496, %504 : vector<1x32xf32>
    %513 = arith.addf %511, %512 : vector<1x32xf32>
    %514 = math.tanh %513 : vector<1x32xf32>
    %515 = arith.mulf %510, %514 : vector<1x32xf32>
    %516 = vector.extract_strided_slice %515 {offsets = [0, 0], sizes = [1, 16], strides = [1, 1]} : vector<1x32xf32> to vector<1x16xf32>
    %c3_186 = arith.constant 3 : index
    %c0_187 = arith.constant 0 : index
    %517 = vector.load %arg9[%c3_186, %c0_187] : memref<10x32xf32, #tpu.memory_space<vmem>>, vector<1x16xf32>
    tpu.vector_store %arg9[%c3_186, %c0_187], %516 {strides = array<i32>} : memref<10x32xf32, #tpu.memory_space<vmem>>, vector<1x16xf32>,
    %518 = vector.extract_strided_slice %515 {offsets = [0, 16], sizes = [1, 16], strides = [1, 1]} : vector<1x32xf32> to vector<1x16xf32>
    %c6_188 = arith.constant 6 : index
    %c16_189 = arith.constant 16 : index
    %519 = vector.load %arg9[%c6_188, %c16_189] : memref<10x32xf32, #tpu.memory_space<vmem>>, vector<1x16xf32>
    tpu.vector_store %arg9[%c6_188, %c16_189], %518 {strides = array<i32>} : memref<10x32xf32, #tpu.memory_space<vmem>>, vector<1x16xf32>,
    %c4_190 = arith.constant 4 : index
    %c0_191 = arith.constant 0 : index
    %520 = vector.load %arg10[%c4_190, %c0_191] : memref<10x128xf32, #tpu.memory_space<vmem>>, vector<1x128xf32>
    %c5_192 = arith.constant 5 : index
    %c0_193 = arith.constant 0 : index
    %521 = vector.load %arg10[%c5_192, %c0_193] : memref<10x128xf32, #tpu.memory_space<vmem>>, vector<1x128xf32>
    %522 = arith.select %18, %520, %521 : vector<1x128xi1>, vector<1x128xf32>
    %cst_194 = arith.constant dense<0.000000e+00> : vector<1x128xf32>
    %523 = tpu.matmul %515, %381, %cst_194 {dimension_numbers = #tpu.dot_dimension_numbers<[1], [0], [0], [1], [0, 0, 1, 1], [], []>} : vector<1x32xf32>, vector<32x128xf32>, vector<1x128xf32> -> vector<1x128xf32>
    %524 = arith.addf %522, %523 : vector<1x128xf32>
    %525 = vector.extract_strided_slice %524 {offsets = [0, 0], sizes = [1, 32], strides = [1, 1]} : vector<1x128xf32> to vector<1x32xf32>
    %526 = arith.negf %525 : vector<1x32xf32>
    %527 = math.exp %526 : vector<1x32xf32>
    %cst_195 = arith.constant 1.000000e+00 : f32
    %528 = vector.broadcast %cst_195 : f32 to vector<1x32xf32>
    %529 = arith.addf %528, %527 : vector<1x32xf32>
    %530 = arith.divf %528, %529 : vector<1x32xf32>
    %531 = vector.extract_strided_slice %524 {offsets = [0, 32], sizes = [1, 32], strides = [1, 1]} : vector<1x128xf32> to vector<1x32xf32>
    %532 = arith.negf %531 : vector<1x32xf32>
    %533 = math.exp %532 : vector<1x32xf32>
    %cst_196 = arith.constant 1.000000e+00 : f32
    %534 = vector.broadcast %cst_196 : f32 to vector<1x32xf32>
    %535 = arith.addf %534, %533 : vector<1x32xf32>
    %536 = arith.divf %534, %535 : vector<1x32xf32>
    %537 = vector.extract_strided_slice %524 {offsets = [0, 64], sizes = [1, 32], strides = [1, 1]} : vector<1x128xf32> to vector<1x32xf32>
    %538 = math.tanh %537 : vector<1x32xf32>
    %539 = vector.extract_strided_slice %524 {offsets = [0, 96], sizes = [1, 32], strides = [1, 1]} : vector<1x128xf32> to vector<1x32xf32>
    %540 = arith.negf %539 : vector<1x32xf32>
    %541 = math.exp %540 : vector<1x32xf32>
    %cst_197 = arith.constant 1.000000e+00 : f32
    %542 = vector.broadcast %cst_197 : f32 to vector<1x32xf32>
    %543 = arith.addf %542, %541 : vector<1x32xf32>
    %544 = arith.divf %542, %543 : vector<1x32xf32>
    %545 = arith.mulf %536, %513 : vector<1x32xf32>
    %546 = arith.mulf %530, %538 : vector<1x32xf32>
    %547 = arith.addf %545, %546 : vector<1x32xf32>
    %548 = math.tanh %547 : vector<1x32xf32>
    %549 = arith.mulf %544, %548 : vector<1x32xf32>
    %550 = vector.extract_strided_slice %549 {offsets = [0, 0], sizes = [1, 16], strides = [1, 1]} : vector<1x32xf32> to vector<1x16xf32>
    %c4_198 = arith.constant 4 : index
    %c0_199 = arith.constant 0 : index
    %551 = vector.load %arg9[%c4_198, %c0_199] : memref<10x32xf32, #tpu.memory_space<vmem>>, vector<1x16xf32>
    tpu.vector_store %arg9[%c4_198, %c0_199], %550 {strides = array<i32>} : memref<10x32xf32, #tpu.memory_space<vmem>>, vector<1x16xf32>,
    %552 = vector.extract_strided_slice %549 {offsets = [0, 16], sizes = [1, 16], strides = [1, 1]} : vector<1x32xf32> to vector<1x16xf32>
    %c5_200 = arith.constant 5 : index
    %c16_201 = arith.constant 16 : index
    %553 = vector.load %arg9[%c5_200, %c16_201] : memref<10x32xf32, #tpu.memory_space<vmem>>, vector<1x16xf32>
    tpu.vector_store %arg9[%c5_200, %c16_201], %552 {strides = array<i32>} : memref<10x32xf32, #tpu.memory_space<vmem>>, vector<1x16xf32>,
    %c5_202 = arith.constant 5 : index
    %c0_203 = arith.constant 0 : index
    %554 = vector.load %arg10[%c5_202, %c0_203] : memref<10x128xf32, #tpu.memory_space<vmem>>, vector<1x128xf32>
    %c4_204 = arith.constant 4 : index
    %c0_205 = arith.constant 0 : index
    %555 = vector.load %arg10[%c4_204, %c0_205] : memref<10x128xf32, #tpu.memory_space<vmem>>, vector<1x128xf32>
    %556 = arith.select %18, %554, %555 : vector<1x128xi1>, vector<1x128xf32>
    %cst_206 = arith.constant dense<0.000000e+00> : vector<1x128xf32>
    %557 = tpu.matmul %549, %381, %cst_206 {dimension_numbers = #tpu.dot_dimension_numbers<[1], [0], [0], [1], [0, 0, 1, 1], [], []>} : vector<1x32xf32>, vector<32x128xf32>, vector<1x128xf32> -> vector<1x128xf32>
    %558 = arith.addf %556, %557 : vector<1x128xf32>
    %559 = vector.extract_strided_slice %558 {offsets = [0, 0], sizes = [1, 32], strides = [1, 1]} : vector<1x128xf32> to vector<1x32xf32>
    %560 = arith.negf %559 : vector<1x32xf32>
    %561 = math.exp %560 : vector<1x32xf32>
    %cst_207 = arith.constant 1.000000e+00 : f32
    %562 = vector.broadcast %cst_207 : f32 to vector<1x32xf32>
    %563 = arith.addf %562, %561 : vector<1x32xf32>
    %564 = arith.divf %562, %563 : vector<1x32xf32>
    %565 = vector.extract_strided_slice %558 {offsets = [0, 32], sizes = [1, 32], strides = [1, 1]} : vector<1x128xf32> to vector<1x32xf32>
    %566 = arith.negf %565 : vector<1x32xf32>
    %567 = math.exp %566 : vector<1x32xf32>
    %cst_208 = arith.constant 1.000000e+00 : f32
    %568 = vector.broadcast %cst_208 : f32 to vector<1x32xf32>
    %569 = arith.addf %568, %567 : vector<1x32xf32>
    %570 = arith.divf %568, %569 : vector<1x32xf32>
    %571 = vector.extract_strided_slice %558 {offsets = [0, 64], sizes = [1, 32], strides = [1, 1]} : vector<1x128xf32> to vector<1x32xf32>
    %572 = math.tanh %571 : vector<1x32xf32>
    %573 = vector.extract_strided_slice %558 {offsets = [0, 96], sizes = [1, 32], strides = [1, 1]} : vector<1x128xf32> to vector<1x32xf32>
    %574 = arith.negf %573 : vector<1x32xf32>
    %575 = math.exp %574 : vector<1x32xf32>
    %cst_209 = arith.constant 1.000000e+00 : f32
    %576 = vector.broadcast %cst_209 : f32 to vector<1x32xf32>
    %577 = arith.addf %576, %575 : vector<1x32xf32>
    %578 = arith.divf %576, %577 : vector<1x32xf32>
    %579 = arith.mulf %570, %547 : vector<1x32xf32>
    %580 = arith.mulf %564, %572 : vector<1x32xf32>
    %581 = arith.addf %579, %580 : vector<1x32xf32>
    %582 = math.tanh %581 : vector<1x32xf32>
    %583 = arith.mulf %578, %582 : vector<1x32xf32>
    %584 = vector.extract_strided_slice %583 {offsets = [0, 0], sizes = [1, 16], strides = [1, 1]} : vector<1x32xf32> to vector<1x16xf32>
    %c5_210 = arith.constant 5 : index
    %c0_211 = arith.constant 0 : index
    %585 = vector.load %arg9[%c5_210, %c0_211] : memref<10x32xf32, #tpu.memory_space<vmem>>, vector<1x16xf32>
    tpu.vector_store %arg9[%c5_210, %c0_211], %584 {strides = array<i32>} : memref<10x32xf32, #tpu.memory_space<vmem>>, vector<1x16xf32>,
    %586 = vector.extract_strided_slice %583 {offsets = [0, 16], sizes = [1, 16], strides = [1, 1]} : vector<1x32xf32> to vector<1x16xf32>
    %c4_212 = arith.constant 4 : index
    %c16_213 = arith.constant 16 : index
    %587 = vector.load %arg9[%c4_212, %c16_213] : memref<10x32xf32, #tpu.memory_space<vmem>>, vector<1x16xf32>
    tpu.vector_store %arg9[%c4_212, %c16_213], %586 {strides = array<i32>} : memref<10x32xf32, #tpu.memory_space<vmem>>, vector<1x16xf32>,
    %c6_214 = arith.constant 6 : index
    %c0_215 = arith.constant 0 : index
    %588 = vector.load %arg10[%c6_214, %c0_215] : memref<10x128xf32, #tpu.memory_space<vmem>>, vector<1x128xf32>
    %c3_216 = arith.constant 3 : index
    %c0_217 = arith.constant 0 : index
    %589 = vector.load %arg10[%c3_216, %c0_217] : memref<10x128xf32, #tpu.memory_space<vmem>>, vector<1x128xf32>
    %590 = arith.select %18, %588, %589 : vector<1x128xi1>, vector<1x128xf32>
    %cst_218 = arith.constant dense<0.000000e+00> : vector<1x128xf32>
    %591 = tpu.matmul %583, %381, %cst_218 {dimension_numbers = #tpu.dot_dimension_numbers<[1], [0], [0], [1], [0, 0, 1, 1], [], []>} : vector<1x32xf32>, vector<32x128xf32>, vector<1x128xf32> -> vector<1x128xf32>
    %592 = arith.addf %590, %591 : vector<1x128xf32>
    %593 = vector.extract_strided_slice %592 {offsets = [0, 0], sizes = [1, 32], strides = [1, 1]} : vector<1x128xf32> to vector<1x32xf32>
    %594 = arith.negf %593 : vector<1x32xf32>
    %595 = math.exp %594 : vector<1x32xf32>
    %cst_219 = arith.constant 1.000000e+00 : f32
    %596 = vector.broadcast %cst_219 : f32 to vector<1x32xf32>
    %597 = arith.addf %596, %595 : vector<1x32xf32>
    %598 = arith.divf %596, %597 : vector<1x32xf32>
    %599 = vector.extract_strided_slice %592 {offsets = [0, 32], sizes = [1, 32], strides = [1, 1]} : vector<1x128xf32> to vector<1x32xf32>
    %600 = arith.negf %599 : vector<1x32xf32>
    %601 = math.exp %600 : vector<1x32xf32>
    %cst_220 = arith.constant 1.000000e+00 : f32
    %602 = vector.broadcast %cst_220 : f32 to vector<1x32xf32>
    %603 = arith.addf %602, %601 : vector<1x32xf32>
    %604 = arith.divf %602, %603 : vector<1x32xf32>
    %605 = vector.extract_strided_slice %592 {offsets = [0, 64], sizes = [1, 32], strides = [1, 1]} : vector<1x128xf32> to vector<1x32xf32>
    %606 = math.tanh %605 : vector<1x32xf32>
    %607 = vector.extract_strided_slice %592 {offsets = [0, 96], sizes = [1, 32], strides = [1, 1]} : vector<1x128xf32> to vector<1x32xf32>
    %608 = arith.negf %607 : vector<1x32xf32>
    %609 = math.exp %608 : vector<1x32xf32>
    %cst_221 = arith.constant 1.000000e+00 : f32
    %610 = vector.broadcast %cst_221 : f32 to vector<1x32xf32>
    %611 = arith.addf %610, %609 : vector<1x32xf32>
    %612 = arith.divf %610, %611 : vector<1x32xf32>
    %613 = arith.mulf %604, %581 : vector<1x32xf32>
    %614 = arith.mulf %598, %606 : vector<1x32xf32>
    %615 = arith.addf %613, %614 : vector<1x32xf32>
    %616 = math.tanh %615 : vector<1x32xf32>
    %617 = arith.mulf %612, %616 : vector<1x32xf32>
    %618 = vector.extract_strided_slice %617 {offsets = [0, 0], sizes = [1, 16], strides = [1, 1]} : vector<1x32xf32> to vector<1x16xf32>
    %c6_222 = arith.constant 6 : index
    %c0_223 = arith.constant 0 : index
    %619 = vector.load %arg9[%c6_222, %c0_223] : memref<10x32xf32, #tpu.memory_space<vmem>>, vector<1x16xf32>
    tpu.vector_store %arg9[%c6_222, %c0_223], %618 {strides = array<i32>} : memref<10x32xf32, #tpu.memory_space<vmem>>, vector<1x16xf32>,
    %620 = vector.extract_strided_slice %617 {offsets = [0, 16], sizes = [1, 16], strides = [1, 1]} : vector<1x32xf32> to vector<1x16xf32>
    %c3_224 = arith.constant 3 : index
    %c16_225 = arith.constant 16 : index
    %621 = vector.load %arg9[%c3_224, %c16_225] : memref<10x32xf32, #tpu.memory_space<vmem>>, vector<1x16xf32>
    tpu.vector_store %arg9[%c3_224, %c16_225], %620 {strides = array<i32>} : memref<10x32xf32, #tpu.memory_space<vmem>>, vector<1x16xf32>,
    %c7_226 = arith.constant 7 : index
    %c0_227 = arith.constant 0 : index
    %622 = vector.load %arg10[%c7_226, %c0_227] : memref<10x128xf32, #tpu.memory_space<vmem>>, vector<1x128xf32>
    %c2_228 = arith.constant 2 : index
    %c0_229 = arith.constant 0 : index
    %623 = vector.load %arg10[%c2_228, %c0_229] : memref<10x128xf32, #tpu.memory_space<vmem>>, vector<1x128xf32>
    %624 = arith.select %18, %622, %623 : vector<1x128xi1>, vector<1x128xf32>
    %cst_230 = arith.constant dense<0.000000e+00> : vector<1x128xf32>
    %625 = tpu.matmul %617, %381, %cst_230 {dimension_numbers = #tpu.dot_dimension_numbers<[1], [0], [0], [1], [0, 0, 1, 1], [], []>} : vector<1x32xf32>, vector<32x128xf32>, vector<1x128xf32> -> vector<1x128xf32>
    %626 = arith.addf %624, %625 : vector<1x128xf32>
    %627 = vector.extract_strided_slice %626 {offsets = [0, 0], sizes = [1, 32], strides = [1, 1]} : vector<1x128xf32> to vector<1x32xf32>
    %628 = arith.negf %627 : vector<1x32xf32>
    %629 = math.exp %628 : vector<1x32xf32>
    %cst_231 = arith.constant 1.000000e+00 : f32
    %630 = vector.broadcast %cst_231 : f32 to vector<1x32xf32>
    %631 = arith.addf %630, %629 : vector<1x32xf32>
    %632 = arith.divf %630, %631 : vector<1x32xf32>
    %633 = vector.extract_strided_slice %626 {offsets = [0, 32], sizes = [1, 32], strides = [1, 1]} : vector<1x128xf32> to vector<1x32xf32>
    %634 = arith.negf %633 : vector<1x32xf32>
    %635 = math.exp %634 : vector<1x32xf32>
    %cst_232 = arith.constant 1.000000e+00 : f32
    %636 = vector.broadcast %cst_232 : f32 to vector<1x32xf32>
    %637 = arith.addf %636, %635 : vector<1x32xf32>
    %638 = arith.divf %636, %637 : vector<1x32xf32>
    %639 = vector.extract_strided_slice %626 {offsets = [0, 64], sizes = [1, 32], strides = [1, 1]} : vector<1x128xf32> to vector<1x32xf32>
    %640 = math.tanh %639 : vector<1x32xf32>
    %641 = vector.extract_strided_slice %626 {offsets = [0, 96], sizes = [1, 32], strides = [1, 1]} : vector<1x128xf32> to vector<1x32xf32>
    %642 = arith.negf %641 : vector<1x32xf32>
    %643 = math.exp %642 : vector<1x32xf32>
    %cst_233 = arith.constant 1.000000e+00 : f32
    %644 = vector.broadcast %cst_233 : f32 to vector<1x32xf32>
    %645 = arith.addf %644, %643 : vector<1x32xf32>
    %646 = arith.divf %644, %645 : vector<1x32xf32>
    %647 = arith.mulf %638, %615 : vector<1x32xf32>
    %648 = arith.mulf %632, %640 : vector<1x32xf32>
    %649 = arith.addf %647, %648 : vector<1x32xf32>
    %650 = math.tanh %649 : vector<1x32xf32>
    %651 = arith.mulf %646, %650 : vector<1x32xf32>
    %652 = vector.extract_strided_slice %651 {offsets = [0, 0], sizes = [1, 16], strides = [1, 1]} : vector<1x32xf32> to vector<1x16xf32>
    %c7_234 = arith.constant 7 : index
    %c0_235 = arith.constant 0 : index
    %653 = vector.load %arg9[%c7_234, %c0_235] : memref<10x32xf32, #tpu.memory_space<vmem>>, vector<1x16xf32>
    tpu.vector_store %arg9[%c7_234, %c0_235], %652 {strides = array<i32>} : memref<10x32xf32, #tpu.memory_space<vmem>>, vector<1x16xf32>,
    %654 = vector.extract_strided_slice %651 {offsets = [0, 16], sizes = [1, 16], strides = [1, 1]} : vector<1x32xf32> to vector<1x16xf32>
    %c2_236 = arith.constant 2 : index
    %c16_237 = arith.constant 16 : index
    %655 = vector.load %arg9[%c2_236, %c16_237] : memref<10x32xf32, #tpu.memory_space<vmem>>, vector<1x16xf32>
    tpu.vector_store %arg9[%c2_236, %c16_237], %654 {strides = array<i32>} : memref<10x32xf32, #tpu.memory_space<vmem>>, vector<1x16xf32>,
    %c8_238 = arith.constant 8 : index
    %c0_239 = arith.constant 0 : index
    %656 = vector.load %arg10[%c8_238, %c0_239] : memref<10x128xf32, #tpu.memory_space<vmem>>, vector<1x128xf32>
    %c1_240 = arith.constant 1 : index
    %c0_241 = arith.constant 0 : index
    %657 = vector.load %arg10[%c1_240, %c0_241] : memref<10x128xf32, #tpu.memory_space<vmem>>, vector<1x128xf32>
    %658 = arith.select %18, %656, %657 : vector<1x128xi1>, vector<1x128xf32>
    %cst_242 = arith.constant dense<0.000000e+00> : vector<1x128xf32>
    %659 = tpu.matmul %651, %381, %cst_242 {dimension_numbers = #tpu.dot_dimension_numbers<[1], [0], [0], [1], [0, 0, 1, 1], [], []>} : vector<1x32xf32>, vector<32x128xf32>, vector<1x128xf32> -> vector<1x128xf32>
    %660 = arith.addf %658, %659 : vector<1x128xf32>
    %661 = vector.extract_strided_slice %660 {offsets = [0, 0], sizes = [1, 32], strides = [1, 1]} : vector<1x128xf32> to vector<1x32xf32>
    %662 = arith.negf %661 : vector<1x32xf32>
    %663 = math.exp %662 : vector<1x32xf32>
    %cst_243 = arith.constant 1.000000e+00 : f32
    %664 = vector.broadcast %cst_243 : f32 to vector<1x32xf32>
    %665 = arith.addf %664, %663 : vector<1x32xf32>
    %666 = arith.divf %664, %665 : vector<1x32xf32>
    %667 = vector.extract_strided_slice %660 {offsets = [0, 32], sizes = [1, 32], strides = [1, 1]} : vector<1x128xf32> to vector<1x32xf32>
    %668 = arith.negf %667 : vector<1x32xf32>
    %669 = math.exp %668 : vector<1x32xf32>
    %cst_244 = arith.constant 1.000000e+00 : f32
    %670 = vector.broadcast %cst_244 : f32 to vector<1x32xf32>
    %671 = arith.addf %670, %669 : vector<1x32xf32>
    %672 = arith.divf %670, %671 : vector<1x32xf32>
    %673 = vector.extract_strided_slice %660 {offsets = [0, 64], sizes = [1, 32], strides = [1, 1]} : vector<1x128xf32> to vector<1x32xf32>
    %674 = math.tanh %673 : vector<1x32xf32>
    %675 = vector.extract_strided_slice %660 {offsets = [0, 96], sizes = [1, 32], strides = [1, 1]} : vector<1x128xf32> to vector<1x32xf32>
    %676 = arith.negf %675 : vector<1x32xf32>
    %677 = math.exp %676 : vector<1x32xf32>
    %cst_245 = arith.constant 1.000000e+00 : f32
    %678 = vector.broadcast %cst_245 : f32 to vector<1x32xf32>
    %679 = arith.addf %678, %677 : vector<1x32xf32>
    %680 = arith.divf %678, %679 : vector<1x32xf32>
    %681 = arith.mulf %672, %649 : vector<1x32xf32>
    %682 = arith.mulf %666, %674 : vector<1x32xf32>
    %683 = arith.addf %681, %682 : vector<1x32xf32>
    %684 = math.tanh %683 : vector<1x32xf32>
    %685 = arith.mulf %680, %684 : vector<1x32xf32>
    %686 = vector.extract_strided_slice %685 {offsets = [0, 0], sizes = [1, 16], strides = [1, 1]} : vector<1x32xf32> to vector<1x16xf32>
    %c8_246 = arith.constant 8 : index
    %c0_247 = arith.constant 0 : index
    %687 = vector.load %arg9[%c8_246, %c0_247] : memref<10x32xf32, #tpu.memory_space<vmem>>, vector<1x16xf32>
    tpu.vector_store %arg9[%c8_246, %c0_247], %686 {strides = array<i32>} : memref<10x32xf32, #tpu.memory_space<vmem>>, vector<1x16xf32>,
    %688 = vector.extract_strided_slice %685 {offsets = [0, 16], sizes = [1, 16], strides = [1, 1]} : vector<1x32xf32> to vector<1x16xf32>
    %c1_248 = arith.constant 1 : index
    %c16_249 = arith.constant 16 : index
    %689 = vector.load %arg9[%c1_248, %c16_249] : memref<10x32xf32, #tpu.memory_space<vmem>>, vector<1x16xf32>
    tpu.vector_store %arg9[%c1_248, %c16_249], %688 {strides = array<i32>} : memref<10x32xf32, #tpu.memory_space<vmem>>, vector<1x16xf32>,
    %c9_250 = arith.constant 9 : index
    %c0_251 = arith.constant 0 : index
    %690 = vector.load %arg10[%c9_250, %c0_251] : memref<10x128xf32, #tpu.memory_space<vmem>>, vector<1x128xf32>
    %c0_252 = arith.constant 0 : index
    %c0_253 = arith.constant 0 : index
    %691 = vector.load %arg10[%c0_252, %c0_253] : memref<10x128xf32, #tpu.memory_space<vmem>>, vector<1x128xf32>
    %692 = arith.select %18, %690, %691 : vector<1x128xi1>, vector<1x128xf32>
    %cst_254 = arith.constant dense<0.000000e+00> : vector<1x128xf32>
    %693 = tpu.matmul %685, %381, %cst_254 {dimension_numbers = #tpu.dot_dimension_numbers<[1], [0], [0], [1], [0, 0, 1, 1], [], []>} : vector<1x32xf32>, vector<32x128xf32>, vector<1x128xf32> -> vector<1x128xf32>
    %694 = arith.addf %692, %693 : vector<1x128xf32>
    %695 = vector.extract_strided_slice %694 {offsets = [0, 0], sizes = [1, 32], strides = [1, 1]} : vector<1x128xf32> to vector<1x32xf32>
    %696 = arith.negf %695 : vector<1x32xf32>
    %697 = math.exp %696 : vector<1x32xf32>
    %cst_255 = arith.constant 1.000000e+00 : f32
    %698 = vector.broadcast %cst_255 : f32 to vector<1x32xf32>
    %699 = arith.addf %698, %697 : vector<1x32xf32>
    %700 = arith.divf %698, %699 : vector<1x32xf32>
    %701 = vector.extract_strided_slice %694 {offsets = [0, 32], sizes = [1, 32], strides = [1, 1]} : vector<1x128xf32> to vector<1x32xf32>
    %702 = arith.negf %701 : vector<1x32xf32>
    %703 = math.exp %702 : vector<1x32xf32>
    %cst_256 = arith.constant 1.000000e+00 : f32
    %704 = vector.broadcast %cst_256 : f32 to vector<1x32xf32>
    %705 = arith.addf %704, %703 : vector<1x32xf32>
    %706 = arith.divf %704, %705 : vector<1x32xf32>
    %707 = vector.extract_strided_slice %694 {offsets = [0, 64], sizes = [1, 32], strides = [1, 1]} : vector<1x128xf32> to vector<1x32xf32>
    %708 = math.tanh %707 : vector<1x32xf32>
    %709 = vector.extract_strided_slice %694 {offsets = [0, 96], sizes = [1, 32], strides = [1, 1]} : vector<1x128xf32> to vector<1x32xf32>
    %710 = arith.negf %709 : vector<1x32xf32>
    %711 = math.exp %710 : vector<1x32xf32>
    %cst_257 = arith.constant 1.000000e+00 : f32
    %712 = vector.broadcast %cst_257 : f32 to vector<1x32xf32>
    %713 = arith.addf %712, %711 : vector<1x32xf32>
    %714 = arith.divf %712, %713 : vector<1x32xf32>
    %715 = arith.mulf %706, %683 : vector<1x32xf32>
    %716 = arith.mulf %700, %708 : vector<1x32xf32>
    %717 = arith.addf %715, %716 : vector<1x32xf32>
    %718 = math.tanh %717 : vector<1x32xf32>
    %719 = arith.mulf %714, %718 : vector<1x32xf32>
    %720 = vector.extract_strided_slice %719 {offsets = [0, 0], sizes = [1, 16], strides = [1, 1]} : vector<1x32xf32> to vector<1x16xf32>
    %c9_258 = arith.constant 9 : index
    %c0_259 = arith.constant 0 : index
    %721 = vector.load %arg9[%c9_258, %c0_259] : memref<10x32xf32, #tpu.memory_space<vmem>>, vector<1x16xf32>
    tpu.vector_store %arg9[%c9_258, %c0_259], %720 {strides = array<i32>} : memref<10x32xf32, #tpu.memory_space<vmem>>, vector<1x16xf32>,
    %722 = vector.extract_strided_slice %719 {offsets = [0, 16], sizes = [1, 16], strides = [1, 1]} : vector<1x32xf32> to vector<1x16xf32>
    %c0_260 = arith.constant 0 : index
    %c16_261 = arith.constant 16 : index
    %723 = vector.load %arg9[%c0_260, %c16_261] : memref<10x32xf32, #tpu.memory_space<vmem>>, vector<1x16xf32>
    tpu.vector_store %arg9[%c0_260, %c16_261], %722 {strides = array<i32>} : memref<10x32xf32, #tpu.memory_space<vmem>>, vector<1x16xf32>,
    %c0_262 = arith.constant 0 : index
    %c0_263 = arith.constant 0 : index
    %724 = vector.load %arg9[%c0_262, %c0_263] : memref<10x32xf32, #tpu.memory_space<vmem>>, vector<9x32xf32>
    %c1_264 = arith.constant 1 : index
    %c0_265 = arith.constant 0 : index
    %725 = vector.load %arg9[%c1_264, %c0_265] : memref<10x32xf32, #tpu.memory_space<vmem>>, vector<9x32xf32>
    %cst_266 = arith.constant 0.000000e+00 : f32
    %726 = vector.broadcast %cst_266 : f32 to vector<9x32xf32>
    %727 = arith.subf %726, %725 : vector<9x32xf32>
    %728 = vector.shape_cast %21 : vector<1x32xi1> to vector<1x32xi1>
    %729 = vector.broadcast %728 : vector<1x32xi1> to vector<9x32xi1>
    %730 = arith.select %729, %724, %727 : vector<9x32xi1>, vector<9x32xf32>
    %c0_267 = arith.constant 0 : index
    %c0_268 = arith.constant 0 : index
    %731 = vector.load %arg11[%c0_267, %c0_268] : memref<9x32xf32, #tpu.memory_space<vmem>>, vector<9x32xf32>
    tpu.vector_store %arg11[%c0_267, %c0_268], %730 {strides = array<i32>} : memref<9x32xf32, #tpu.memory_space<vmem>>, vector<9x32xf32>,
    %c1_269 = arith.constant 1 : index
    %c0_270 = arith.constant 0 : index
    %732 = vector.load %arg11[%c1_269, %c0_270] : memref<9x32xf32, #tpu.memory_space<vmem>>, vector<8x32xf32>
    %c0_271 = arith.constant 0 : index
    %c0_272 = arith.constant 0 : index
    %733 = vector.load %arg11[%c0_271, %c0_272] : memref<9x32xf32, #tpu.memory_space<vmem>>, vector<8x32xf32>
    %734 = arith.subf %732, %733 : vector<8x32xf32>
    %c0_273 = arith.constant 0 : index
    %c0_274 = arith.constant 0 : index
    %735 = vector.load %arg8[%c0_273, %c0_274] : memref<36x32xf32, #tpu.memory_space<vmem>>, vector<8x32xf32>
    tpu.vector_store %arg8[%c0_273, %c0_274], %734 {strides = array<i32>} : memref<36x32xf32, #tpu.memory_space<vmem>>, vector<8x32xf32>,
    %c2_275 = arith.constant 2 : index
    %c0_276 = arith.constant 0 : index
    %736 = vector.load %arg11[%c2_275, %c0_276] : memref<9x32xf32, #tpu.memory_space<vmem>>, vector<7x32xf32>
    %c0_277 = arith.constant 0 : index
    %c0_278 = arith.constant 0 : index
    %737 = vector.load %arg11[%c0_277, %c0_278] : memref<9x32xf32, #tpu.memory_space<vmem>>, vector<7x32xf32>
    %738 = arith.subf %736, %737 : vector<7x32xf32>
    %c8_279 = arith.constant 8 : index
    %c0_280 = arith.constant 0 : index
    %739 = vector.load %arg8[%c8_279, %c0_280] : memref<36x32xf32, #tpu.memory_space<vmem>>, vector<7x32xf32>
    tpu.vector_store %arg8[%c8_279, %c0_280], %738 {strides = array<i32>} : memref<36x32xf32, #tpu.memory_space<vmem>>, vector<7x32xf32>,
    %c3_281 = arith.constant 3 : index
    %c0_282 = arith.constant 0 : index
    %740 = vector.load %arg11[%c3_281, %c0_282] : memref<9x32xf32, #tpu.memory_space<vmem>>, vector<6x32xf32>
    %c0_283 = arith.constant 0 : index
    %c0_284 = arith.constant 0 : index
    %741 = vector.load %arg11[%c0_283, %c0_284] : memref<9x32xf32, #tpu.memory_space<vmem>>, vector<6x32xf32>
    %742 = arith.subf %740, %741 : vector<6x32xf32>
    %c15 = arith.constant 15 : index
    %c0_285 = arith.constant 0 : index
    %743 = vector.load %arg8[%c15, %c0_285] : memref<36x32xf32, #tpu.memory_space<vmem>>, vector<6x32xf32>
    tpu.vector_store %arg8[%c15, %c0_285], %742 {strides = array<i32>} : memref<36x32xf32, #tpu.memory_space<vmem>>, vector<6x32xf32>,
    %c4_286 = arith.constant 4 : index
    %c0_287 = arith.constant 0 : index
    %744 = vector.load %arg11[%c4_286, %c0_287] : memref<9x32xf32, #tpu.memory_space<vmem>>, vector<5x32xf32>
    %c0_288 = arith.constant 0 : index
    %c0_289 = arith.constant 0 : index
    %745 = vector.load %arg11[%c0_288, %c0_289] : memref<9x32xf32, #tpu.memory_space<vmem>>, vector<5x32xf32>
    %746 = arith.subf %744, %745 : vector<5x32xf32>
    %c21 = arith.constant 21 : index
    %c0_290 = arith.constant 0 : index
    %747 = vector.load %arg8[%c21, %c0_290] : memref<36x32xf32, #tpu.memory_space<vmem>>, vector<5x32xf32>
    tpu.vector_store %arg8[%c21, %c0_290], %746 {strides = array<i32>} : memref<36x32xf32, #tpu.memory_space<vmem>>, vector<5x32xf32>,
    %c5_291 = arith.constant 5 : index
    %c0_292 = arith.constant 0 : index
    %748 = vector.load %arg11[%c5_291, %c0_292] : memref<9x32xf32, #tpu.memory_space<vmem>>, vector<4x32xf32>
    %c0_293 = arith.constant 0 : index
    %c0_294 = arith.constant 0 : index
    %749 = vector.load %arg11[%c0_293, %c0_294] : memref<9x32xf32, #tpu.memory_space<vmem>>, vector<4x32xf32>
    %750 = arith.subf %748, %749 : vector<4x32xf32>
    %c26 = arith.constant 26 : index
    %c0_295 = arith.constant 0 : index
    %751 = vector.load %arg8[%c26, %c0_295] : memref<36x32xf32, #tpu.memory_space<vmem>>, vector<4x32xf32>
    tpu.vector_store %arg8[%c26, %c0_295], %750 {strides = array<i32>} : memref<36x32xf32, #tpu.memory_space<vmem>>, vector<4x32xf32>,
    %c6_296 = arith.constant 6 : index
    %c0_297 = arith.constant 0 : index
    %752 = vector.load %arg11[%c6_296, %c0_297] : memref<9x32xf32, #tpu.memory_space<vmem>>, vector<3x32xf32>
    %c0_298 = arith.constant 0 : index
    %c0_299 = arith.constant 0 : index
    %753 = vector.load %arg11[%c0_298, %c0_299] : memref<9x32xf32, #tpu.memory_space<vmem>>, vector<3x32xf32>
    %754 = arith.subf %752, %753 : vector<3x32xf32>
    %c30 = arith.constant 30 : index
    %c0_300 = arith.constant 0 : index
    %755 = vector.load %arg8[%c30, %c0_300] : memref<36x32xf32, #tpu.memory_space<vmem>>, vector<3x32xf32>
    tpu.vector_store %arg8[%c30, %c0_300], %754 {strides = array<i32>} : memref<36x32xf32, #tpu.memory_space<vmem>>, vector<3x32xf32>,
    %c7_301 = arith.constant 7 : index
    %c0_302 = arith.constant 0 : index
    %756 = vector.load %arg11[%c7_301, %c0_302] : memref<9x32xf32, #tpu.memory_space<vmem>>, vector<2x32xf32>
    %c0_303 = arith.constant 0 : index
    %c0_304 = arith.constant 0 : index
    %757 = vector.load %arg11[%c0_303, %c0_304] : memref<9x32xf32, #tpu.memory_space<vmem>>, vector<2x32xf32>
    %758 = arith.subf %756, %757 : vector<2x32xf32>
    %c33 = arith.constant 33 : index
    %c0_305 = arith.constant 0 : index
    %759 = vector.load %arg8[%c33, %c0_305] : memref<36x32xf32, #tpu.memory_space<vmem>>, vector<2x32xf32>
    tpu.vector_store %arg8[%c33, %c0_305], %758 {strides = array<i32>} : memref<36x32xf32, #tpu.memory_space<vmem>>, vector<2x32xf32>,
    %c8_306 = arith.constant 8 : index
    %c0_307 = arith.constant 0 : index
    %760 = vector.load %arg11[%c8_306, %c0_307] : memref<9x32xf32, #tpu.memory_space<vmem>>, vector<1x32xf32>
    %c0_308 = arith.constant 0 : index
    %c0_309 = arith.constant 0 : index
    %761 = vector.load %arg11[%c0_308, %c0_309] : memref<9x32xf32, #tpu.memory_space<vmem>>, vector<1x32xf32>
    %762 = arith.subf %760, %761 : vector<1x32xf32>
    %c35 = arith.constant 35 : index
    %c0_310 = arith.constant 0 : index
    %763 = vector.load %arg8[%c35, %c0_310] : memref<36x32xf32, #tpu.memory_space<vmem>>, vector<1x32xf32>
    tpu.vector_store %arg8[%c35, %c0_310], %762 {strides = array<i32>} : memref<36x32xf32, #tpu.memory_space<vmem>>, vector<1x32xf32>,
    return
  }
  func.func @transform_0(%arg0: i32) -> (i32, i32) {
    %c0_i32 = arith.constant 0 : i32
    %c0_i32_0 = arith.constant 0 : i32
    %c0_i32_1 = arith.constant 0 : i32
    return %c0_i32, %c0_i32_0 : i32, i32
  }
  func.func @transform_1(%arg0: i32) -> (i32, i32) {
    %c0_i32 = arith.constant 0 : i32
    %c0_i32_0 = arith.constant 0 : i32
    %c0_i32_1 = arith.constant 0 : i32
    return %c0_i32, %c0_i32_0 : i32, i32
  }
  func.func @transform_2(%arg0: i32) -> (i32, i32) {
    %c0_i32 = arith.constant 0 : i32
    %c0_i32_0 = arith.constant 0 : i32
    %c0_i32_1 = arith.constant 0 : i32
    return %c0_i32, %c0_i32_0 : i32, i32
  }
  func.func @transform_3(%arg0: i32) -> (i32, i32) {
    %c0_i32 = arith.constant 0 : i32
    %c0_i32_0 = arith.constant 0 : i32
    %c0_i32_1 = arith.constant 0 : i32
    return %c0_i32, %c0_i32_0 : i32, i32
  }
  func.func @transform_4(%arg0: i32) -> (i32, i32) {
    %c0_i32 = arith.constant 0 : i32
    %c0_i32_0 = arith.constant 0 : i32
    %c0_i32_1 = arith.constant 0 : i32
    return %c0_i32, %c0_i32_0 : i32, i32
  }
  func.func @transform_5(%arg0: i32) -> (i32, i32) {
    %c0_i32 = arith.constant 0 : i32
    %c0_i32_0 = arith.constant 0 : i32
    %c0_i32_1 = arith.constant 0 : i32
    return %c0_i32, %c0_i32_0 : i32, i32
  }
  func.func @transform_6(%arg0: i32) -> (i32, i32) {
    %c0_i32 = arith.constant 0 : i32
    %c0_i32_0 = arith.constant 0 : i32
    %c0_i32_1 = arith.constant 0 : i32
    return %c0_i32, %c0_i32_0 : i32, i32
  }
  func.func @transform_7(%arg0: i32) -> (i32, i32) {
    %c0_i32 = arith.constant 0 : i32
    %c0_i32_0 = arith.constant 0 : i32
    %c0_i32_1 = arith.constant 0 : i32
    return %c0_i32, %c0_i32_0 : i32, i32
  }
}

</mosaic_0001>

<bundles_post_ra>
// kernel: tpu_custom_call.1
= control target key start
LH: loop header
LB: loop body
LE: loop exit
PB: predicated region body
PF: predicated region fallthrough
CT: control target
= control target key end

     0   :  { %12 = vsyncpa [#allocation6], 0  ;;  %s3789_s0 = inlined_call_operand.hbm [shape: f32[8,32], index: 0, kind: input, shape index: {}]   ;;  %s3790_s1 = inlined_call_operand.hbm [shape: f32[32,128], index: 1, kind: input, shape index: {}]   ;;  %s3791_s2 = inlined_call_operand.hbm [shape: f32[32,128], index: 2, kind: input, shape index: {}]   ;;  %s3792_s3 = inlined_call_operand.vmem [shape: f32[1,128], index: 3, kind: input, shape index: {}]   ;;  %s3793_s4 = inlined_call_operand.hbm [shape: f32[32,128], index: 4, kind: input, shape index: {}]   ;;  %s3794_s5 = inlined_call_operand.hbm [shape: f32[32,128], index: 5, kind: input, shape index: {}]   ;;  %s3795_s6 = inlined_call_operand.vmem [shape: f32[1,128], index: 6, kind: input, shape index: {}]   ;;  %s3796_s7 = inlined_call_operand.vmem [shape: f32[36,32], index: 7, kind: output, shape index: {}]  }
   0x1   :  { %13 = vsyncpa [#allocation8], 0 }
   0x2   :  { %14 = vsyncpa [#allocation11], 0  ;;  %s3297_s24 = smov [#allocation7]   ;;  %s3181_s28 = scalar_lea.hbm %s3790_s1, 512 }
   0x3   :  { %s30_s25 = sshll.u32 %s3297_s24, 4  ;;  %p3182_p0 = scmp.ne.s32.totalorder %s3790_s1, %s3181_s28  ;;  %s31_s25 = int_to_ptr.vmem [resolvable:$true] %s30_s25 }
   0x4   :  { %p3185_p1 = scmp.lt.u32.totalorder %s3181_s28, %s3790_s1 }
   0x6   :  { %p3187_p2 = pnand %p3185_p1, %p3182_p0 }
   0x8   :  { %3190 = shalt.err (!%p3187_p2)
}
   0x9   :  { %s3191_s10 = scalar_lea.vmem %s31_s25, 512  ;;  %p3196_p4 = scmp.lt.s32.totalorder %s31_s25, %s31_s25 }
   0xa   :  { %p3192_p3 = scmp.ne.s32.totalorder %s31_s25, %s3191_s10  ;;  %p3197_p5 = scmp.lt.s32.totalorder %s3191_s10, %s3191_s10 }
   0xc   :  { %p3198_p6 = por %p3197_p5, %p3196_p4 }
   0xe   :  { %p3199_p7 = pnand %p3198_p6, %p3192_p3 }
  0x10   :  { %3202 = shalt.err (!%p3199_p7)
}
  0x11   :  { %s3298_s11 = smov 128   ;;  %s3299_s12 = smov 8  }
  0x12   :  { %36 = dma.hbm_to_vmem [thread:$0]  %s3790_s1, 512, %s31_s25, [#allocation8], %s3298_s11, %s3298_s11, %s3299_s12  }
  0x13   :  { %s3300_s15 = smov [#allocation10]   ;;  %s3301_s17 = smov [#allocation5]  }
  0x14   :  { %s56_s16 = sshll.u32 %s3300_s15, 4  ;;  %s21_s18 = sshll.u32 %s3301_s17, 4  ;;  %s57_s16 = int_to_ptr.vmem [resolvable:$true] %s56_s16  ;;  %s22_s18 = int_to_ptr.vmem [resolvable:$true] %s21_s18 }
  0x15   :  { %s3203_s21 = scalar_lea.hbm %s3793_s4, 512 }
  0x16   :  { %p3204_p8 = scmp.ne.s32.totalorder %s3793_s4, %s3203_s21  ;;  %p3207_p9 = scmp.lt.u32.totalorder %s3203_s21, %s3793_s4 }
  0x18   :  { %p3209_p10 = pnand %p3207_p9, %p3204_p8 }
  0x1a   :  { %3212 = shalt.err (!%p3209_p10)
}
  0x1b   :  { %s3213_s1 = scalar_lea.vmem %s57_s16, 512  ;;  %p3218_p12 = scmp.lt.s32.totalorder %s57_s16, %s57_s16 }
  0x1c   :  { %p3214_p11 = scmp.ne.s32.totalorder %s57_s16, %s3213_s1  ;;  %p3219_p13 = scmp.lt.s32.totalorder %s3213_s1, %s3213_s1 }
  0x1e   :  { %p3220_p0 = por %p3219_p13, %p3218_p12 }
  0x20   :  { %p3221_p1 = pnand %p3220_p0, %p3214_p11 }
  0x22   :  { %3224 = shalt.err (!%p3221_p1)
}
  0x23   :  { %62 = dma.hbm_to_vmem [thread:$0]  %s3793_s4, 512, %s57_s16, [#allocation11], %s3298_s11, %s3298_s11, %s3299_s12  }
  0x24   :  { %s3225_s30 = scalar_lea.hbm %s3789_s0, 128 }
  0x25   :  { %p3226_p2 = scmp.ne.s32.totalorder %s3789_s0, %s3225_s30  ;;  %p3229_p3 = scmp.lt.u32.totalorder %s3225_s30, %s3789_s0 }
  0x27   :  { %p3231_p4 = pnand %p3229_p3, %p3226_p2 }
  0x29   :  { %3234 = shalt.err (!%p3231_p4)
}
  0x2a   :  { %s3235_s14 = scalar_lea.vmem %s22_s18, 128  ;;  %p3240_p6 = scmp.lt.s32.totalorder %s22_s18, %s22_s18 }
  0x2b   :  { %p3236_p5 = scmp.ne.s32.totalorder %s22_s18, %s3235_s14  ;;  %p3241_p7 = scmp.lt.s32.totalorder %s3235_s14, %s3235_s14 }
  0x2d   :  { %p3242_p8 = por %p3241_p7, %p3240_p6 }
  0x2f   :  { %p3243_p9 = pnand %p3242_p8, %p3236_p5 }
  0x31   :  { %3246 = shalt.err (!%p3243_p9)
}
  0x32   :  { %24 = dma.hbm_to_vmem [thread:$0]  %s3789_s0, 128, %s22_s18, [#allocation6]  }
  0x33   :  { %s3302_s16 = smov [#allocation9]   ;;  %s3303_s19 = smov [#allocation12]  }
  0x34   :  { %s42_s17 = sshll.u32 %s3302_s16, 4  ;;  %s68_s20 = sshll.u32 %s3303_s19, 4  ;;  %s43_s17 = int_to_ptr.vmem [resolvable:$true] %s42_s17  ;;  %s69_s20 = int_to_ptr.vmem [resolvable:$true] %s68_s20 }
  0x35   :  { %s3247_s23 = scalar_lea.hbm %s3791_s2, 512 }
  0x36   :  { %p3248_p10 = scmp.ne.s32.totalorder %s3791_s2, %s3247_s23  ;;  %p3251_p11 = scmp.lt.u32.totalorder %s3247_s23, %s3791_s2 }
  0x38   :  { %p3253_p12 = pnand %p3251_p11, %p3248_p10 }
  0x3a   :  { %3256 = shalt.err (!%p3253_p12)
}
  0x3b   :  { %s3257_s0 = scalar_lea.vmem %s43_s17, 512  ;;  %p3262_p0 = scmp.lt.s32.totalorder %s43_s17, %s43_s17 }
  0x3c   :  { %p3258_p13 = scmp.ne.s32.totalorder %s43_s17, %s3257_s0  ;;  %p3263_p1 = scmp.lt.s32.totalorder %s3257_s0, %s3257_s0 }
  0x3e   :  { %p3264_p2 = por %p3263_p1, %p3262_p0 }
  0x40   :  { %p3265_p3 = pnand %p3264_p2, %p3258_p13 }
  0x42   :  { %3268 = shalt.err (!%p3265_p3)
}
  0x43   :  { %48 = dma.hbm_to_vmem [thread:$0]  %s3791_s2, 512, %s43_s17, [#allocation8], %s3298_s11, %s3298_s11, %s3299_s12  }
  0x44   :  { %s3269_s30 = scalar_lea.hbm %s3794_s5, 512 }
  0x45   :  { %p3270_p4 = scmp.ne.s32.totalorder %s3794_s5, %s3269_s30  ;;  %p3273_p5 = scmp.lt.u32.totalorder %s3269_s30, %s3794_s5 }
  0x47   :  { %p3275_p6 = pnand %p3273_p5, %p3270_p4 }
  0x49   :  { %3278 = shalt.err (!%p3275_p6)
}
  0x4a   :  { %s3279_s14 = scalar_lea.vmem %s69_s20, 512  ;;  %p3284_p8 = scmp.lt.s32.totalorder %s69_s20, %s69_s20 }
  0x4b   :  { %p3280_p7 = scmp.ne.s32.totalorder %s69_s20, %s3279_s14  ;;  %p3285_p9 = scmp.lt.s32.totalorder %s3279_s14, %s3279_s14 }
  0x4d   :  { %p3286_p10 = por %p3285_p9, %p3284_p8 }
  0x4f   :  { %p3287_p11 = pnand %p3286_p10, %p3280_p7 }
  0x51   :  { %3290 = shalt.err (!%p3287_p11)
}
  0x52   :  { %74 = dma.hbm_to_vmem [thread:$0]  %s3794_s5, 512, %s69_s20, [#allocation11], %s3298_s11, %s3298_s11, %s3299_s12  }
  0x53   :  { %3291 = dma.done.wait [#allocation6], 128  }
  0x54   :  { %3292 = vsyncadd [#allocation6], 4294967168 }
  0x55   :  { %3293 = dma.done.wait [#allocation8], 1024  }
  0x56   :  { %3294 = vsyncadd [#allocation8], 4294966272 }
  0x57   :  { %3295 = dma.done.wait [#allocation11], 1024  }
  0x58   :  { %3296 = vsyncadd [#allocation11], 4294966272  ;;  %v3304_v0 = vmov 0.0|0.0   ;;  %vm3305_vm0 = vmmov 0   ;;  %v3306_v1 = vmov 0.0   ;;  %v197_v2 = vld [vmem:[#allocation9] sm:$0xff]  ;;  %v92_v9 = vlaneseq }
  0x59   :  { %2881 = vmatprep.subr.bf16.mxu1 %v3304_v0  ;;  %2652 = vmatprep.mubr.msk.f32.mxu1 %vm3305_vm0, %v3306_v1  ;;  %v198_v3 = vld [vmem:[#allocation9 + $0x8] sm:$0xff]  ;;  %v199_v4 = vld [vmem:[#allocation9 + $0x10] sm:$0xff]  ;;  %v200_v6 = vld [vmem:[#allocation9 + $0x18] sm:$0xff]  ;;  %s3308_s12 = smov 32   ;;  %vm122_vm2 = vcmask 261120   ;;  %vm306_vm3 = vcmask 122880  }
  0x5a   :  { %2875 = vmatprep.subr.bf16.mxu0 %v3304_v0  ;;  %2641 = vmatprep.mubr.msk.f32.mxu0 %vm3305_vm0, %v3306_v1  ;;  %v3427_v5 = vpack.c.bf16 %v198_v3, %v197_v2  ;;  %v3432_v7 = vld [vmem:[%s3792_s3] sm:$0x1]  ;;  %v3437_v8 = vpack.c.bf16 %v200_v6, %v199_v4  ;;  %v3449_v10 = vand.u32 127, %v92_v9  ;;  %s3307_s3 = smov 64   ;;  %v112_v29 = vld [vmem:[#allocation7] sm:$0xff]  ;;  %v114_v31 = vld [vmem:[#allocation7 + $0x10] sm:$0xff] }
  0x5b   :  { %109 = vst [vmem:[#allocation3] sm:$0x1] %v3432_v7  ;;  %110 = vst [vmem:[#allocation3 + $0x9] sm:$0x1] %v3432_v7  ;;  %v113_v30 = vld [vmem:[#allocation7 + $0x8] sm:$0xff]  ;;  %v115_v33 = vld [vmem:[#allocation7 + $0x18] sm:$0xff] }
  0x5c   :  { %2883 = vmatpush3.bf16.msra.mxu1 %v3427_v5  ;;  %v98_v11 = vand.u32 31, %v3449_v10  ;;  %v2876_v32 = vpack.c.bf16 %v113_v30, %v112_v29  ;;  %v2879_v34 = vpack.c.bf16 %v115_v33, %v114_v31  ;;  %v111_v35 = vld [vmem:[#allocation5] sm:$0xff]  ;;  %v118_v39 = vshrl.u32 %v92_v9, 7 }
  0x5d   :  { %2884 = vmatprep.subr.bf16.mxu1 %v3304_v0  ;;  %vm308_vm4 = vcmask 254080   ;;  %vm107_vm5 = vcmp.lt.s32.totalorder %v3449_v10, 16  ;;  %vm2433_vm6 = vcmask 253952   ;;  %vm2442_vm7 = vcmask 260096  }
  0x5e   :  { %vm3452_vm1 = vcmp.lt.s32.totalorder %v98_v11, 16  ;;  %2877 = vmatpush3.bf16.msra.mxu0 %v2876_v32  ;;  %v119_v40 = vsub.s32 0, %v118_v39  ;;  %vm2447_vm8 = vcmask 259072   ;;  %vm2452_vm9 = vcmask 258048  }
  0x5f   :  { %2878 = vmatprep.subr.bf16.mxu0 %v3304_v0  ;;  %vm2457_vm10 = vcmask 257024   ;;  %vm2462_vm11 = vcmask 256000   ;;  %vm2467_vm12 = vcmask 254976  }
  0x60   :  { %2886 = vmatpush3.bf16.msra.mxu1 %v3437_v8  ;;  %v120_v41 = vrot.slane %v3432_v7, %v119_v40 }
  0x61   :  { %2893 = vmatprep.subr.bf16.mxu1 %v3304_v0 }
  0x62   :  { %v201_v13 = vld [vmem:[#allocation3] sm:$0x1]  ;;  %v202_v14 = vld [vmem:[#allocation3 + $0x9] sm:$0x1]  ;;  %2880 = vmatpush3.bf16.msra.mxu0 %v2879_v34 }
  0x63   :  { %2653 = vmatmul.mubr.f32.vlgmr.msra.gmra.mrb[0].mxu1 %v3306_v1  ;;  %v203_v15 = vsel %vm3452_vm1, %v201_v13, %v202_v14  ;;  %2887 = vmatprep.subr.bf16.mxu0 %v3304_v0 }
  0x64   :  { %2895 = vmatpush3.bf16.msra.mxu1 %v3427_v5  ;;  %2674 = vmatprep.mubr.msk.f32.mxu1 %vm3305_vm0, %v3306_v1 }
  0x65   :  { %2896 = vmatprep.subr.bf16.mxu1 %v3304_v0  ;;  %2642 = vmatmul.mubr.msk.f32.vlgmr.msra.gmra.mrb[0].mxu0 %vm122_vm2, %v111_v35 }
  0x66   :  { %2889 = vmatpush3.bf16.msra.mxu0 %v3427_v5  ;;  %2663 = vmatprep.mubr.msk.f32.mxu0 %vm3305_vm0, %v3306_v1 }
  0x67   :  { %2890 = vmatprep.subr.bf16.mxu0 %v3304_v0 }
  0x68   :  { %2898 = vmatpush3.bf16.msra.mxu1 %v3437_v8 }
  0x69   :  { %2905 = vmatprep.subr.bf16.mxu1 %v3304_v0 }
  0x6a   :  { %2892 = vmatpush3.bf16.msra.mxu0 %v3437_v8 }
  0x6b   :  { %2899 = vmatprep.subr.bf16.mxu0 %v3304_v0 }
 0x136   :  { %v273_v16 = vpop.f32.mrb[0].mxu1 }
 0x137   :  { %v277_v17 = vadd.f32 %v273_v16, %v203_v15  ;;  %v2654_v18 = vpop.f32.mrb[1].mxu1 }
 0x138   :  { %v192_v42 = vpop.f32.mrb[0].mxu0 }
 0x139   :  { %3021 = vtanh.f32 %v277_v17  ;;  %v2481_v20 = vmul.f32 -1.442695, %v277_v17  ;;  %v193_v43 = vadd.f32 %v192_v42, %v120_v41  ;;  %v2643_v44 = vpop.f32.mrb[1].mxu0 }
 0x13b   :  { %3023 = vpow2.f32 %v2481_v20  ;;  %196 = vst [vmem:[#allocation3 + $0x1] sm:$0xff] %v193_v43 }
 0x142   :  { %v310_v46 = vld [vmem:[#allocation3 + $0x1] sm:$0x1]  ;;  %v311_v47 = vld [vmem:[#allocation3 + $0x8] sm:$0x1]  ;;  %v416_v4 = vld [vmem:[#allocation3 + $0x2] sm:$0x1] }
 0x143   :  { %v3022_v19 = vpop.eup %3021  ;;  %v312_v48 = vsel %vm3452_vm1, %v310_v46, %v311_v47  ;;  %v417_v6 = vld [vmem:[#allocation3 + $0x7] sm:$0x1]  ;;  %v523_v29 = vld [vmem:[#allocation3 + $0x6] sm:$0x1] }
 0x144   :  { %287 = vrot.lane.b32.xlu0 %v3022_v19, %s3307_s3  ;;  %v418_v7 = vsel %vm3452_vm1, %v416_v4, %v417_v6 }
 0x145   :  { %v3024_v21 = vpop.eup %3023 }
 0x146   :  { %v281_v22 = vadd.f32 1.0, %v3024_v21 }
 0x148   :  { %3025 = vrcp.f32 %v281_v22 }
 0x152   :  { %v3026_v23 = vpop.eup %3025 }
 0x153   :  { %v285_v26 = vmul.f32 0.0, %v3026_v23 }
 0x1b6   :  { %v288_v24 = vpop.permute.xlu0 %287 }
 0x1b7   :  { %v290_v25 = vmul.f32 %v3026_v23, %v288_v24 }
 0x1b9   :  { %292 = vrot.lane.b32.xlu0 %v290_v25, %s3308_s12 }
 0x22b   :  { %v293_v27 = vpop.permute.xlu0 %292 }
 0x22c   :  { %v295_v28 = vadd.f32 %v293_v27, %v285_v26 }
 0x22e   :  { %3027 = vtanh.f32 %v295_v28 }
 0x238   :  { %v3028_v36 = vpop.eup %3027 }
 0x239   :  { %298 = vrot.lane.b32.xlu1 %v3028_v36, %s3307_s3 }
 0x2ab   :  { %v299_v37 = vpop.permute.xlu1 %298 }
 0x2ac   :  { %v301_v38 = vmul.f32 %v3026_v23, %v299_v37 }
 0x2ae   :  { %303 = vrot.lane.b32.xlu1 %v301_v38, %s3308_s12 }
 0x320   :  { %v304_v45 = vpop.permute.xlu1 %303 }
 0x321   :  { %307 = vst.msk [vmem:[#allocation2] sm:$0x1] %vm306_vm3, %v304_v45  ;;  %2664 = vmatmul.mubr.msk.f32.vlgmr.msra.gmra.mrb[2].mxu0 %vm122_vm2, %v304_v45 }
 0x322   :  { %309 = vst.msk [vmem:[#allocation2 + $0x9] sm:$0x1] %vm308_vm4, %v304_v45  ;;  %2901 = vmatpush3.bf16.msra.mxu0 %v3427_v5  ;;  %2685 = vmatprep.mubr.msk.f32.mxu0 %vm3305_vm0, %v3306_v1 }
 0x323   :  { %2902 = vmatprep.subr.bf16.mxu0 %v3304_v0 }
 0x326   :  { %2904 = vmatpush3.bf16.msra.mxu0 %v3437_v8 }
 0x327   :  { %2911 = vmatprep.subr.bf16.mxu0 %v3304_v0 }
 0x3f4   :  { %v381_v49 = vpop.f32.mrb[2].mxu0 }
 0x3f5   :  { %v385_v50 = vadd.f32 %v381_v49, %v312_v48  ;;  %v2665_v51 = vpop.f32.mrb[3].mxu0  ;;  %v628_v48 = vld [vmem:[#allocation3 + $0x4] sm:$0x1]  ;;  %v629_v49 = vld [vmem:[#allocation3 + $0x5] sm:$0x1] }
 0x3f7   :  { %3029 = vtanh.f32 %v385_v50  ;;  %v2483_v53 = vmul.f32 -1.442695, %v385_v50  ;;  %v630_v50 = vsel %vm3452_vm1, %v628_v48, %v629_v49 }
 0x3f9   :  { %3031 = vpow2.f32 %v2483_v53 }
 0x401   :  { %v3030_v52 = vpop.eup %3029 }
 0x402   :  { %395 = vrot.lane.b32.xlu0 %v3030_v52, %s3307_s3 }
 0x403   :  { %v3032_v54 = vpop.eup %3031 }
 0x404   :  { %v389_v55 = vadd.f32 1.0, %v3032_v54 }
 0x406   :  { %3033 = vrcp.f32 %v389_v55 }
 0x410   :  { %v3034_v56 = vpop.eup %3033 }
 0x411   :  { %v393_v59 = vmul.f32 %v3034_v56, %v295_v28  ;;  %v522_v28 = vld [vmem:[#allocation3 + $0x3] sm:$0x1] }
 0x412   :  { %v524_v30 = vsel %vm3452_vm1, %v522_v28, %v523_v29 }
 0x474   :  { %v396_v57 = vpop.permute.xlu0 %395 }
 0x475   :  { %v398_v58 = vmul.f32 %v3034_v56, %v396_v57 }
 0x477   :  { %400 = vrot.lane.b32.xlu1 %v398_v58, %s3308_s12 }
 0x4e9   :  { %v401_v60 = vpop.permute.xlu1 %400 }
 0x4ea   :  { %v403_v61 = vadd.f32 %v401_v60, %v393_v59 }
 0x4ec   :  { %3035 = vtanh.f32 %v403_v61 }
 0x4f6   :  { %v3036_v62 = vpop.eup %3035 }
 0x4f7   :  { %406 = vrot.lane.b32.xlu0 %v3036_v62, %s3307_s3 }
 0x569   :  { %v407_v63 = vpop.permute.xlu0 %406 }
 0x56a   :  { %v409_v2 = vmul.f32 %v3034_v56, %v407_v63 }
 0x56c   :  { %411 = vrot.lane.b32.xlu1 %v409_v2, %s3308_s12 }
 0x5de   :  { %v412_v3 = vpop.permute.xlu1 %411 }
 0x5df   :  { %414 = vst.msk [vmem:[#allocation2 + $0x1] sm:$0x1] %vm306_vm3, %v412_v3  ;;  %2675 = vmatmul.mubr.msk.f32.vlgmr.msra.gmra.mrb[2].mxu1 %vm122_vm2, %v412_v3 }
 0x5e0   :  { %415 = vst.msk [vmem:[#allocation2 + $0x8] sm:$0x1] %vm308_vm4, %v412_v3  ;;  %2907 = vmatpush3.bf16.msra.mxu1 %v3427_v5  ;;  %2696 = vmatprep.mubr.msk.f32.mxu1 %vm3305_vm0, %v3306_v1 }
 0x5e1   :  { %2908 = vmatprep.subr.bf16.mxu1 %v3304_v0 }
 0x5e4   :  { %2910 = vmatpush3.bf16.msra.mxu1 %v3437_v8 }
 0x5e5   :  { %2917 = vmatprep.subr.bf16.mxu1 %v3304_v0 }
 0x6b2   :  { %v487_v9 = vpop.f32.mrb[2].mxu1 }
 0x6b3   :  { %v491_v11 = vadd.f32 %v487_v9, %v418_v7  ;;  %v2676_v13 = vpop.f32.mrb[3].mxu1  ;;  %v734_v7 = vld [vmem:[#allocation3 + $0x5] sm:$0x1]  ;;  %v735_v9 = vld [vmem:[#allocation3 + $0x4] sm:$0x1] }
 0x6b5   :  { %3037 = vtanh.f32 %v491_v11  ;;  %v2485_v15 = vmul.f32 -1.442695, %v491_v11  ;;  %v736_v11 = vsel %vm3452_vm1, %v734_v7, %v735_v9  ;;  %v1052_v7 = vld [vmem:[#allocation3 + $0x8] sm:$0x1]  ;;  %v1053_v9 = vld [vmem:[#allocation3 + $0x1] sm:$0x1] }
 0x6b7   :  { %3039 = vpow2.f32 %v2485_v15 }
 0x6bf   :  { %v3038_v14 = vpop.eup %3037 }
 0x6c0   :  { %501 = vrot.lane.b32.xlu0 %v3038_v14, %s3307_s3 }
 0x6c1   :  { %v3040_v16 = vpop.eup %3039 }
 0x6c2   :  { %v495_v17 = vadd.f32 1.0, %v3040_v16 }
 0x6c4   :  { %3041 = vrcp.f32 %v495_v17 }
 0x6ce   :  { %v3042_v18 = vpop.eup %3041 }
 0x6cf   :  { %v499_v21 = vmul.f32 %v3042_v18, %v403_v61 }
 0x732   :  { %v502_v19 = vpop.permute.xlu0 %501 }
 0x733   :  { %v504_v20 = vmul.f32 %v3042_v18, %v502_v19 }
 0x735   :  { %506 = vrot.lane.b32.xlu1 %v504_v20, %s3308_s12 }
 0x7a7   :  { %v507_v22 = vpop.permute.xlu1 %506 }
 0x7a8   :  { %v509_v23 = vadd.f32 %v507_v22, %v499_v21 }
 0x7aa   :  { %3043 = vtanh.f32 %v509_v23 }
 0x7b4   :  { %v3044_v24 = vpop.eup %3043 }
 0x7b5   :  { %512 = vrot.lane.b32.xlu0 %v3044_v24, %s3307_s3 }
 0x827   :  { %v513_v25 = vpop.permute.xlu0 %512 }
 0x828   :  { %v515_v26 = vmul.f32 %v3042_v18, %v513_v25 }
 0x82a   :  { %517 = vrot.lane.b32.xlu1 %v515_v26, %s3308_s12 }
 0x89c   :  { %v518_v27 = vpop.permute.xlu1 %517 }
 0x89d   :  { %520 = vst.msk [vmem:[#allocation2 + $0x2] sm:$0x1] %vm306_vm3, %v518_v27  ;;  %2686 = vmatmul.mubr.msk.f32.vlgmr.msra.gmra.mrb[4].mxu0 %vm122_vm2, %v518_v27 }
 0x89e   :  { %521 = vst.msk [vmem:[#allocation2 + $0x7] sm:$0x1] %vm308_vm4, %v518_v27  ;;  %2913 = vmatpush3.bf16.msra.mxu0 %v3427_v5  ;;  %2707 = vmatprep.mubr.msk.f32.mxu0 %vm3305_vm0, %v3306_v1 }
 0x89f   :  { %2914 = vmatprep.subr.bf16.mxu0 %v3304_v0 }
 0x8a2   :  { %2916 = vmatpush3.bf16.msra.mxu0 %v3437_v8 }
 0x8a3   :  { %2923 = vmatprep.subr.bf16.mxu0 %v3304_v0 }
 0x970   :  { %v593_v31 = vpop.f32.mrb[4].mxu0 }
 0x971   :  { %v597_v32 = vadd.f32 %v593_v31, %v524_v30  ;;  %v2687_v33 = vpop.f32.mrb[5].mxu0  ;;  %v840_v30 = vld [vmem:[#allocation3 + $0x6] sm:$0x1]  ;;  %v841_v31 = vld [vmem:[#allocation3 + $0x3] sm:$0x1] }
 0x973   :  { %3045 = vtanh.f32 %v597_v32  ;;  %v2487_v35 = vmul.f32 -1.442695, %v597_v32  ;;  %v842_v32 = vsel %vm3452_vm1, %v840_v30, %v841_v31  ;;  %v1158_v30 = vld [vmem:[#allocation3 + $0x9] sm:$0x1]  ;;  %v1159_v31 = vld [vmem:[#allocation3] sm:$0x1] }
 0x975   :  { %3047 = vpow2.f32 %v2487_v35 }
 0x97d   :  { %v3046_v34 = vpop.eup %3045 }
 0x97e   :  { %607 = vrot.lane.b32.xlu0 %v3046_v34, %s3307_s3 }
 0x97f   :  { %v3048_v36 = vpop.eup %3047 }
 0x980   :  { %v601_v37 = vadd.f32 1.0, %v3048_v36 }
 0x982   :  { %3049 = vrcp.f32 %v601_v37 }
 0x98c   :  { %v3050_v38 = vpop.eup %3049 }
 0x98d   :  { %v605_v41 = vmul.f32 %v3050_v38, %v509_v23 }
 0x9f0   :  { %v608_v39 = vpop.permute.xlu0 %607 }
 0x9f1   :  { %v610_v40 = vmul.f32 %v3050_v38, %v608_v39 }
 0x9f3   :  { %612 = vrot.lane.b32.xlu1 %v610_v40, %s3308_s12 }
 0xa65   :  { %v613_v42 = vpop.permute.xlu1 %612 }
 0xa66   :  { %v615_v43 = vadd.f32 %v613_v42, %v605_v41 }
 0xa68   :  { %3051 = vtanh.f32 %v615_v43 }
 0xa72   :  { %v3052_v44 = vpop.eup %3051 }
 0xa73   :  { %618 = vrot.lane.b32.xlu0 %v3052_v44, %s3307_s3 }
 0xae5   :  { %v619_v45 = vpop.permute.xlu0 %618 }
 0xae6   :  { %v621_v46 = vmul.f32 %v3050_v38, %v619_v45 }
 0xae8   :  { %623 = vrot.lane.b32.xlu1 %v621_v46, %s3308_s12 }
 0xb5a   :  { %v624_v47 = vpop.permute.xlu1 %623 }
 0xb5b   :  { %626 = vst.msk [vmem:[#allocation2 + $0x3] sm:$0x1] %vm306_vm3, %v624_v47  ;;  %2697 = vmatmul.mubr.msk.f32.vlgmr.msra.gmra.mrb[4].mxu1 %vm122_vm2, %v624_v47 }
 0xb5c   :  { %627 = vst.msk [vmem:[#allocation2 + $0x6] sm:$0x1] %vm308_vm4, %v624_v47  ;;  %2919 = vmatpush3.bf16.msra.mxu1 %v3427_v5  ;;  %2718 = vmatprep.mubr.msk.f32.mxu1 %vm3305_vm0, %v3306_v1 }
 0xb5d   :  { %2920 = vmatprep.subr.bf16.mxu1 %v3304_v0 }
 0xb60   :  { %2922 = vmatpush3.bf16.msra.mxu1 %v3437_v8 }
 0xb61   :  { %2929 = vmatprep.subr.bf16.mxu1 %v3304_v0 }
 0xc2e   :  { %v699_v51 = vpop.f32.mrb[4].mxu1 }
 0xc2f   :  { %v703_v52 = vadd.f32 %v699_v51, %v630_v50  ;;  %v2698_v53 = vpop.f32.mrb[5].mxu1  ;;  %v946_v50 = vld [vmem:[#allocation3 + $0x7] sm:$0x1]  ;;  %v947_v51 = vld [vmem:[#allocation3 + $0x2] sm:$0x1] }
 0xc31   :  { %3053 = vtanh.f32 %v703_v52  ;;  %v2489_v55 = vmul.f32 -1.442695, %v703_v52  ;;  %v948_v52 = vsel %vm3452_vm1, %v946_v50, %v947_v51  ;;  %v1269_v50 = vld [vmem:[#allocation10 + $0x10] sm:$0xff]  ;;  %v1270_v51 = vld [vmem:[#allocation10 + $0x18] sm:$0xff] }
 0xc33   :  { %3055 = vpow2.f32 %v2489_v55 }
 0xc3b   :  { %v3054_v54 = vpop.eup %3053 }
 0xc3c   :  { %713 = vrot.lane.b32.xlu0 %v3054_v54, %s3307_s3 }
 0xc3d   :  { %v3056_v56 = vpop.eup %3055 }
 0xc3e   :  { %v707_v57 = vadd.f32 1.0, %v3056_v56 }
 0xc40   :  { %3057 = vrcp.f32 %v707_v57 }
 0xc4a   :  { %v3058_v58 = vpop.eup %3057 }
 0xc4b   :  { %v711_v61 = vmul.f32 %v3058_v58, %v615_v43 }
 0xcae   :  { %v714_v59 = vpop.permute.xlu0 %713 }
 0xcaf   :  { %v716_v60 = vmul.f32 %v3058_v58, %v714_v59 }
 0xcb1   :  { %718 = vrot.lane.b32.xlu1 %v716_v60, %s3308_s12 }
 0xd23   :  { %v719_v62 = vpop.permute.xlu1 %718 }
 0xd24   :  { %v721_v63 = vadd.f32 %v719_v62, %v711_v61 }
 0xd26   :  { %3059 = vtanh.f32 %v721_v63 }
 0xd30   :  { %v3060_v2 = vpop.eup %3059 }
 0xd31   :  { %724 = vrot.lane.b32.xlu0 %v3060_v2, %s3307_s3 }
 0xda3   :  { %v725_v3 = vpop.permute.xlu0 %724 }
 0xda4   :  { %v727_v4 = vmul.f32 %v3058_v58, %v725_v3 }
 0xda6   :  { %729 = vrot.lane.b32.xlu1 %v727_v4, %s3308_s12 }
 0xe18   :  { %v730_v6 = vpop.permute.xlu1 %729 }
 0xe19   :  { %732 = vst.msk [vmem:[#allocation2 + $0x4] sm:$0x1] %vm306_vm3, %v730_v6  ;;  %2708 = vmatmul.mubr.msk.f32.vlgmr.msra.gmra.mrb[6].mxu0 %vm122_vm2, %v730_v6 }
 0xe1a   :  { %733 = vst.msk [vmem:[#allocation2 + $0x5] sm:$0x1] %vm308_vm4, %v730_v6  ;;  %2925 = vmatpush3.bf16.msra.mxu0 %v3427_v5  ;;  %2729 = vmatprep.mubr.msk.f32.mxu0 %vm3305_vm0, %v3306_v1 }
 0xe1b   :  { %2926 = vmatprep.subr.bf16.mxu0 %v3304_v0 }
 0xe1e   :  { %2928 = vmatpush3.bf16.msra.mxu0 %v3437_v8 }
 0xe1f   :  { %2935 = vmatprep.subr.bf16.mxu0 %v3304_v0 }
 0xeec   :  { %v805_v13 = vpop.f32.mrb[6].mxu0 }
 0xeed   :  { %v809_v14 = vadd.f32 %v805_v13, %v736_v11  ;;  %v2709_v15 = vpop.f32.mrb[7].mxu0  ;;  %v1054_v11 = vsel %vm3452_vm1, %v1052_v7, %v1053_v9 }
 0xeef   :  { %3061 = vtanh.f32 %v809_v14  ;;  %v2491_v17 = vmul.f32 -1.442695, %v809_v14 }
 0xef1   :  { %3063 = vpow2.f32 %v2491_v17 }
 0xef9   :  { %v3062_v16 = vpop.eup %3061 }
 0xefa   :  { %819 = vrot.lane.b32.xlu0 %v3062_v16, %s3307_s3 }
 0xefb   :  { %v3064_v18 = vpop.eup %3063 }
 0xefc   :  { %v813_v19 = vadd.f32 1.0, %v3064_v18 }
 0xefe   :  { %3065 = vrcp.f32 %v813_v19 }
 0xf08   :  { %v3066_v20 = vpop.eup %3065 }
 0xf09   :  { %v817_v23 = vmul.f32 %v3066_v20, %v721_v63 }
 0xf6c   :  { %v820_v21 = vpop.permute.xlu0 %819 }
 0xf6d   :  { %v822_v22 = vmul.f32 %v3066_v20, %v820_v21 }
 0xf6f   :  { %824 = vrot.lane.b32.xlu1 %v822_v22, %s3308_s12 }
 0xfe1   :  { %v825_v24 = vpop.permute.xlu1 %824 }
 0xfe2   :  { %v827_v25 = vadd.f32 %v825_v24, %v817_v23 }
 0xfe4   :  { %3067 = vtanh.f32 %v827_v25 }
 0xfee   :  { %v3068_v26 = vpop.eup %3067 }
 0xfef   :  { %830 = vrot.lane.b32.xlu0 %v3068_v26, %s3307_s3 }
0x1061   :  { %v831_v27 = vpop.permute.xlu0 %830 }
0x1062   :  { %v833_v28 = vmul.f32 %v3066_v20, %v831_v27 }
0x1064   :  { %835 = vrot.lane.b32.xlu1 %v833_v28, %s3308_s12 }
0x10d6   :  { %v836_v29 = vpop.permute.xlu1 %835 }
0x10d7   :  { %838 = vst.msk [vmem:[#allocation2 + $0x5] sm:$0x1] %vm306_vm3, %v836_v29  ;;  %2719 = vmatmul.mubr.msk.f32.vlgmr.msra.gmra.mrb[6].mxu1 %vm122_vm2, %v836_v29 }
0x10d8   :  { %839 = vst.msk [vmem:[#allocation2 + $0x4] sm:$0x1] %vm308_vm4, %v836_v29  ;;  %2931 = vmatpush3.bf16.msra.mxu1 %v3427_v5  ;;  %2740 = vmatprep.mubr.msk.f32.mxu1 %vm3305_vm0, %v3306_v1 }
0x10d9   :  { %2932 = vmatprep.subr.bf16.mxu1 %v3304_v0 }
0x10dc   :  { %2934 = vmatpush3.bf16.msra.mxu1 %v3437_v8 }
0x11aa   :  { %v911_v33 = vpop.f32.mrb[6].mxu1 }
0x11ab   :  { %v915_v34 = vadd.f32 %v911_v33, %v842_v32  ;;  %v2720_v35 = vpop.f32.mrb[7].mxu1  ;;  %v1160_v32 = vsel %vm3452_vm1, %v1158_v30, %v1159_v31 }
0x11ad   :  { %3069 = vtanh.f32 %v915_v34  ;;  %v2493_v37 = vmul.f32 -1.442695, %v915_v34 }
0x11af   :  { %3071 = vpow2.f32 %v2493_v37 }
0x11b7   :  { %v3070_v36 = vpop.eup %3069 }
0x11b8   :  { %925 = vrot.lane.b32.xlu0 %v3070_v36, %s3307_s3 }
0x11b9   :  { %v3072_v38 = vpop.eup %3071 }
0x11ba   :  { %v919_v39 = vadd.f32 1.0, %v3072_v38 }
0x11bc   :  { %3073 = vrcp.f32 %v919_v39 }
0x11c6   :  { %v3074_v40 = vpop.eup %3073 }
0x11c7   :  { %v923_v43 = vmul.f32 %v3074_v40, %v827_v25 }
0x122a   :  { %v926_v41 = vpop.permute.xlu0 %925 }
0x122b   :  { %v928_v42 = vmul.f32 %v3074_v40, %v926_v41 }
0x122d   :  { %930 = vrot.lane.b32.xlu1 %v928_v42, %s3308_s12 }
0x129f   :  { %v931_v44 = vpop.permute.xlu1 %930 }
0x12a0   :  { %v933_v45 = vadd.f32 %v931_v44, %v923_v43 }
0x12a2   :  { %3075 = vtanh.f32 %v933_v45 }
0x12ac   :  { %v3076_v46 = vpop.eup %3075 }
0x12ad   :  { %936 = vrot.lane.b32.xlu0 %v3076_v46, %s3307_s3 }
0x131f   :  { %v937_v47 = vpop.permute.xlu0 %936 }
0x1320   :  { %v939_v48 = vmul.f32 %v3074_v40, %v937_v47  ;;  %v1267_v47 = vld [vmem:[#allocation10] sm:$0xff] }
0x1322   :  { %941 = vrot.lane.b32.xlu1 %v939_v48, %s3308_s12  ;;  %v1268_v48 = vld [vmem:[#allocation10 + $0x8] sm:$0xff] }
0x1394   :  { %v942_v49 = vpop.permute.xlu1 %941 }
0x1395   :  { %944 = vst.msk [vmem:[#allocation2 + $0x6] sm:$0x1] %vm306_vm3, %v942_v49  ;;  %2730 = vmatmul.mubr.msk.f32.vlgmr.msra.gmra.mrb[8].mxu0 %vm122_vm2, %v942_v49 }
0x1396   :  { %945 = vst.msk [vmem:[#allocation2 + $0x3] sm:$0x1] %vm308_vm4, %v942_v49  ;;  %2937 = vmatpush3.bf16.msra.mxu0 %v3427_v5  ;;  %2751 = vmatprep.mubr.msk.f32.mxu0 %vm3305_vm0, %v3306_v1  ;;  %v2941_v49 = vpack.c.bf16 %v1268_v48, %v1267_v47 }
0x1397   :  { %2938 = vmatprep.subr.bf16.mxu0 %v3304_v0 }
0x1398   :  { %2942 = vmatprep.subr.bf16.mxu1 %v2941_v49 }
0x139a   :  { %2940 = vmatpush3.bf16.msra.mxu0 %v3437_v8 }
0x139b   :  { %2949 = vmatprep.subr.bf16.mxu0 %v3304_v0 }
0x1468   :  { %v1017_v53 = vpop.f32.mrb[8].mxu0 }
0x1469   :  { %v1021_v54 = vadd.f32 %v1017_v53, %v948_v52  ;;  %v2731_v55 = vpop.f32.mrb[9].mxu0  ;;  %v2945_v52 = vpack.c.bf16 %v1270_v51, %v1269_v50  ;;  %v1360_v53 = vld [vmem:[#allocation12] sm:$0xff] }
0x146a   :  { %v1362_v55 = vld [vmem:[#allocation12 + $0x10] sm:$0xff] }
0x146b   :  { %3077 = vtanh.f32 %v1021_v54  ;;  %v2495_v5 = vmul.f32 -1.442695, %v1021_v54  ;;  %v1361_v54 = vld [vmem:[#allocation12 + $0x8] sm:$0xff] }
0x146d   :  { %3079 = vpow2.f32 %v2495_v5  ;;  %v3596_v5 = vpack.c.bf16 %v1361_v54, %v1360_v53 }
0x1475   :  { %v3078_v56 = vpop.eup %3077 }
0x1476   :  { %1031 = vrot.lane.b32.xlu0 %v3078_v56, %s3307_s3 }
0x1477   :  { %v3080_v57 = vpop.eup %3079 }
0x1478   :  { %v1025_v58 = vadd.f32 1.0, %v3080_v57  ;;  %v1363_v57 = vld [vmem:[#allocation12 + $0x18] sm:$0xff] }
0x147a   :  { %3081 = vrcp.f32 %v1025_v58 }
0x1484   :  { %v3082_v8 = vpop.eup %3081 }
0x1485   :  { %v1029_v61 = vmul.f32 %v3082_v8, %v933_v45 }
0x14e8   :  { %v1032_v59 = vpop.permute.xlu0 %1031 }
0x14e9   :  { %v1034_v60 = vmul.f32 %v3082_v8, %v1032_v59 }
0x14eb   :  { %1036 = vrot.lane.b32.xlu1 %v1034_v60, %s3308_s12 }
0x155d   :  { %v1037_v62 = vpop.permute.xlu1 %1036 }
0x155e   :  { %v1039_v63 = vadd.f32 %v1037_v62, %v1029_v61 }
0x1560   :  { %3083 = vtanh.f32 %v1039_v63 }
0x156a   :  { %v3084_v2 = vpop.eup %3083 }
0x156b   :  { %1042 = vrot.lane.b32.xlu0 %v3084_v2, %s3307_s3  ;;  %v2500_v2 = vld [vmem:[%s3795_s6] ss:$0 sm:$0xff] }
0x15dd   :  { %v1043_v3 = vpop.permute.xlu0 %1042 }
0x15de   :  { %v1045_v4 = vmul.f32 %v3082_v8, %v1043_v3  ;;  %v3599_v8 = vpack.c.bf16 %v1363_v57, %v1362_v55 }
0x15e0   :  { %1047 = vrot.lane.b32.xlu1 %v1045_v4, %s3308_s12 }
0x1652   :  { %v1048_v6 = vpop.permute.xlu1 %1047 }
0x1653   :  { %1050 = vst.msk [vmem:[#allocation2 + $0x7] sm:$0x1] %vm306_vm3, %v1048_v6  ;;  %2741 = vmatmul.mubr.msk.f32.vlgmr.msra.gmra.mrb[8].mxu1 %vm122_vm2, %v1048_v6 }
0x1654   :  { %1051 = vst.msk [vmem:[#allocation2 + $0x2] sm:$0x1] %vm308_vm4, %v1048_v6  ;;  %2944 = vmatpush3.bf16.msra.mxu1 %v2941_v49 }
0x1655   :  { %2946 = vmatprep.subr.bf16.mxu1 %v2945_v52 }
0x1658   :  { %2948 = vmatpush3.bf16.msra.mxu1 %v2945_v52 }
0x1659   :  { %2955 = vmatprep.subr.bf16.mxu1 %v3304_v0 }
0x1726   :  { %v1123_v13 = vpop.f32.mrb[8].mxu1 }
0x1727   :  { %v1127_v14 = vadd.f32 %v1123_v13, %v1054_v11  ;;  %v2742_v15 = vpop.f32.mrb[9].mxu1 }
0x1729   :  { %3085 = vtanh.f32 %v1127_v14  ;;  %v2497_v17 = vmul.f32 -1.442695, %v1127_v14 }
0x172b   :  { %3087 = vpow2.f32 %v2497_v17 }
0x1733   :  { %v3086_v16 = vpop.eup %3085 }
0x1734   :  { %1137 = vrot.lane.b32.xlu0 %v3086_v16, %s3307_s3 }
0x1735   :  { %v3088_v18 = vpop.eup %3087 }
0x1736   :  { %v1131_v19 = vadd.f32 1.0, %v3088_v18 }
0x1738   :  { %3089 = vrcp.f32 %v1131_v19 }
0x1742   :  { %v3090_v20 = vpop.eup %3089 }
0x1743   :  { %v1135_v23 = vmul.f32 %v3090_v20, %v1039_v63 }
0x17a6   :  { %v1138_v21 = vpop.permute.xlu0 %1137 }
0x17a7   :  { %v1140_v22 = vmul.f32 %v3090_v20, %v1138_v21 }
0x17a9   :  { %1142 = vrot.lane.b32.xlu1 %v1140_v22, %s3308_s12 }
0x181b   :  { %v1143_v24 = vpop.permute.xlu1 %1142 }
0x181c   :  { %v1145_v25 = vadd.f32 %v1143_v24, %v1135_v23 }
0x181e   :  { %3091 = vtanh.f32 %v1145_v25 }
0x1828   :  { %v3092_v26 = vpop.eup %3091 }
0x1829   :  { %1148 = vrot.lane.b32.xlu0 %v3092_v26, %s3307_s3 }
0x189b   :  { %v1149_v27 = vpop.permute.xlu0 %1148 }
0x189c   :  { %v1151_v28 = vmul.f32 %v3090_v20, %v1149_v27 }
0x189e   :  { %1153 = vrot.lane.b32.xlu1 %v1151_v28, %s3308_s12 }
0x1910   :  { %v1154_v29 = vpop.permute.xlu1 %1153 }
0x1911   :  { %1156 = vst.msk [vmem:[#allocation2 + $0x8] sm:$0x1] %vm306_vm3, %v1154_v29  ;;  %2752 = vmatmul.mubr.msk.f32.vlgmr.msra.gmra.mrb[10].mxu0 %vm122_vm2, %v1154_v29 }
0x1912   :  { %1157 = vst.msk [vmem:[#allocation2 + $0x1] sm:$0x1] %vm308_vm4, %v1154_v29  ;;  %2773 = vmatprep.mubr.msk.f32.mxu0 %vm3305_vm0, %v3306_v1  ;;  %2951 = vmatpush3.bf16.msra.mxu0 %v3596_v5 }
0x1913   :  { %2952 = vmatprep.subr.bf16.mxu0 %v3304_v0 }
0x1916   :  { %2954 = vmatpush3.bf16.msra.mxu0 %v3599_v8 }
0x1917   :  { %2961 = vmatprep.subr.bf16.mxu0 %v3304_v0 }
0x1919   :  { %2774 = vmatmul.mubr.f32.vlgmr.msra.gmra.mrb[12].mxu0 %v3306_v1 }
0x191a   :  { %2963 = vmatpush3.bf16.msra.mxu0 %v3596_v5  ;;  %2795 = vmatprep.mubr.msk.f32.mxu0 %vm3305_vm0, %v3306_v1 }
0x191b   :  { %2964 = vmatprep.subr.bf16.mxu0 %v3304_v0 }
0x191e   :  { %2966 = vmatpush3.bf16.msra.mxu0 %v3599_v8 }
0x191f   :  { %2973 = vmatprep.subr.bf16.mxu0 %v3304_v0 }
0x19e4   :  { %v1229_v33 = vpop.f32.mrb[10].mxu0 }
0x19e5   :  { %v1233_v34 = vadd.f32 %v1229_v33, %v1160_v32  ;;  %v2753_v35 = vpop.f32.mrb[11].mxu0 }
0x19e7   :  { %3093 = vtanh.f32 %v1233_v34  ;;  %v2499_v37 = vmul.f32 -1.442695, %v1233_v34 }
0x19e9   :  { %3095 = vpow2.f32 %v2499_v37 }
0x19ec   :  { %v1433_v62 = vpop.f32.mrb[12].mxu0 }
0x19ed   :  { %v2775_v63 = vpop.f32.mrb[13].mxu0 }
0x19f1   :  { %v3094_v36 = vpop.eup %3093 }
0x19f2   :  { %1243 = vrot.lane.b32.xlu0 %v3094_v36, %s3307_s3 }
0x19f3   :  { %v3096_v38 = vpop.eup %3095 }
0x19f4   :  { %v1237_v39 = vadd.f32 1.0, %v3096_v38 }
0x19f6   :  { %3097 = vrcp.f32 %v1237_v39 }
0x1a00   :  { %v3098_v40 = vpop.eup %3097 }
0x1a01   :  { %v1241_v43 = vmul.f32 %v3098_v40, %v1145_v25 }
0x1a64   :  { %v1244_v41 = vpop.permute.xlu0 %1243 }
0x1a65   :  { %v1246_v42 = vmul.f32 %v3098_v40, %v1244_v41 }
0x1a67   :  { %1248 = vrot.lane.b32.xlu1 %v1246_v42, %s3308_s12 }
0x1ad9   :  { %v1249_v44 = vpop.permute.xlu1 %1248 }
0x1ada   :  { %v1251_v45 = vadd.f32 %v1249_v44, %v1241_v43 }
0x1adc   :  { %3099 = vtanh.f32 %v1251_v45 }
0x1ae6   :  { %v3100_v46 = vpop.eup %3099 }
0x1ae7   :  { %1254 = vrot.lane.b32.xlu0 %v3100_v46, %s3307_s3 }
0x1b59   :  { %v1255_v56 = vpop.permute.xlu0 %1254 }
0x1b5a   :  { %v1257_v58 = vmul.f32 %v3098_v40, %v1255_v56 }
0x1b5c   :  { %1259 = vrot.lane.b32.xlu1 %v1257_v58, %s3308_s12 }
0x1bce   :  { %v1260_v59 = vpop.permute.xlu1 %1259 }
0x1bcf   :  { %1262 = vst.msk [vmem:[#allocation2 + $0x9] sm:$0x1] %vm306_vm3, %v1260_v59 }
0x1bd0   :  { %1263 = vst.msk [vmem:[#allocation2] sm:$0x1] %vm308_vm4, %v1260_v59 }
0x1bd6   :  { %v1266_v61 = vld [vmem:[#allocation2 + $0x8] sm:$0x3] }
0x1bd7   :  { %v1265_v60 = vld [vmem:[#allocation2] sm:$0xff] }
0x1bd8   :  { %2762 = vmatprep.mubr.msk.f32.mxu1 %vm122_vm2, %v1265_v60 }
0x1bd9   :  { %2763 = vmatmul.mubr.msk.f32.vlgmr.msra.gmra.mrb[10].mxu1 %vm122_vm2, %v1266_v61 }
0x1bda   :  { %2957 = vmatpush3.bf16.msra.mxu1 %v3596_v5  ;;  %2784 = vmatprep.mubr.msk.f32.mxu1 %vm3305_vm0, %v3306_v1 }
0x1bdb   :  { %2958 = vmatprep.subr.bf16.mxu1 %v3304_v0 }
0x1bde   :  { %2960 = vmatpush3.bf16.msra.mxu1 %v3599_v8 }
0x1bdf   :  { %2967 = vmatprep.subr.bf16.mxu1 %v3304_v0 }
0x1cac   :  { %v2764_v3 = vpop.f32.mrb[10].mxu1 }
0x1cad   :  { %v1355_v4 = vadd.f32 %v2764_v3, %v2500_v2  ;;  %v1349_v6 = vpop.f32.mrb[11].mxu1 }
0x1cae   :  { %v1350_v7 = vadd.f32 %v2500_v2, %v1349_v6 }
0x1caf   :  { %1359 = vst [vmem:[#allocation3 + $0x8] sm:$0x3] %v1355_v4 }
0x1cb0   :  { %1358 = vst [vmem:[#allocation3] sm:$0xff] %v1350_v7 }
0x1cb6   :  { %v1365_v9 = vld [vmem:[#allocation3 + $0x9] sm:$0x1]  ;;  %v1469_v30 = vld [vmem:[#allocation3 + $0x8] sm:$0x1] }
0x1cb7   :  { %v1364_v11 = vld [vmem:[#allocation3] sm:$0x1]  ;;  %v1468_v29 = vld [vmem:[#allocation3 + $0x1] sm:$0x1]  ;;  %v1574_v49 = vld [vmem:[#allocation3 + $0x2] sm:$0x1] }
0x1cb8   :  { %v1366_v13 = vsel %vm3452_vm1, %v1364_v11, %v1365_v9  ;;  %v1470_v31 = vsel %vm3452_vm1, %v1468_v29, %v1469_v30  ;;  %v1575_v50 = vld [vmem:[#allocation3 + $0x7] sm:$0x1]  ;;  %v1680_v9 = vld [vmem:[#allocation3 + $0x3] sm:$0x1]  ;;  %v1681_v11 = vld [vmem:[#allocation3 + $0x6] sm:$0x1] }
0x1cb9   :  { %v1437_v14 = vadd.f32 %v1433_v62, %v1366_v13  ;;  %v1576_v51 = vsel %vm3452_vm1, %v1574_v49, %v1575_v50  ;;  %v1682_v13 = vsel %vm3452_vm1, %v1680_v9, %v1681_v11 }
0x1cbb   :  { %3101 = vtanh.f32 %v1437_v14  ;;  %v2503_v16 = vmul.f32 -1.442695, %v1437_v14 }
0x1cbd   :  { %3103 = vpow2.f32 %v2503_v16 }
0x1cc5   :  { %v3102_v15 = vpop.eup %3101 }
0x1cc6   :  { %1447 = vrot.lane.b32.xlu0 %v3102_v15, %s3307_s3 }
0x1cc7   :  { %v3104_v17 = vpop.eup %3103 }
0x1cc8   :  { %v1441_v18 = vadd.f32 1.0, %v3104_v17 }
0x1cca   :  { %3105 = vrcp.f32 %v1441_v18 }
0x1cd4   :  { %v3106_v19 = vpop.eup %3105 }
0x1cd5   :  { %v1445_v22 = vmul.f32 0.0, %v3106_v19 }
0x1d38   :  { %v1448_v20 = vpop.permute.xlu0 %1447 }
0x1d39   :  { %v1450_v21 = vmul.f32 %v3106_v19, %v1448_v20 }
0x1d3b   :  { %1452 = vrot.lane.b32.xlu1 %v1450_v21, %s3308_s12 }
0x1dad   :  { %v1453_v23 = vpop.permute.xlu1 %1452 }
0x1dae   :  { %v1455_v24 = vadd.f32 %v1453_v23, %v1445_v22 }
0x1db0   :  { %3107 = vtanh.f32 %v1455_v24 }
0x1dba   :  { %v3108_v25 = vpop.eup %3107 }
0x1dbb   :  { %1458 = vrot.lane.b32.xlu0 %v3108_v25, %s3307_s3 }
0x1e2d   :  { %v1459_v26 = vpop.permute.xlu0 %1458 }
0x1e2e   :  { %v1461_v27 = vmul.f32 %v3106_v19, %v1459_v26 }
0x1e30   :  { %1463 = vrot.lane.b32.xlu1 %v1461_v27, %s3308_s12 }
0x1ea2   :  { %v1464_v28 = vpop.permute.xlu1 %1463 }
0x1ea3   :  { %1466 = vst.msk [vmem:[#allocation2] sm:$0x1] %vm306_vm3, %v1464_v28  ;;  %2785 = vmatmul.mubr.msk.f32.vlgmr.msra.gmra.mrb[12].mxu1 %vm122_vm2, %v1464_v28 }
0x1ea4   :  { %1467 = vst.msk [vmem:[#allocation2 + $0x9] sm:$0x1] %vm308_vm4, %v1464_v28  ;;  %2969 = vmatpush3.bf16.msra.mxu1 %v3596_v5  ;;  %2806 = vmatprep.mubr.msk.f32.mxu1 %vm3305_vm0, %v3306_v1 }
0x1ea5   :  { %2970 = vmatprep.subr.bf16.mxu1 %v3304_v0 }
0x1ea8   :  { %2972 = vmatpush3.bf16.msra.mxu1 %v3599_v8 }
0x1ea9   :  { %2979 = vmatprep.subr.bf16.mxu1 %v3304_v0 }
0x1f76   :  { %v1539_v32 = vpop.f32.mrb[12].mxu1 }
0x1f77   :  { %v1543_v33 = vadd.f32 %v1539_v32, %v1470_v31  ;;  %v2786_v34 = vpop.f32.mrb[13].mxu1  ;;  %v1786_v31 = vld [vmem:[#allocation3 + $0x4] sm:$0x1]  ;;  %v1787_v32 = vld [vmem:[#allocation3 + $0x5] sm:$0x1] }
0x1f79   :  { %3109 = vtanh.f32 %v1543_v33  ;;  %v2505_v36 = vmul.f32 -1.442695, %v1543_v33  ;;  %v1788_v33 = vsel %vm3452_vm1, %v1786_v31, %v1787_v32 }
0x1f7b   :  { %3111 = vpow2.f32 %v2505_v36 }
0x1f83   :  { %v3110_v35 = vpop.eup %3109 }
0x1f84   :  { %1553 = vrot.lane.b32.xlu0 %v3110_v35, %s3307_s3 }
0x1f85   :  { %v3112_v37 = vpop.eup %3111 }
0x1f86   :  { %v1547_v38 = vadd.f32 1.0, %v3112_v37 }
0x1f88   :  { %3113 = vrcp.f32 %v1547_v38 }
0x1f92   :  { %v3114_v39 = vpop.eup %3113 }
0x1f93   :  { %v1551_v42 = vmul.f32 %v3114_v39, %v1455_v24 }
0x1ff6   :  { %v1554_v40 = vpop.permute.xlu0 %1553 }
0x1ff7   :  { %v1556_v41 = vmul.f32 %v3114_v39, %v1554_v40 }
0x1ff9   :  { %1558 = vrot.lane.b32.xlu1 %v1556_v41, %s3308_s12 }
0x206b   :  { %v1559_v43 = vpop.permute.xlu1 %1558 }
0x206c   :  { %v1561_v44 = vadd.f32 %v1559_v43, %v1551_v42 }
0x206e   :  { %3115 = vtanh.f32 %v1561_v44 }
0x2078   :  { %v3116_v45 = vpop.eup %3115 }
0x2079   :  { %1564 = vrot.lane.b32.xlu0 %v3116_v45, %s3307_s3 }
0x20eb   :  { %v1565_v46 = vpop.permute.xlu0 %1564 }
0x20ec   :  { %v1567_v47 = vmul.f32 %v3114_v39, %v1565_v46 }
0x20ee   :  { %1569 = vrot.lane.b32.xlu1 %v1567_v47, %s3308_s12 }
0x2160   :  { %v1570_v48 = vpop.permute.xlu1 %1569 }
0x2161   :  { %1572 = vst.msk [vmem:[#allocation2 + $0x1] sm:$0x1] %vm306_vm3, %v1570_v48  ;;  %2796 = vmatmul.mubr.msk.f32.vlgmr.msra.gmra.mrb[14].mxu0 %vm122_vm2, %v1570_v48 }
0x2162   :  { %1573 = vst.msk [vmem:[#allocation2 + $0x8] sm:$0x1] %vm308_vm4, %v1570_v48  ;;  %2975 = vmatpush3.bf16.msra.mxu0 %v3596_v5  ;;  %2817 = vmatprep.mubr.msk.f32.mxu0 %vm3305_vm0, %v3306_v1 }
0x2163   :  { %2976 = vmatprep.subr.bf16.mxu0 %v3304_v0 }
0x2166   :  { %2978 = vmatpush3.bf16.msra.mxu0 %v3599_v8 }
0x2167   :  { %2985 = vmatprep.subr.bf16.mxu0 %v3304_v0 }
0x2234   :  { %v1645_v52 = vpop.f32.mrb[14].mxu0 }
0x2235   :  { %v1649_v53 = vadd.f32 %v1645_v52, %v1576_v51  ;;  %v2797_v54 = vpop.f32.mrb[15].mxu0  ;;  %v1892_v51 = vld [vmem:[#allocation3 + $0x5] sm:$0x1]  ;;  %v1893_v52 = vld [vmem:[#allocation3 + $0x4] sm:$0x1] }
0x2237   :  { %3117 = vtanh.f32 %v1649_v53  ;;  %v2507_v56 = vmul.f32 -1.442695, %v1649_v53  ;;  %v1894_v53 = vsel %vm3452_vm1, %v1892_v51, %v1893_v52 }
0x2239   :  { %3119 = vpow2.f32 %v2507_v56 }
0x2241   :  { %v3118_v55 = vpop.eup %3117 }
0x2242   :  { %1659 = vrot.lane.b32.xlu0 %v3118_v55, %s3307_s3 }
0x2243   :  { %v3120_v57 = vpop.eup %3119 }
0x2244   :  { %v1653_v58 = vadd.f32 1.0, %v3120_v57 }
0x2246   :  { %3121 = vrcp.f32 %v1653_v58 }
0x2250   :  { %v3122_v59 = vpop.eup %3121 }
0x2251   :  { %v1657_v62 = vmul.f32 %v3122_v59, %v1561_v44 }
0x22b4   :  { %v1660_v60 = vpop.permute.xlu0 %1659 }
0x22b5   :  { %v1662_v61 = vmul.f32 %v3122_v59, %v1660_v60 }
0x22b7   :  { %1664 = vrot.lane.b32.xlu1 %v1662_v61, %s3308_s12 }
0x2329   :  { %v1665_v63 = vpop.permute.xlu1 %1664 }
0x232a   :  { %v1667_v2 = vadd.f32 %v1665_v63, %v1657_v62 }
0x232c   :  { %3123 = vtanh.f32 %v1667_v2 }
0x2336   :  { %v3124_v3 = vpop.eup %3123 }
0x2337   :  { %1670 = vrot.lane.b32.xlu0 %v3124_v3, %s3307_s3 }
0x23a9   :  { %v1671_v4 = vpop.permute.xlu0 %1670 }
0x23aa   :  { %v1673_v6 = vmul.f32 %v3122_v59, %v1671_v4 }
0x23ac   :  { %1675 = vrot.lane.b32.xlu1 %v1673_v6, %s3308_s12 }
0x241e   :  { %v1676_v7 = vpop.permute.xlu1 %1675 }
0x241f   :  { %1678 = vst.msk [vmem:[#allocation2 + $0x2] sm:$0x1] %vm306_vm3, %v1676_v7  ;;  %2807 = vmatmul.mubr.msk.f32.vlgmr.msra.gmra.mrb[14].mxu1 %vm122_vm2, %v1676_v7 }
0x2420   :  { %1679 = vst.msk [vmem:[#allocation2 + $0x7] sm:$0x1] %vm308_vm4, %v1676_v7  ;;  %2981 = vmatpush3.bf16.msra.mxu1 %v3596_v5  ;;  %2828 = vmatprep.mubr.msk.f32.mxu1 %vm3305_vm0, %v3306_v1 }
0x2421   :  { %2982 = vmatprep.subr.bf16.mxu1 %v3304_v0 }
0x2424   :  { %2984 = vmatpush3.bf16.msra.mxu1 %v3599_v8 }
0x2425   :  { %2991 = vmatprep.subr.bf16.mxu1 %v3304_v0 }
0x24f2   :  { %v1751_v14 = vpop.f32.mrb[14].mxu1 }
0x24f3   :  { %v1755_v15 = vadd.f32 %v1751_v14, %v1682_v13  ;;  %v2808_v16 = vpop.f32.mrb[15].mxu1  ;;  %v1998_v13 = vld [vmem:[#allocation3 + $0x6] sm:$0x1]  ;;  %v1999_v14 = vld [vmem:[#allocation3 + $0x3] sm:$0x1] }
0x24f5   :  { %3125 = vtanh.f32 %v1755_v15  ;;  %v2509_v18 = vmul.f32 -1.442695, %v1755_v15  ;;  %v2000_v15 = vsel %vm3452_vm1, %v1998_v13, %v1999_v14 }
0x24f7   :  { %3127 = vpow2.f32 %v2509_v18 }
0x24ff   :  { %v3126_v17 = vpop.eup %3125 }
0x2500   :  { %1765 = vrot.lane.b32.xlu0 %v3126_v17, %s3307_s3 }
0x2501   :  { %v3128_v19 = vpop.eup %3127 }
0x2502   :  { %v1759_v20 = vadd.f32 1.0, %v3128_v19 }
0x2504   :  { %3129 = vrcp.f32 %v1759_v20 }
0x250e   :  { %v3130_v21 = vpop.eup %3129 }
0x250f   :  { %v1763_v24 = vmul.f32 %v3130_v21, %v1667_v2 }
0x2572   :  { %v1766_v22 = vpop.permute.xlu0 %1765 }
0x2573   :  { %v1768_v23 = vmul.f32 %v3130_v21, %v1766_v22 }
0x2575   :  { %1770 = vrot.lane.b32.xlu1 %v1768_v23, %s3308_s12 }
0x25e7   :  { %v1771_v25 = vpop.permute.xlu1 %1770 }
0x25e8   :  { %v1773_v26 = vadd.f32 %v1771_v25, %v1763_v24 }
0x25ea   :  { %3131 = vtanh.f32 %v1773_v26 }
0x25f4   :  { %v3132_v27 = vpop.eup %3131 }
0x25f5   :  { %1776 = vrot.lane.b32.xlu0 %v3132_v27, %s3307_s3 }
0x2667   :  { %v1777_v28 = vpop.permute.xlu0 %1776 }
0x2668   :  { %v1779_v29 = vmul.f32 %v3130_v21, %v1777_v28 }
0x266a   :  { %1781 = vrot.lane.b32.xlu1 %v1779_v29, %s3308_s12 }
0x26dc   :  { %v1782_v30 = vpop.permute.xlu1 %1781 }
0x26dd   :  { %1784 = vst.msk [vmem:[#allocation2 + $0x3] sm:$0x1] %vm306_vm3, %v1782_v30  ;;  %2818 = vmatmul.mubr.msk.f32.vlgmr.msra.gmra.mrb[16].mxu0 %vm122_vm2, %v1782_v30 }
0x26de   :  { %1785 = vst.msk [vmem:[#allocation2 + $0x6] sm:$0x1] %vm308_vm4, %v1782_v30  ;;  %2987 = vmatpush3.bf16.msra.mxu0 %v3596_v5  ;;  %2839 = vmatprep.mubr.msk.f32.mxu0 %vm3305_vm0, %v3306_v1 }
0x26df   :  { %2988 = vmatprep.subr.bf16.mxu0 %v3304_v0 }
0x26e2   :  { %2990 = vmatpush3.bf16.msra.mxu0 %v3599_v8 }
0x26e3   :  { %2997 = vmatprep.subr.bf16.mxu0 %v3304_v0 }
0x27b0   :  { %v1857_v34 = vpop.f32.mrb[16].mxu0 }
0x27b1   :  { %v1861_v35 = vadd.f32 %v1857_v34, %v1788_v33  ;;  %v2819_v36 = vpop.f32.mrb[17].mxu0  ;;  %v2104_v33 = vld [vmem:[#allocation3 + $0x7] sm:$0x1]  ;;  %v2105_v34 = vld [vmem:[#allocation3 + $0x2] sm:$0x1] }
0x27b3   :  { %3133 = vtanh.f32 %v1861_v35  ;;  %v2511_v38 = vmul.f32 -1.442695, %v1861_v35  ;;  %v2106_v35 = vsel %vm3452_vm1, %v2104_v33, %v2105_v34 }
0x27b5   :  { %3135 = vpow2.f32 %v2511_v38 }
0x27bd   :  { %v3134_v37 = vpop.eup %3133 }
0x27be   :  { %1871 = vrot.lane.b32.xlu0 %v3134_v37, %s3307_s3 }
0x27bf   :  { %v3136_v39 = vpop.eup %3135 }
0x27c0   :  { %v1865_v40 = vadd.f32 1.0, %v3136_v39 }
0x27c2   :  { %3137 = vrcp.f32 %v1865_v40 }
0x27cc   :  { %v3138_v41 = vpop.eup %3137 }
0x27cd   :  { %v1869_v44 = vmul.f32 %v3138_v41, %v1773_v26 }
0x2830   :  { %v1872_v42 = vpop.permute.xlu0 %1871 }
0x2831   :  { %v1874_v43 = vmul.f32 %v3138_v41, %v1872_v42 }
0x2833   :  { %1876 = vrot.lane.b32.xlu1 %v1874_v43, %s3308_s12 }
0x28a5   :  { %v1877_v45 = vpop.permute.xlu1 %1876 }
0x28a6   :  { %v1879_v46 = vadd.f32 %v1877_v45, %v1869_v44 }
0x28a8   :  { %3139 = vtanh.f32 %v1879_v46 }
0x28b2   :  { %v3140_v47 = vpop.eup %3139 }
0x28b3   :  { %1882 = vrot.lane.b32.xlu0 %v3140_v47, %s3307_s3 }
0x2925   :  { %v1883_v48 = vpop.permute.xlu0 %1882 }
0x2926   :  { %v1885_v49 = vmul.f32 %v3138_v41, %v1883_v48 }
0x2928   :  { %1887 = vrot.lane.b32.xlu1 %v1885_v49, %s3308_s12  ;;  %v2210_v49 = vld [vmem:[#allocation3 + $0x8] sm:$0x1] }
0x299a   :  { %v1888_v50 = vpop.permute.xlu1 %1887 }
0x299b   :  { %1890 = vst.msk [vmem:[#allocation2 + $0x4] sm:$0x1] %vm306_vm3, %v1888_v50  ;;  %2829 = vmatmul.mubr.msk.f32.vlgmr.msra.gmra.mrb[16].mxu1 %vm122_vm2, %v1888_v50 }
0x299c   :  { %1891 = vst.msk [vmem:[#allocation2 + $0x5] sm:$0x1] %vm308_vm4, %v1888_v50  ;;  %2993 = vmatpush3.bf16.msra.mxu1 %v3596_v5  ;;  %2850 = vmatprep.mubr.msk.f32.mxu1 %vm3305_vm0, %v3306_v1  ;;  %v2211_v50 = vld [vmem:[#allocation3 + $0x1] sm:$0x1] }
0x299d   :  { %2994 = vmatprep.subr.bf16.mxu1 %v3304_v0  ;;  %v2212_v51 = vsel %vm3452_vm1, %v2210_v49, %v2211_v50 }
0x29a0   :  { %2996 = vmatpush3.bf16.msra.mxu1 %v3599_v8 }
0x29a1   :  { %3003 = vmatprep.subr.bf16.mxu1 %v3304_v0 }
0x2a6e   :  { %v1963_v54 = vpop.f32.mrb[16].mxu1 }
0x2a6f   :  { %v1967_v55 = vadd.f32 %v1963_v54, %v1894_v53  ;;  %v2830_v56 = vpop.f32.mrb[17].mxu1 }
0x2a71   :  { %3141 = vtanh.f32 %v1967_v55  ;;  %v2513_v58 = vmul.f32 -1.442695, %v1967_v55 }
0x2a73   :  { %3143 = vpow2.f32 %v2513_v58 }
0x2a7b   :  { %v3142_v57 = vpop.eup %3141 }
0x2a7c   :  { %1977 = vrot.lane.b32.xlu0 %v3142_v57, %s3307_s3 }
0x2a7d   :  { %v3144_v59 = vpop.eup %3143 }
0x2a7e   :  { %v1971_v60 = vadd.f32 1.0, %v3144_v59 }
0x2a80   :  { %3145 = vrcp.f32 %v1971_v60 }
0x2a8a   :  { %v3146_v61 = vpop.eup %3145 }
0x2a8b   :  { %v1975_v2 = vmul.f32 %v3146_v61, %v1879_v46 }
0x2aee   :  { %v1978_v62 = vpop.permute.xlu0 %1977 }
0x2aef   :  { %v1980_v63 = vmul.f32 %v3146_v61, %v1978_v62 }
0x2af1   :  { %1982 = vrot.lane.b32.xlu1 %v1980_v63, %s3308_s12 }
0x2b63   :  { %v1983_v3 = vpop.permute.xlu1 %1982 }
0x2b64   :  { %v1985_v4 = vadd.f32 %v1983_v3, %v1975_v2 }
0x2b66   :  { %3147 = vtanh.f32 %v1985_v4 }
0x2b70   :  { %v3148_v6 = vpop.eup %3147 }
0x2b71   :  { %1988 = vrot.lane.b32.xlu0 %v3148_v6, %s3307_s3 }
0x2be3   :  { %v1989_v7 = vpop.permute.xlu0 %1988 }
0x2be4   :  { %v1991_v9 = vmul.f32 %v3146_v61, %v1989_v7 }
0x2be6   :  { %1993 = vrot.lane.b32.xlu1 %v1991_v9, %s3308_s12  ;;  %v2316_v9 = vld [vmem:[#allocation3 + $0x9] sm:$0x1] }
0x2c58   :  { %v1994_v11 = vpop.permute.xlu1 %1993 }
0x2c59   :  { %1996 = vst.msk [vmem:[#allocation2 + $0x5] sm:$0x1] %vm306_vm3, %v1994_v11  ;;  %2840 = vmatmul.mubr.msk.f32.vlgmr.msra.gmra.mrb[18].mxu0 %vm122_vm2, %v1994_v11 }
0x2c5a   :  { %1997 = vst.msk [vmem:[#allocation2 + $0x4] sm:$0x1] %vm308_vm4, %v1994_v11  ;;  %2999 = vmatpush3.bf16.msra.mxu0 %v3596_v5  ;;  %2861 = vmatprep.mubr.msk.f32.mxu0 %vm3305_vm0, %v3306_v1  ;;  %v2317_v11 = vld [vmem:[#allocation3] sm:$0x1] }
0x2c5b   :  { %3000 = vmatprep.subr.bf16.mxu0 %v3304_v0  ;;  %v2318_v13 = vsel %vm3452_vm1, %v2316_v9, %v2317_v11 }
0x2c5e   :  { %3002 = vmatpush3.bf16.msra.mxu0 %v3599_v8 }
0x2d2c   :  { %v2069_v16 = vpop.f32.mrb[18].mxu0 }
0x2d2d   :  { %v2073_v17 = vadd.f32 %v2069_v16, %v2000_v15  ;;  %v2841_v18 = vpop.f32.mrb[19].mxu0 }
0x2d2f   :  { %3149 = vtanh.f32 %v2073_v17  ;;  %v2515_v20 = vmul.f32 -1.442695, %v2073_v17 }
0x2d31   :  { %3151 = vpow2.f32 %v2515_v20 }
0x2d39   :  { %v3150_v19 = vpop.eup %3149 }
0x2d3a   :  { %2083 = vrot.lane.b32.xlu0 %v3150_v19, %s3307_s3 }
0x2d3b   :  { %v3152_v21 = vpop.eup %3151 }
0x2d3c   :  { %v2077_v22 = vadd.f32 1.0, %v3152_v21 }
0x2d3e   :  { %3153 = vrcp.f32 %v2077_v22 }
0x2d48   :  { %v3154_v23 = vpop.eup %3153 }
0x2d49   :  { %v2081_v26 = vmul.f32 %v3154_v23, %v1985_v4 }
0x2dac   :  { %v2084_v24 = vpop.permute.xlu0 %2083 }
0x2dad   :  { %v2086_v25 = vmul.f32 %v3154_v23, %v2084_v24 }
0x2daf   :  { %2088 = vrot.lane.b32.xlu1 %v2086_v25, %s3308_s12 }
0x2e21   :  { %v2089_v27 = vpop.permute.xlu1 %2088 }
0x2e22   :  { %v2091_v28 = vadd.f32 %v2089_v27, %v2081_v26 }
0x2e24   :  { %3155 = vtanh.f32 %v2091_v28 }
0x2e2e   :  { %v3156_v29 = vpop.eup %3155 }
0x2e2f   :  { %2094 = vrot.lane.b32.xlu0 %v3156_v29, %s3307_s3 }
0x2ea1   :  { %v2095_v30 = vpop.permute.xlu0 %2094 }
0x2ea2   :  { %v2097_v31 = vmul.f32 %v3154_v23, %v2095_v30 }
0x2ea4   :  { %2099 = vrot.lane.b32.xlu1 %v2097_v31, %s3308_s12 }
0x2f16   :  { %v2100_v32 = vpop.permute.xlu1 %2099 }
0x2f17   :  { %2102 = vst.msk [vmem:[#allocation2 + $0x6] sm:$0x1] %vm306_vm3, %v2100_v32  ;;  %2851 = vmatmul.mubr.msk.f32.vlgmr.msra.gmra.mrb[18].mxu1 %vm122_vm2, %v2100_v32 }
0x2f18   :  { %2103 = vst.msk [vmem:[#allocation2 + $0x3] sm:$0x1] %vm308_vm4, %v2100_v32  ;;  %3005 = vmatpush3.bf16.msra.mxu1 %v3596_v5  ;;  %2872 = vmatprep.mubr.msk.f32.mxu1 %vm3305_vm0, %v3306_v1 }
0x2f19   :  { %3006 = vmatprep.subr.bf16.mxu1 %v3304_v0 }
0x2f1c   :  { %3008 = vmatpush3.bf16.msra.mxu1 %v3599_v8 }
0x2fea   :  { %v2175_v36 = vpop.f32.mrb[18].mxu1 }
0x2feb   :  { %v2179_v37 = vadd.f32 %v2175_v36, %v2106_v35  ;;  %v2852_v38 = vpop.f32.mrb[19].mxu1 }
0x2fed   :  { %3157 = vtanh.f32 %v2179_v37  ;;  %v2517_v5 = vmul.f32 -1.442695, %v2179_v37 }
0x2fef   :  { %3159 = vpow2.f32 %v2517_v5 }
0x2ff7   :  { %v3158_v39 = vpop.eup %3157 }
0x2ff8   :  { %2189 = vrot.lane.b32.xlu0 %v3158_v39, %s3307_s3 }
0x2ff9   :  { %v3160_v40 = vpop.eup %3159 }
0x2ffa   :  { %v2183_v1 = vadd.f32 1.0, %v3160_v40 }
0x2ffc   :  { %3161 = vrcp.f32 %v2183_v1 }
0x3006   :  { %v3162_v0 = vpop.eup %3161 }
0x3007   :  { %v2187_v42 = vmul.f32 %v3162_v0, %v2091_v28 }
0x306a   :  { %v2190_v41 = vpop.permute.xlu0 %2189 }
0x306b   :  { %v2192_v8 = vmul.f32 %v3162_v0, %v2190_v41 }
0x306d   :  { %2194 = vrot.lane.b32.xlu1 %v2192_v8, %s3308_s12 }
0x30df   :  { %v2195_v43 = vpop.permute.xlu1 %2194 }
0x30e0   :  { %v2197_v44 = vadd.f32 %v2195_v43, %v2187_v42 }
0x30e2   :  { %3163 = vtanh.f32 %v2197_v44 }
0x30ec   :  { %v3164_v45 = vpop.eup %3163 }
0x30ed   :  { %2200 = vrot.lane.b32.xlu0 %v3164_v45, %s3307_s3 }
0x315f   :  { %v2201_v46 = vpop.permute.xlu0 %2200 }
0x3160   :  { %v2203_v47 = vmul.f32 %v3162_v0, %v2201_v46 }
0x3162   :  { %2205 = vrot.lane.b32.xlu1 %v2203_v47, %s3308_s12 }
0x31d4   :  { %v2206_v48 = vpop.permute.xlu1 %2205 }
0x31d5   :  { %2208 = vst.msk [vmem:[#allocation2 + $0x7] sm:$0x1] %vm306_vm3, %v2206_v48  ;;  %2862 = vmatmul.mubr.msk.f32.vlgmr.msra.gmra.mrb[20].mxu0 %vm122_vm2, %v2206_v48 }
0x31d6   :  { %2209 = vst.msk [vmem:[#allocation2 + $0x2] sm:$0x1] %vm308_vm4, %v2206_v48 }
0x32a8   :  { %v2281_v52 = vpop.f32.mrb[20].mxu0 }
0x32a9   :  { %v2285_v53 = vadd.f32 %v2281_v52, %v2212_v51  ;;  %v2863_v54 = vpop.f32.mrb[21].mxu0 }
0x32ab   :  { %3165 = vtanh.f32 %v2285_v53  ;;  %v2519_v56 = vmul.f32 -1.442695, %v2285_v53 }
0x32ad   :  { %3167 = vpow2.f32 %v2519_v56 }
0x32b5   :  { %v3166_v55 = vpop.eup %3165 }
0x32b6   :  { %2295 = vrot.lane.b32.xlu0 %v3166_v55, %s3307_s3 }
0x32b7   :  { %v3168_v57 = vpop.eup %3167 }
0x32b8   :  { %v2289_v58 = vadd.f32 1.0, %v3168_v57 }
0x32ba   :  { %3169 = vrcp.f32 %v2289_v58 }
0x32c4   :  { %v3170_v59 = vpop.eup %3169 }
0x32c5   :  { %v2293_v62 = vmul.f32 %v3170_v59, %v2197_v44 }
0x3328   :  { %v2296_v60 = vpop.permute.xlu0 %2295 }
0x3329   :  { %v2298_v61 = vmul.f32 %v3170_v59, %v2296_v60 }
0x332b   :  { %2300 = vrot.lane.b32.xlu1 %v2298_v61, %s3308_s12 }
0x339d   :  { %v2301_v63 = vpop.permute.xlu1 %2300 }
0x339e   :  { %v2303_v2 = vadd.f32 %v2301_v63, %v2293_v62 }
0x33a0   :  { %3171 = vtanh.f32 %v2303_v2 }
0x33aa   :  { %v3172_v3 = vpop.eup %3171 }
0x33ab   :  { %2306 = vrot.lane.b32.xlu0 %v3172_v3, %s3307_s3 }
0x341d   :  { %v2307_v4 = vpop.permute.xlu0 %2306 }
0x341e   :  { %v2309_v6 = vmul.f32 %v3170_v59, %v2307_v4 }
0x3420   :  { %2311 = vrot.lane.b32.xlu1 %v2309_v6, %s3308_s12 }
0x3492   :  { %v2312_v7 = vpop.permute.xlu1 %2311 }
0x3493   :  { %2314 = vst.msk [vmem:[#allocation2 + $0x8] sm:$0x1] %vm306_vm3, %v2312_v7  ;;  %2873 = vmatmul.mubr.msk.f32.vlgmr.msra.gmra.mrb[20].mxu1 %vm122_vm2, %v2312_v7 }
0x3494   :  { %2315 = vst.msk [vmem:[#allocation2 + $0x1] sm:$0x1] %vm308_vm4, %v2312_v7 }
0x349a   :  { %v2423_v36 = vld [vmem:[#allocation2 + $0x8] sm:$0x1] }
0x349b   :  { %v2424_v30 = vld [vmem:[#allocation2 + $0x1] sm:$0xff] }
0x349c   :  { %v2426_v31 = vsub.f32 0.0, %v2424_v30 }
0x3566   :  { %v2387_v14 = vpop.f32.mrb[20].mxu1 }
0x3567   :  { %v2391_v15 = vadd.f32 %v2387_v14, %v2318_v13  ;;  %v2874_v16 = vpop.f32.mrb[21].mxu1 }
0x3569   :  { %3173 = vtanh.f32 %v2391_v15  ;;  %v2521_v18 = vmul.f32 -1.442695, %v2391_v15 }
0x356b   :  { %3175 = vpow2.f32 %v2521_v18 }
0x3573   :  { %v3174_v17 = vpop.eup %3173 }
0x3574   :  { %2401 = vrot.lane.b32.xlu0 %v3174_v17, %s3307_s3 }
0x3575   :  { %v3176_v19 = vpop.eup %3175 }
0x3576   :  { %v2395_v20 = vadd.f32 1.0, %v3176_v19 }
0x3578   :  { %3177 = vrcp.f32 %v2395_v20 }
0x3582   :  { %v3178_v21 = vpop.eup %3177 }
0x3583   :  { %v2399_v24 = vmul.f32 %v3178_v21, %v2303_v2 }
0x35e6   :  { %v2402_v22 = vpop.permute.xlu0 %2401 }
0x35e7   :  { %v2404_v23 = vmul.f32 %v3178_v21, %v2402_v22 }
0x35e9   :  { %2406 = vrot.lane.b32.xlu1 %v2404_v23, %s3308_s12 }
0x365b   :  { %v2407_v12 = vpop.permute.xlu1 %2406 }
0x365c   :  { %v2409_v25 = vadd.f32 %v2407_v12, %v2399_v24 }
0x365e   :  { %3179 = vtanh.f32 %v2409_v25 }
0x3668   :  { %v3180_v26 = vpop.eup %3179 }
0x3669   :  { %2412 = vrot.lane.b32.xlu0 %v3180_v26, %s3307_s3 }
0x36db   :  { %v2413_v27 = vpop.permute.xlu0 %2412 }
0x36dc   :  { %v2415_v28 = vmul.f32 %v3178_v21, %v2413_v27 }
0x36de   :  { %2417 = vrot.lane.b32.xlu1 %v2415_v28, %s3308_s12 }
0x3750   :  { %v2418_v29 = vpop.permute.xlu1 %2417 }
0x3751   :  { %2420 = vst.msk [vmem:[#allocation2 + $0x9] sm:$0x1] %vm306_vm3, %v2418_v29 }
0x3752   :  { %2421 = vst.msk [vmem:[#allocation2] sm:$0x1] %vm308_vm4, %v2418_v29 }
0x3758   :  { %v2425_v33 = vld [vmem:[#allocation2 + $0x9] sm:$0x1] }
0x3759   :  { %v2422_v32 = vld [vmem:[#allocation2] sm:$0xff]  ;;  %v2427_v34 = vsub.f32 0.0, %v2425_v33 }
0x375a   :  { %v2430_v35 = vsel %vm107_vm5, %v2422_v32, %v2426_v31 }
0x375b   :  { %2432 = vst.msk [vmem:[#allocation4] sm:$0xff] %vm122_vm2, %v2430_v35  ;;  %v2431_v37 = vsel %vm107_vm5, %v2423_v36, %v2427_v34 }
0x375c   :  { %2434 = vst.msk [vmem:[#allocation4 + $0x8] sm:$0x1] %vm2433_vm6, %v2431_v37 }
0x3762   :  { %v2436_v38 = vld [vmem:[#allocation4] sm:$0xff] }
0x3763   :  { %v2440_v39 = vld [vmem:[#allocation4] sm:$0x7f]  ;;  %v2464_v51 = vld [vmem:[#allocation4 + $0x7] sm:$0x3] }
0x3764   :  { %v2445_v10 = vld [vmem:[#allocation4] sm:$0x3f]  ;;  %v2459_v47 = vld [vmem:[#allocation4 + $0x6] sm:$0x7] }
0x3765   :  { %v2450_v5 = vld [vmem:[#allocation4] sm:$0x1f]  ;;  %v2454_v46 = vld [vmem:[#allocation4 + $0x5] sm:$0xf] }
0x3766   :  { %v2455_v40 = vld [vmem:[#allocation4] sm:$0xf]  ;;  %v2449_v45 = vld [vmem:[#allocation4 + $0x4] sm:$0x1f] }
0x3767   :  { %v2460_v1 = vld [vmem:[#allocation4] sm:$0x7]  ;;  %v2444_v8 = vld [vmem:[#allocation4 + $0x3] sm:$0x3f]  ;;  %v2451_v48 = vsub.f32 %v2449_v45, %v2450_v5  ;;  %v2456_v49 = vsub.f32 %v2454_v46, %v2455_v40 }
0x3768   :  { %v2435_v0 = vld [vmem:[#allocation4 + $0x1] sm:$0xff]  ;;  %v2446_v44 = vsub.f32 %v2444_v8, %v2445_v10  ;;  %v2461_v50 = vsub.f32 %v2459_v47, %v2460_v1  ;;  %v2470_v55 = vld [vmem:[#allocation4] sm:$0x1] }
0x3769   :  { %v2439_v41 = vld [vmem:[#allocation4 + $0x2] sm:$0x7f]  ;;  %v2437_v42 = vsub.f32 %v2435_v0, %v2436_v38  ;;  %v2465_v52 = vld [vmem:[#allocation4] sm:$0x3]  ;;  %2453 = vst.msk [vmem:[%s3796_s7 + $0x15] sm:$0x1f] %vm2452_vm9, %v2451_v48 }
0x376a   :  { %v2441_v43 = vsub.f32 %v2439_v41, %v2440_v39  ;;  %v2469_v53 = vld [vmem:[#allocation4 + $0x8] sm:$0x1]  ;;  %2448 = vst.msk [vmem:[%s3796_s7 + $0xf] sm:$0x3f] %vm2447_vm8, %v2446_v44  ;;  %v2466_v54 = vsub.f32 %v2464_v51, %v2465_v52 }
0x376b   :  { %2438 = vst.msk [vmem:[%s3796_s7] sm:$0xff] %vm122_vm2, %v2437_v42  ;;  %v2471_v56 = vsub.f32 %v2469_v53, %v2470_v55 }
0x376c   :  { %2443 = vst.msk [vmem:[%s3796_s7 + $0x8] sm:$0x7f] %vm2442_vm7, %v2441_v43 }
0x376d   :  { %2458 = vst.msk [vmem:[%s3796_s7 + $0x1a] sm:$0xf] %vm2457_vm10, %v2456_v49 }
0x376e   :  { %2463 = vst.msk [vmem:[%s3796_s7 + $0x1e] sm:$0x7] %vm2462_vm11, %v2461_v50 }
0x376f   :  { %2468 = vst.msk [vmem:[%s3796_s7 + $0x21] sm:$0x3] %vm2467_vm12, %v2466_v54 }
0x3770   :  { %2472 = vst.msk [vmem:[%s3796_s7 + $0x23] sm:$0x1] %vm2433_vm6, %v2471_v56 }
0x3771   :  { %2477 = vsyncpa [#allocation6], 1 }
0x3772   :  { %2478 = vsyncpa [#allocation8], 1 }
0x3773   :  { %2479 = vsyncpa [#allocation11], 1 }

</bundles_post_ra>
